<compile_context>
chip_gen: v7x
topology: tpu7x:2x2x1
jax: 0.10.0
libtpu: 0.0.40
codegen_flags: <defaults>
</compile_context>

<pallas_src>
import functools

import jax
import jax.numpy as jnp
from jax import lax
from jax.experimental import pallas as pl
from jax.experimental.pallas import tpu as pltpu
import numpy as np


# ----------------------------- tiling helpers ------------------------------

def _pick_n_tile(n):
    # largest lane-dense tile that divides N and gives >= 2 pipeline steps
    for t in (2048, 1024, 512, 256, 128):
        if n % t == 0 and n // t >= 2:
            return t
    return n


def _pick_co_tile(cout):
    # output-channel tile (sublane axis), prefer >= 2 tiles so the channel grid is exercised
    for t in (16, 8):
        if cout % t == 0 and cout // t >= 2:
            return t
    return cout


# -------------------- fused 1x1 conv + depthwise 3x3 conv -------------------

def _fused_pw_dw_kernel(W, x_ref, w1_ref, b1_ref, wdw_ref, bdw_ref, wmask_ref,
                        o_ref, ypad_ref):
    # x_ref:    (1, Cin, N)        resident per batch (same block across channel tiles)
    # w1_ref:   (tco, Cin)         1x1-conv weights for this output-channel tile
    # b1_ref:   (tco, 1)
    # wdw_ref:  (tco, 9)           depthwise 3x3 taps, flattened
    # bdw_ref:  (tco, 1)
    # wmask_ref:(2, N)             row-wrap masks (left / right image border)
    # o_ref:    (1, tco, N)
    # ypad_ref: (tco, N + 2W + 2)  zero-padded scratch for the +-W (row) halo
    N = x_ref.shape[2]
    pad = W + 1

    # 1x1 conv for this tile of output channels: (tco, Cin) @ (Cin, N) on the MXU.
    y = jnp.dot(w1_ref[...], x_ref[0].astype(jnp.float32),
                preferred_element_type=jnp.float32) + b1_ref[...]

    # Depthwise 3x3 ('same', zero padding) on the flattened pixel axis:
    # neighbour (dh, dw) of pixel n lives at n + dh*W + dw.  The zero-padded scratch
    # provides the top/bottom halo; wmask zeroes the taps that would wrap across rows.
    ypad_ref[...] = jnp.zeros_like(ypad_ref)
    ypad_ref[:, pad:pad + N] = y
    lm = wmask_ref[0:1, :].astype(jnp.float32)   # 0.0 where w == 0
    rm = wmask_ref[1:2, :].astype(jnp.float32)   # 0.0 where w == W-1

    acc = jnp.zeros_like(y)
    for i in range(3):          # row offset (i - 1)
        for j in range(3):      # col offset (j - 1)
            tap = ypad_ref[:, i * W + j:i * W + j + N]
            if j == 0:
                tap = tap * lm
            elif j == 2:
                tap = tap * rm
            acc = acc + tap * wdw_ref[:, 3 * i + j:3 * i + j + 1]

    o_ref[0] = (acc + bdw_ref[...]).astype(o_ref.dtype)


def fused_pw_dw(x, w1, b1, wdw, bdw, W):
    # x: (B, Cin, N) -> (B, Cout, N); equivalent to Conv2d(k=1) followed by depthwise
    # Conv2d(k=3, padding=1, groups=Cout).
    B, Cin, N = x.shape
    Cout = w1.shape[0]
    tco = _pick_co_tile(Cout)
    wdw9 = wdw.reshape(Cout, 9)

    col = jnp.arange(N, dtype=jnp.int32) % W
    wmask = jnp.stack([col != 0, col != (W - 1)]).astype(x.dtype)   # (2, N)

    kernel = functools.partial(_fused_pw_dw_kernel, W)
    return pl.pallas_call(
        kernel,
        out_shape=jax.ShapeDtypeStruct((B, Cout, N), x.dtype),
        grid=(B, Cout // tco),
        in_specs=[
            pl.BlockSpec((1, Cin, N), lambda b, j: (b, 0, 0)),   # stays resident over j
            pl.BlockSpec((tco, Cin), lambda b, j: (j, 0)),
            pl.BlockSpec((tco, 1), lambda b, j: (j, 0)),
            pl.BlockSpec((tco, 9), lambda b, j: (j, 0)),
            pl.BlockSpec((tco, 1), lambda b, j: (j, 0)),
            pl.BlockSpec((2, N), lambda b, j: (0, 0)),
        ],
        out_specs=pl.BlockSpec((1, tco, N), lambda b, j: (b, j, 0)),
        scratch_shapes=[pltpu.VMEM((tco, N + 2 * W + 2), jnp.float32)],
        compiler_params=pltpu.CompilerParams(
            dimension_semantics=("parallel", "arbitrary"),
            vmem_limit_bytes=64 * 1024 * 1024),
    )(x, w1, b1, wdw9, bdw, wmask)


# ------------------- channel attention, phase 1: weights --------------------

def _attn_weights_kernel(q_ref, k_ref, temp_ref, bias_ref, eye_ref, p_ref,
                         s_acc, qss, kss):
    # q_ref/k_ref: (1, C, tn);  temp_ref: (C, 1);  bias_ref/eye_ref: (C, C)
    # p_ref: (1, C, C);  scratch: s_acc (C, C), qss/kss (C, 1)   -- all f32
    n = pl.program_id(1)

    @pl.when(n == 0)
    def _():
        s_acc[...] = jnp.zeros_like(s_acc)
        qss[...] = jnp.zeros_like(qss)
        kss[...] = jnp.zeros_like(kss)

    q = q_ref[0].astype(jnp.float32)     # (C, tn)
    k = k_ref[0].astype(jnp.float32)     # (C, tn)
    # raw Gram (q @ k^T) and squared norms accumulate over N tiles; the normalization
    # commutes: diag(1/||q||) . S . diag(1/||k||).
    s_acc[...] += lax.dot_general(q, k, (((1,), (1,)), ((), ())),
                                  preferred_element_type=jnp.float32)
    qss[...] += jnp.sum(q * q, axis=-1, keepdims=True)
    kss[...] += jnp.sum(k * k, axis=-1, keepdims=True)

    @pl.when(n == pl.num_programs(1) - 1)
    def _():
        eps = 1e-12   # matches torch.nn.functional.normalize default
        rq = lax.rsqrt(jnp.maximum(qss[...], eps * eps))   # 1 / max(||q_i||, eps)
        rk = lax.rsqrt(jnp.maximum(kss[...], eps * eps))   # 1 / max(||k_j||, eps)
        # rows: q-normalization and per-head temperature (both broadcast from (C, 1))
        s = s_acc[...] * (rq * temp_ref[...])
        # columns: k-normalization via a tiny diagonal matmul (avoids an in-kernel transpose)
        s = jnp.dot(s, eye_ref[...] * rk, preferred_element_type=jnp.float32)
        # heads only attend inside their own (ch x ch) diagonal block
        s = s + bias_ref[...]
        s = s - jnp.max(s, axis=-1, keepdims=True)
        e = jnp.exp(s)
        p_ref[0] = (e / jnp.sum(e, axis=-1, keepdims=True)).astype(p_ref.dtype)


def attn_weights(q, kv, temperature, num_heads):
    # q: (B, C, N);  kv: (B, 2C, N) with k = kv[:, :C];  -> block-diagonal softmax (B, C, C)
    B, C, N = q.shape
    ch = C // num_heads
    tn = _pick_n_tile(N)

    temp_row = jnp.repeat(temperature.reshape(num_heads).astype(jnp.float32),
                          ch).reshape(C, 1)
    head_id = jnp.arange(C, dtype=jnp.int32) // ch
    bias_cc = jnp.where(head_id[:, None] == head_id[None, :],
                        0.0, -jnp.inf).astype(jnp.float32)
    eye_cc = jnp.eye(C, dtype=jnp.float32)

    return pl.pallas_call(
        _attn_weights_kernel,
        out_shape=jax.ShapeDtypeStruct((B, C, C), jnp.float32),
        grid=(B, N // tn),
        in_specs=[
            pl.BlockSpec((1, C, tn), lambda b, n: (b, 0, n)),    # q
            pl.BlockSpec((1, C, tn), lambda b, n: (b, 0, n)),    # k = first half of kv
            pl.BlockSpec((C, 1), lambda b, n: (0, 0)),
            pl.BlockSpec((C, C), lambda b, n: (0, 0)),
            pl.BlockSpec((C, C), lambda b, n: (0, 0)),
        ],
        out_specs=pl.BlockSpec((1, C, C), lambda b, n: (b, 0, 0)),
        scratch_shapes=[pltpu.VMEM((C, C), jnp.float32),
                        pltpu.VMEM((C, 1), jnp.float32),
                        pltpu.VMEM((C, 1), jnp.float32)],
        compiler_params=pltpu.CompilerParams(
            dimension_semantics=("parallel", "arbitrary")),
    )(q, kv, temp_row, bias_cc, eye_cc)


# --------------- channel attention, phase 2: apply + project_out ------------

def _attn_apply_proj_kernel(p_ref, v_ref, wp_ref, bp_ref, o_ref):
    # p_ref: (1, C, C);  v_ref: (1, C, tn);  wp_ref: (C, C);  bp_ref: (C, 1)
    v = v_ref[0].astype(jnp.float32)
    ov = jnp.dot(p_ref[0], v, preferred_element_type=jnp.float32)        # attn @ v
    out = jnp.dot(wp_ref[...], ov, preferred_element_type=jnp.float32) + bp_ref[...]
    o_ref[0] = out.astype(o_ref.dtype)


def attn_apply_proj(p, kv, w_proj, b_proj):
    # p: (B, C, C);  kv: (B, 2C, N) with v = kv[:, C:];  -> project_out(attn @ v): (B, C, N)
    B, C, _ = p.shape
    N = kv.shape[2]
    tn = _pick_n_tile(N)

    return pl.pallas_call(
        _attn_apply_proj_kernel,
        out_shape=jax.ShapeDtypeStruct((B, C, N), kv.dtype),
        grid=(B, N // tn),
        in_specs=[
            pl.BlockSpec((1, C, C), lambda b, n: (b, 0, 0)),
            pl.BlockSpec((1, C, tn), lambda b, n: (b, 1, n)),    # v = second half of kv
            pl.BlockSpec((C, C), lambda b, n: (0, 0)),
            pl.BlockSpec((C, 1), lambda b, n: (0, 0)),
        ],
        out_specs=pl.BlockSpec((1, C, tn), lambda b, n: (b, 0, n)),
        compiler_params=pltpu.CompilerParams(
            dimension_semantics=("parallel", "parallel")),
    )(p, kv, w_proj, b_proj)


# ----------------------------- module forward ------------------------------

def attention2_forward(params, x_nchw, x2_nchw, num_heads):
    B, C, H, W = x_nchw.shape
    N = H * W

    # (B, C, H, W) -> (B, C, N): pure reshape, no transpose; N sits on the lane axis.
    x = x_nchw.reshape(B, C, N)
    x2 = x2_nchw.reshape(B, C, N)

    # q = qkv_dwconv(qkv(x));  kv = qkv2_dwconv(qkv2(x2))   (fused 1x1 + depthwise 3x3)
    q = fused_pw_dw(x, params['w_qkv'], params['b_qkv'],
                    params['w_qkv_dw'], params['b_qkv_dw'], W)           # (B, C, N)
    kv = fused_pw_dw(x2, params['w_qkv2'], params['b_qkv2'],
                     params['w_qkv2_dw'], params['b_qkv2_dw'], W)        # (B, 2C, N)

    # block-diagonal (per-head) channel-attention weights, heads batched per grid step
    p = attn_weights(q, kv, params['temperature'], num_heads)            # (B, C, C)

    # out = project_out(attn @ v), fused and streamed over N tiles
    out = attn_apply_proj(p, kv, params['w_proj'], params['b_proj'])     # (B, C, N)
    return out.reshape(B, C, H, W)


# --------------------------- pure-JAX reference -----------------------------

def ref_forward(params, x_nchw, x2_nchw, num_heads):
    B, C, H, W = x_nchw.shape

    def pw(x, w, b):    # 1x1 conv, NCHW; w: (Cout, Cin), b: (Cout, 1)
        return jnp.einsum('oc,bchw->bohw', w, x) + b.reshape(1, -1, 1, 1)

    def dw(x, w, b):    # depthwise 3x3, padding 1; w: (C, 3, 3), b: (C, 1)
        xp = jnp.pad(x, ((0, 0), (0, 0), (1, 1), (1, 1)))
        acc = jnp.zeros_like(x)
        for i in range(3):
            for j in range(3):
                acc = acc + xp[:, :, i:i + H, j:j + W] * w[:, i, j][None, :, None, None]
        return acc + b.reshape(1, -1, 1, 1)

    q = dw(pw(x_nchw, params['w_qkv'], params['b_qkv']),
           params['w_qkv_dw'], params['b_qkv_dw'])
    kv = dw(pw(x2_nchw, params['w_qkv2'], params['b_qkv2']),
            params['w_qkv2_dw'], params['b_qkv2_dw'])
    k, v = jnp.split(kv, 2, axis=1)

    ch = C // num_heads
    r = lambda t: t.reshape(B, num_heads, ch, H * W)
    norm = lambda t: t / jnp.maximum(jnp.linalg.norm(t, axis=-1, keepdims=True), 1e-12)
    qh, kh, vh = norm(r(q)), norm(r(k)), r(v)

    attn = jnp.einsum('bhcn,bhdn->bhcd', qh, kh) * params['temperature'].reshape(
        1, num_heads, 1, 1)
    attn = jax.nn.softmax(attn, axis=-1)
    out = jnp.einsum('bhcd,bhdn->bhcn', attn, vh).reshape(B, C, H, W)
    return pw(out, params['w_proj'], params['b_proj'])


# ---------------------------------- main ------------------------------------

if __name__ == "__main__":
    key = jax.random.PRNGKey(0)
    B, dim, H, W = 2, 16, 16, 16
    num_heads = 4
    keys = jax.random.split(key, 12)
    s = 0.1

    params = {
        'w_qkv':     jax.random.normal(keys[0], (dim, dim), jnp.float32) * s,      # (Cout, Cin)
        'b_qkv':     jax.random.normal(keys[1], (dim, 1), jnp.float32) * s,
        'w_qkv_dw':  jax.random.normal(keys[2], (dim, 3, 3), jnp.float32) * s,
        'b_qkv_dw':  jax.random.normal(keys[3], (dim, 1), jnp.float32) * s,
        'w_qkv2':    jax.random.normal(keys[4], (2 * dim, dim), jnp.float32) * s,
        'b_qkv2':    jax.random.normal(keys[5], (2 * dim, 1), jnp.float32) * s,
        'w_qkv2_dw': jax.random.normal(keys[6], (2 * dim, 3, 3), jnp.float32) * s,
        'b_qkv2_dw': jax.random.normal(keys[7], (2 * dim, 1), jnp.float32) * s,
        'w_proj':    jax.random.normal(keys[8], (dim, dim), jnp.float32) * s,
        'b_proj':    jax.random.normal(keys[9], (dim, 1), jnp.float32) * s,
        'temperature': jnp.ones((num_heads,), jnp.float32),   # nn.Parameter(ones(heads,1,1))
    }

    x = jax.random.normal(keys[10], (B, dim, H, W), jnp.float32)
    x2 = jax.random.normal(keys[11], (B, dim, H, W), jnp.float32)

    fwd = jax.jit(attention2_forward, static_argnums=(3,))
    out = fwd(params, x, x2, num_heads)
    out = jax.block_until_ready(out)
    assert out.shape == (B, dim, H, W)

    ref = ref_forward(params, x, x2, num_heads)
    np.testing.assert_allclose(np.asarray(out), np.asarray(ref), rtol=5e-4, atol=5e-4)

    print("KERNEL_OK")
</pallas_src>

<mosaic_0001>
module attributes {stable_mosaic.version = 11 : i64} {
  func.func @_fused_pw_dw_kernel(%arg0: i32, %arg1: i32, %arg2: memref<1x16x256xf32, #tpu.memory_space<vmem>>, %arg3: memref<8x16xf32, #tpu.memory_space<vmem>>, %arg4: memref<8x1xf32, #tpu.memory_space<vmem>>, %arg5: memref<8x9xf32, #tpu.memory_space<vmem>>, %arg6: memref<8x1xf32, #tpu.memory_space<vmem>>, %arg7: memref<2x256xf32, #tpu.memory_space<vmem>>, %arg8: memref<1x8x256xf32, #tpu.memory_space<vmem>>, %arg9: memref<8x290xf32, #tpu.memory_space<vmem>>) attributes {dimension_semantics = [#tpu.dimension_semantics<parallel>, #tpu.dimension_semantics<arbitrary>], iteration_bounds = array<i64: 2, 2>, scalar_prefetch = 0 : i64, scratch_operands = 1 : i64, tpu.core_type = #tpu.core_type<tc>, window_params = [{transform_indices = @transform_0, window_bounds = array<i64: 1, 16, 256>}, {transform_indices = @transform_1, window_bounds = array<i64: 8, 16>}, {transform_indices = @transform_2, window_bounds = array<i64: 8, 1>}, {transform_indices = @transform_3, window_bounds = array<i64: 8, 9>}, {transform_indices = @transform_4, window_bounds = array<i64: 8, 1>}, {pipeline_mode = #tpu.pipeline_mode<synchronous>, transform_indices = @transform_5, window_bounds = array<i64: 2, 256>}, {transform_indices = @transform_6, window_bounds = array<i64: 1, 8, 256>}]} {
    %c0 = arith.constant 0 : index
    %c0_0 = arith.constant 0 : index
    %0 = vector.load %arg3[%c0, %c0_0] : memref<8x16xf32, #tpu.memory_space<vmem>>, vector<8x16xf32>
    %c0_1 = arith.constant 0 : index
    %c0_2 = arith.constant 0 : index
    %c0_3 = arith.constant 0 : index
    %1 = vector.load %arg2[%c0_1, %c0_2, %c0_3] : memref<1x16x256xf32, #tpu.memory_space<vmem>>, vector<1x16x256xf32>
    %2 = vector.shape_cast %1 : vector<1x16x256xf32> to vector<16x256xf32>
    %cst = arith.constant dense<0.000000e+00> : vector<8x256xf32>
    %3 = tpu.matmul %0, %2, %cst {dimension_numbers = #tpu.dot_dimension_numbers<[1], [0], [0], [1], [0, 0, 1, 1], [], []>} : vector<8x16xf32>, vector<16x256xf32>, vector<8x256xf32> -> vector<8x256xf32>
    %c0_4 = arith.constant 0 : index
    %c0_5 = arith.constant 0 : index
    %4 = vector.load %arg4[%c0_4, %c0_5] : memref<8x1xf32, #tpu.memory_space<vmem>>, vector<8x1xf32>
    %5 = vector.broadcast %4 : vector<8x1xf32> to vector<8x256xf32>
    %6 = arith.addf %3, %5 : vector<8x256xf32>
    %cst_6 = arith.constant 0.000000e+00 : f32
    %7 = vector.broadcast %cst_6 : f32 to vector<8x290xf32>
    %c0_7 = arith.constant 0 : index
    %c0_8 = arith.constant 0 : index
    %8 = vector.load %arg9[%c0_7, %c0_8] : memref<8x290xf32, #tpu.memory_space<vmem>>, vector<8x290xf32>
    tpu.vector_store %arg9[%c0_7, %c0_8], %7 {strides = array<i32>} : memref<8x290xf32, #tpu.memory_space<vmem>>, vector<8x290xf32>,
    %c0_9 = arith.constant 0 : index
    %c17 = arith.constant 17 : index
    %9 = vector.load %arg9[%c0_9, %c17] : memref<8x290xf32, #tpu.memory_space<vmem>>, vector<8x256xf32>
    tpu.vector_store %arg9[%c0_9, %c17], %6 {strides = array<i32>} : memref<8x290xf32, #tpu.memory_space<vmem>>, vector<8x256xf32>,
    %c0_10 = arith.constant 0 : index
    %c0_11 = arith.constant 0 : index
    %10 = vector.load %arg7[%c0_10, %c0_11] : memref<2x256xf32, #tpu.memory_space<vmem>>, vector<1x256xf32>
    %c1 = arith.constant 1 : index
    %c0_12 = arith.constant 0 : index
    %11 = vector.load %arg7[%c1, %c0_12] : memref<2x256xf32, #tpu.memory_space<vmem>>, vector<1x256xf32>
    %cst_13 = arith.constant 0.000000e+00 : f32
    %12 = vector.broadcast %cst_13 : f32 to vector<8x256xf32>
    %c0_14 = arith.constant 0 : index
    %c0_15 = arith.constant 0 : index
    %13 = vector.load %arg9[%c0_14, %c0_15] : memref<8x290xf32, #tpu.memory_space<vmem>>, vector<8x256xf32>
    %14 = vector.broadcast %10 : vector<1x256xf32> to vector<8x256xf32>
    %15 = arith.mulf %13, %14 : vector<8x256xf32>
    %c0_16 = arith.constant 0 : index
    %c0_17 = arith.constant 0 : index
    %16 = vector.load %arg5[%c0_16, %c0_17] : memref<8x9xf32, #tpu.memory_space<vmem>>, vector<8x1xf32>
    %17 = vector.broadcast %16 : vector<8x1xf32> to vector<8x256xf32>
    %18 = arith.mulf %15, %17 : vector<8x256xf32>
    %19 = arith.addf %12, %18 : vector<8x256xf32>
    %c0_18 = arith.constant 0 : index
    %c1_19 = arith.constant 1 : index
    %20 = vector.load %arg9[%c0_18, %c1_19] : memref<8x290xf32, #tpu.memory_space<vmem>>, vector<8x256xf32>
    %c0_20 = arith.constant 0 : index
    %c1_21 = arith.constant 1 : index
    %21 = vector.load %arg5[%c0_20, %c1_21] : memref<8x9xf32, #tpu.memory_space<vmem>>, vector<8x1xf32>
    %22 = vector.broadcast %21 : vector<8x1xf32> to vector<8x256xf32>
    %23 = arith.mulf %20, %22 : vector<8x256xf32>
    %24 = arith.addf %19, %23 : vector<8x256xf32>
    %c0_22 = arith.constant 0 : index
    %c2 = arith.constant 2 : index
    %25 = vector.load %arg9[%c0_22, %c2] : memref<8x290xf32, #tpu.memory_space<vmem>>, vector<8x256xf32>
    %26 = vector.broadcast %11 : vector<1x256xf32> to vector<8x256xf32>
    %27 = arith.mulf %25, %26 : vector<8x256xf32>
    %c0_23 = arith.constant 0 : index
    %c2_24 = arith.constant 2 : index
    %28 = vector.load %arg5[%c0_23, %c2_24] : memref<8x9xf32, #tpu.memory_space<vmem>>, vector<8x1xf32>
    %29 = vector.broadcast %28 : vector<8x1xf32> to vector<8x256xf32>
    %30 = arith.mulf %27, %29 : vector<8x256xf32>
    %31 = arith.addf %24, %30 : vector<8x256xf32>
    %c0_25 = arith.constant 0 : index
    %c16 = arith.constant 16 : index
    %32 = vector.load %arg9[%c0_25, %c16] : memref<8x290xf32, #tpu.memory_space<vmem>>, vector<8x256xf32>
    %33 = vector.broadcast %10 : vector<1x256xf32> to vector<8x256xf32>
    %34 = arith.mulf %32, %33 : vector<8x256xf32>
    %c0_26 = arith.constant 0 : index
    %c3 = arith.constant 3 : index
    %35 = vector.load %arg5[%c0_26, %c3] : memref<8x9xf32, #tpu.memory_space<vmem>>, vector<8x1xf32>
    %36 = vector.broadcast %35 : vector<8x1xf32> to vector<8x256xf32>
    %37 = arith.mulf %34, %36 : vector<8x256xf32>
    %38 = arith.addf %31, %37 : vector<8x256xf32>
    %c0_27 = arith.constant 0 : index
    %c17_28 = arith.constant 17 : index
    %39 = vector.load %arg9[%c0_27, %c17_28] : memref<8x290xf32, #tpu.memory_space<vmem>>, vector<8x256xf32>
    %c0_29 = arith.constant 0 : index
    %c4 = arith.constant 4 : index
    %40 = vector.load %arg5[%c0_29, %c4] : memref<8x9xf32, #tpu.memory_space<vmem>>, vector<8x1xf32>
    %41 = vector.broadcast %40 : vector<8x1xf32> to vector<8x256xf32>
    %42 = arith.mulf %39, %41 : vector<8x256xf32>
    %43 = arith.addf %38, %42 : vector<8x256xf32>
    %c0_30 = arith.constant 0 : index
    %c18 = arith.constant 18 : index
    %44 = vector.load %arg9[%c0_30, %c18] : memref<8x290xf32, #tpu.memory_space<vmem>>, vector<8x256xf32>
    %45 = vector.broadcast %11 : vector<1x256xf32> to vector<8x256xf32>
    %46 = arith.mulf %44, %45 : vector<8x256xf32>
    %c0_31 = arith.constant 0 : index
    %c5 = arith.constant 5 : index
    %47 = vector.load %arg5[%c0_31, %c5] : memref<8x9xf32, #tpu.memory_space<vmem>>, vector<8x1xf32>
    %48 = vector.broadcast %47 : vector<8x1xf32> to vector<8x256xf32>
    %49 = arith.mulf %46, %48 : vector<8x256xf32>
    %50 = arith.addf %43, %49 : vector<8x256xf32>
    %c0_32 = arith.constant 0 : index
    %c32 = arith.constant 32 : index
    %51 = vector.load %arg9[%c0_32, %c32] : memref<8x290xf32, #tpu.memory_space<vmem>>, vector<8x256xf32>
    %52 = vector.broadcast %10 : vector<1x256xf32> to vector<8x256xf32>
    %53 = arith.mulf %51, %52 : vector<8x256xf32>
    %c0_33 = arith.constant 0 : index
    %c6 = arith.constant 6 : index
    %54 = vector.load %arg5[%c0_33, %c6] : memref<8x9xf32, #tpu.memory_space<vmem>>, vector<8x1xf32>
    %55 = vector.broadcast %54 : vector<8x1xf32> to vector<8x256xf32>
    %56 = arith.mulf %53, %55 : vector<8x256xf32>
    %57 = arith.addf %50, %56 : vector<8x256xf32>
    %c0_34 = arith.constant 0 : index
    %c33 = arith.constant 33 : index
    %58 = vector.load %arg9[%c0_34, %c33] : memref<8x290xf32, #tpu.memory_space<vmem>>, vector<8x256xf32>
    %c0_35 = arith.constant 0 : index
    %c7 = arith.constant 7 : index
    %59 = vector.load %arg5[%c0_35, %c7] : memref<8x9xf32, #tpu.memory_space<vmem>>, vector<8x1xf32>
    %60 = vector.broadcast %59 : vector<8x1xf32> to vector<8x256xf32>
    %61 = arith.mulf %58, %60 : vector<8x256xf32>
    %62 = arith.addf %57, %61 : vector<8x256xf32>
    %c0_36 = arith.constant 0 : index
    %c34 = arith.constant 34 : index
    %63 = vector.load %arg9[%c0_36, %c34] : memref<8x290xf32, #tpu.memory_space<vmem>>, vector<8x256xf32>
    %64 = vector.broadcast %11 : vector<1x256xf32> to vector<8x256xf32>
    %65 = arith.mulf %63, %64 : vector<8x256xf32>
    %c0_37 = arith.constant 0 : index
    %c8 = arith.constant 8 : index
    %66 = vector.load %arg5[%c0_37, %c8] : memref<8x9xf32, #tpu.memory_space<vmem>>, vector<8x1xf32>
    %67 = vector.broadcast %66 : vector<8x1xf32> to vector<8x256xf32>
    %68 = arith.mulf %65, %67 : vector<8x256xf32>
    %69 = arith.addf %62, %68 : vector<8x256xf32>
    %c0_38 = arith.constant 0 : index
    %c0_39 = arith.constant 0 : index
    %70 = vector.load %arg6[%c0_38, %c0_39] : memref<8x1xf32, #tpu.memory_space<vmem>>, vector<8x1xf32>
    %71 = vector.broadcast %70 : vector<8x1xf32> to vector<8x256xf32>
    %72 = arith.addf %69, %71 : vector<8x256xf32>
    %c0_40 = arith.constant 0 : index
    %c0_41 = arith.constant 0 : index
    %c0_42 = arith.constant 0 : index
    %73 = vector.load %arg8[%c0_40, %c0_41, %c0_42] : memref<1x8x256xf32, #tpu.memory_space<vmem>>, vector<1x8x256xf32>
    %74 = vector.shape_cast %73 : vector<1x8x256xf32> to vector<8x256xf32>
    %75 = vector.shape_cast %72 : vector<8x256xf32> to vector<1x8x256xf32>
    tpu.vector_store %arg8[%c0_40, %c0_41, %c0_42], %75 {strides = array<i32>} : memref<1x8x256xf32, #tpu.memory_space<vmem>>, vector<1x8x256xf32>,
    return
  }
  func.func @transform_0(%arg0: i32, %arg1: i32) -> (i32, i32, i32) {
    %c0_i32 = arith.constant 0 : i32
    %c0_i32_0 = arith.constant 0 : i32
    %c0_i32_1 = arith.constant 0 : i32
    return %arg0, %c0_i32, %c0_i32_0 : i32, i32, i32
  }
  func.func @transform_1(%arg0: i32, %arg1: i32) -> (i32, i32) {
    %c0_i32 = arith.constant 0 : i32
    %c0_i32_0 = arith.constant 0 : i32
    return %arg1, %c0_i32 : i32, i32
  }
  func.func @transform_2(%arg0: i32, %arg1: i32) -> (i32, i32) {
    %c0_i32 = arith.constant 0 : i32
    %c0_i32_0 = arith.constant 0 : i32
    return %arg1, %c0_i32 : i32, i32
  }
  func.func @transform_3(%arg0: i32, %arg1: i32) -> (i32, i32) {
    %c0_i32 = arith.constant 0 : i32
    %c0_i32_0 = arith.constant 0 : i32
    return %arg1, %c0_i32 : i32, i32
  }
  func.func @transform_4(%arg0: i32, %arg1: i32) -> (i32, i32) {
    %c0_i32 = arith.constant 0 : i32
    %c0_i32_0 = arith.constant 0 : i32
    return %arg1, %c0_i32 : i32, i32
  }
  func.func @transform_5(%arg0: i32, %arg1: i32) -> (i32, i32) {
    %c0_i32 = arith.constant 0 : i32
    %c0_i32_0 = arith.constant 0 : i32
    %c0_i32_1 = arith.constant 0 : i32
    return %c0_i32, %c0_i32_0 : i32, i32
  }
  func.func @transform_6(%arg0: i32, %arg1: i32) -> (i32, i32, i32) {
    %c0_i32 = arith.constant 0 : i32
    %c0_i32_0 = arith.constant 0 : i32
    return %arg0, %arg1, %c0_i32 : i32, i32, i32
  }
}

module attributes {stable_mosaic.version = 11 : i64} {
  func.func @_fused_pw_dw_kernel(%arg0: i32, %arg1: i32, %arg2: memref<1x16x256xf32, #tpu.memory_space<vmem>>, %arg3: memref<16x16xf32, #tpu.memory_space<vmem>>, %arg4: memref<16x1xf32, #tpu.memory_space<vmem>>, %arg5: memref<16x9xf32, #tpu.memory_space<vmem>>, %arg6: memref<16x1xf32, #tpu.memory_space<vmem>>, %arg7: memref<2x256xf32, #tpu.memory_space<vmem>>, %arg8: memref<1x16x256xf32, #tpu.memory_space<vmem>>, %arg9: memref<16x290xf32, #tpu.memory_space<vmem>>) attributes {dimension_semantics = [#tpu.dimension_semantics<parallel>, #tpu.dimension_semantics<arbitrary>], iteration_bounds = array<i64: 2, 2>, scalar_prefetch = 0 : i64, scratch_operands = 1 : i64, tpu.core_type = #tpu.core_type<tc>, window_params = [{transform_indices = @transform_0, window_bounds = array<i64: 1, 16, 256>}, {transform_indices = @transform_1, window_bounds = array<i64: 16, 16>}, {transform_indices = @transform_2, window_bounds = array<i64: 16, 1>}, {transform_indices = @transform_3, window_bounds = array<i64: 16, 9>}, {transform_indices = @transform_4, window_bounds = array<i64: 16, 1>}, {pipeline_mode = #tpu.pipeline_mode<synchronous>, transform_indices = @transform_5, window_bounds = array<i64: 2, 256>}, {transform_indices = @transform_6, window_bounds = array<i64: 1, 16, 256>}]} {
    %c0 = arith.constant 0 : index
    %c0_0 = arith.constant 0 : index
    %0 = vector.load %arg3[%c0, %c0_0] : memref<16x16xf32, #tpu.memory_space<vmem>>, vector<16x16xf32>
    %c0_1 = arith.constant 0 : index
    %c0_2 = arith.constant 0 : index
    %c0_3 = arith.constant 0 : index
    %1 = vector.load %arg2[%c0_1, %c0_2, %c0_3] : memref<1x16x256xf32, #tpu.memory_space<vmem>>, vector<1x16x256xf32>
    %2 = vector.shape_cast %1 : vector<1x16x256xf32> to vector<16x256xf32>
    %cst = arith.constant dense<0.000000e+00> : vector<16x256xf32>
    %3 = tpu.matmul %0, %2, %cst {dimension_numbers = #tpu.dot_dimension_numbers<[1], [0], [0], [1], [0, 0, 1, 1], [], []>} : vector<16x16xf32>, vector<16x256xf32>, vector<16x256xf32> -> vector<16x256xf32>
    %c0_4 = arith.constant 0 : index
    %c0_5 = arith.constant 0 : index
    %4 = vector.load %arg4[%c0_4, %c0_5] : memref<16x1xf32, #tpu.memory_space<vmem>>, vector<16x1xf32>
    %5 = vector.broadcast %4 : vector<16x1xf32> to vector<16x256xf32>
    %6 = arith.addf %3, %5 : vector<16x256xf32>
    %cst_6 = arith.constant 0.000000e+00 : f32
    %7 = vector.broadcast %cst_6 : f32 to vector<16x290xf32>
    %c0_7 = arith.constant 0 : index
    %c0_8 = arith.constant 0 : index
    %8 = vector.load %arg9[%c0_7, %c0_8] : memref<16x290xf32, #tpu.memory_space<vmem>>, vector<16x290xf32>
    tpu.vector_store %arg9[%c0_7, %c0_8], %7 {strides = array<i32>} : memref<16x290xf32, #tpu.memory_space<vmem>>, vector<16x290xf32>,
    %c0_9 = arith.constant 0 : index
    %c17 = arith.constant 17 : index
    %9 = vector.load %arg9[%c0_9, %c17] : memref<16x290xf32, #tpu.memory_space<vmem>>, vector<16x256xf32>
    tpu.vector_store %arg9[%c0_9, %c17], %6 {strides = array<i32>} : memref<16x290xf32, #tpu.memory_space<vmem>>, vector<16x256xf32>,
    %c0_10 = arith.constant 0 : index
    %c0_11 = arith.constant 0 : index
    %10 = vector.load %arg7[%c0_10, %c0_11] : memref<2x256xf32, #tpu.memory_space<vmem>>, vector<1x256xf32>
    %c1 = arith.constant 1 : index
    %c0_12 = arith.constant 0 : index
    %11 = vector.load %arg7[%c1, %c0_12] : memref<2x256xf32, #tpu.memory_space<vmem>>, vector<1x256xf32>
    %cst_13 = arith.constant 0.000000e+00 : f32
    %12 = vector.broadcast %cst_13 : f32 to vector<16x256xf32>
    %c0_14 = arith.constant 0 : index
    %c0_15 = arith.constant 0 : index
    %13 = vector.load %arg9[%c0_14, %c0_15] : memref<16x290xf32, #tpu.memory_space<vmem>>, vector<16x256xf32>
    %14 = vector.broadcast %10 : vector<1x256xf32> to vector<16x256xf32>
    %15 = arith.mulf %13, %14 : vector<16x256xf32>
    %c0_16 = arith.constant 0 : index
    %c0_17 = arith.constant 0 : index
    %16 = vector.load %arg5[%c0_16, %c0_17] : memref<16x9xf32, #tpu.memory_space<vmem>>, vector<16x1xf32>
    %17 = vector.broadcast %16 : vector<16x1xf32> to vector<16x256xf32>
    %18 = arith.mulf %15, %17 : vector<16x256xf32>
    %19 = arith.addf %12, %18 : vector<16x256xf32>
    %c0_18 = arith.constant 0 : index
    %c1_19 = arith.constant 1 : index
    %20 = vector.load %arg9[%c0_18, %c1_19] : memref<16x290xf32, #tpu.memory_space<vmem>>, vector<16x256xf32>
    %c0_20 = arith.constant 0 : index
    %c1_21 = arith.constant 1 : index
    %21 = vector.load %arg5[%c0_20, %c1_21] : memref<16x9xf32, #tpu.memory_space<vmem>>, vector<16x1xf32>
    %22 = vector.broadcast %21 : vector<16x1xf32> to vector<16x256xf32>
    %23 = arith.mulf %20, %22 : vector<16x256xf32>
    %24 = arith.addf %19, %23 : vector<16x256xf32>
    %c0_22 = arith.constant 0 : index
    %c2 = arith.constant 2 : index
    %25 = vector.load %arg9[%c0_22, %c2] : memref<16x290xf32, #tpu.memory_space<vmem>>, vector<16x256xf32>
    %26 = vector.broadcast %11 : vector<1x256xf32> to vector<16x256xf32>
    %27 = arith.mulf %25, %26 : vector<16x256xf32>
    %c0_23 = arith.constant 0 : index
    %c2_24 = arith.constant 2 : index
    %28 = vector.load %arg5[%c0_23, %c2_24] : memref<16x9xf32, #tpu.memory_space<vmem>>, vector<16x1xf32>
    %29 = vector.broadcast %28 : vector<16x1xf32> to vector<16x256xf32>
    %30 = arith.mulf %27, %29 : vector<16x256xf32>
    %31 = arith.addf %24, %30 : vector<16x256xf32>
    %c0_25 = arith.constant 0 : index
    %c16 = arith.constant 16 : index
    %32 = vector.load %arg9[%c0_25, %c16] : memref<16x290xf32, #tpu.memory_space<vmem>>, vector<16x256xf32>
    %33 = vector.broadcast %10 : vector<1x256xf32> to vector<16x256xf32>
    %34 = arith.mulf %32, %33 : vector<16x256xf32>
    %c0_26 = arith.constant 0 : index
    %c3 = arith.constant 3 : index
    %35 = vector.load %arg5[%c0_26, %c3] : memref<16x9xf32, #tpu.memory_space<vmem>>, vector<16x1xf32>
    %36 = vector.broadcast %35 : vector<16x1xf32> to vector<16x256xf32>
    %37 = arith.mulf %34, %36 : vector<16x256xf32>
    %38 = arith.addf %31, %37 : vector<16x256xf32>
    %c0_27 = arith.constant 0 : index
    %c17_28 = arith.constant 17 : index
    %39 = vector.load %arg9[%c0_27, %c17_28] : memref<16x290xf32, #tpu.memory_space<vmem>>, vector<16x256xf32>
    %c0_29 = arith.constant 0 : index
    %c4 = arith.constant 4 : index
    %40 = vector.load %arg5[%c0_29, %c4] : memref<16x9xf32, #tpu.memory_space<vmem>>, vector<16x1xf32>
    %41 = vector.broadcast %40 : vector<16x1xf32> to vector<16x256xf32>
    %42 = arith.mulf %39, %41 : vector<16x256xf32>
    %43 = arith.addf %38, %42 : vector<16x256xf32>
    %c0_30 = arith.constant 0 : index
    %c18 = arith.constant 18 : index
    %44 = vector.load %arg9[%c0_30, %c18] : memref<16x290xf32, #tpu.memory_space<vmem>>, vector<16x256xf32>
    %45 = vector.broadcast %11 : vector<1x256xf32> to vector<16x256xf32>
    %46 = arith.mulf %44, %45 : vector<16x256xf32>
    %c0_31 = arith.constant 0 : index
    %c5 = arith.constant 5 : index
    %47 = vector.load %arg5[%c0_31, %c5] : memref<16x9xf32, #tpu.memory_space<vmem>>, vector<16x1xf32>
    %48 = vector.broadcast %47 : vector<16x1xf32> to vector<16x256xf32>
    %49 = arith.mulf %46, %48 : vector<16x256xf32>
    %50 = arith.addf %43, %49 : vector<16x256xf32>
    %c0_32 = arith.constant 0 : index
    %c32 = arith.constant 32 : index
    %51 = vector.load %arg9[%c0_32, %c32] : memref<16x290xf32, #tpu.memory_space<vmem>>, vector<16x256xf32>
    %52 = vector.broadcast %10 : vector<1x256xf32> to vector<16x256xf32>
    %53 = arith.mulf %51, %52 : vector<16x256xf32>
    %c0_33 = arith.constant 0 : index
    %c6 = arith.constant 6 : index
    %54 = vector.load %arg5[%c0_33, %c6] : memref<16x9xf32, #tpu.memory_space<vmem>>, vector<16x1xf32>
    %55 = vector.broadcast %54 : vector<16x1xf32> to vector<16x256xf32>
    %56 = arith.mulf %53, %55 : vector<16x256xf32>
    %57 = arith.addf %50, %56 : vector<16x256xf32>
    %c0_34 = arith.constant 0 : index
    %c33 = arith.constant 33 : index
    %58 = vector.load %arg9[%c0_34, %c33] : memref<16x290xf32, #tpu.memory_space<vmem>>, vector<16x256xf32>
    %c0_35 = arith.constant 0 : index
    %c7 = arith.constant 7 : index
    %59 = vector.load %arg5[%c0_35, %c7] : memref<16x9xf32, #tpu.memory_space<vmem>>, vector<16x1xf32>
    %60 = vector.broadcast %59 : vector<16x1xf32> to vector<16x256xf32>
    %61 = arith.mulf %58, %60 : vector<16x256xf32>
    %62 = arith.addf %57, %61 : vector<16x256xf32>
    %c0_36 = arith.constant 0 : index
    %c34 = arith.constant 34 : index
    %63 = vector.load %arg9[%c0_36, %c34] : memref<16x290xf32, #tpu.memory_space<vmem>>, vector<16x256xf32>
    %64 = vector.broadcast %11 : vector<1x256xf32> to vector<16x256xf32>
    %65 = arith.mulf %63, %64 : vector<16x256xf32>
    %c0_37 = arith.constant 0 : index
    %c8 = arith.constant 8 : index
    %66 = vector.load %arg5[%c0_37, %c8] : memref<16x9xf32, #tpu.memory_space<vmem>>, vector<16x1xf32>
    %67 = vector.broadcast %66 : vector<16x1xf32> to vector<16x256xf32>
    %68 = arith.mulf %65, %67 : vector<16x256xf32>
    %69 = arith.addf %62, %68 : vector<16x256xf32>
    %c0_38 = arith.constant 0 : index
    %c0_39 = arith.constant 0 : index
    %70 = vector.load %arg6[%c0_38, %c0_39] : memref<16x1xf32, #tpu.memory_space<vmem>>, vector<16x1xf32>
    %71 = vector.broadcast %70 : vector<16x1xf32> to vector<16x256xf32>
    %72 = arith.addf %69, %71 : vector<16x256xf32>
    %c0_40 = arith.constant 0 : index
    %c0_41 = arith.constant 0 : index
    %c0_42 = arith.constant 0 : index
    %73 = vector.load %arg8[%c0_40, %c0_41, %c0_42] : memref<1x16x256xf32, #tpu.memory_space<vmem>>, vector<1x16x256xf32>
    %74 = vector.shape_cast %73 : vector<1x16x256xf32> to vector<16x256xf32>
    %75 = vector.shape_cast %72 : vector<16x256xf32> to vector<1x16x256xf32>
    tpu.vector_store %arg8[%c0_40, %c0_41, %c0_42], %75 {strides = array<i32>} : memref<1x16x256xf32, #tpu.memory_space<vmem>>, vector<1x16x256xf32>,
    return
  }
  func.func @transform_0(%arg0: i32, %arg1: i32) -> (i32, i32, i32) {
    %c0_i32 = arith.constant 0 : i32
    %c0_i32_0 = arith.constant 0 : i32
    %c0_i32_1 = arith.constant 0 : i32
    return %arg0, %c0_i32, %c0_i32_0 : i32, i32, i32
  }
  func.func @transform_1(%arg0: i32, %arg1: i32) -> (i32, i32) {
    %c0_i32 = arith.constant 0 : i32
    %c0_i32_0 = arith.constant 0 : i32
    return %arg1, %c0_i32 : i32, i32
  }
  func.func @transform_2(%arg0: i32, %arg1: i32) -> (i32, i32) {
    %c0_i32 = arith.constant 0 : i32
    %c0_i32_0 = arith.constant 0 : i32
    return %arg1, %c0_i32 : i32, i32
  }
  func.func @transform_3(%arg0: i32, %arg1: i32) -> (i32, i32) {
    %c0_i32 = arith.constant 0 : i32
    %c0_i32_0 = arith.constant 0 : i32
    return %arg1, %c0_i32 : i32, i32
  }
  func.func @transform_4(%arg0: i32, %arg1: i32) -> (i32, i32) {
    %c0_i32 = arith.constant 0 : i32
    %c0_i32_0 = arith.constant 0 : i32
    return %arg1, %c0_i32 : i32, i32
  }
  func.func @transform_5(%arg0: i32, %arg1: i32) -> (i32, i32) {
    %c0_i32 = arith.constant 0 : i32
    %c0_i32_0 = arith.constant 0 : i32
    %c0_i32_1 = arith.constant 0 : i32
    return %c0_i32, %c0_i32_0 : i32, i32
  }
  func.func @transform_6(%arg0: i32, %arg1: i32) -> (i32, i32, i32) {
    %c0_i32 = arith.constant 0 : i32
    %c0_i32_0 = arith.constant 0 : i32
    return %arg0, %arg1, %c0_i32 : i32, i32, i32
  }
}

module attributes {stable_mosaic.version = 11 : i64} {
  func.func @_attn_weights_kernel(%arg0: i32, %arg1: i32, %arg2: memref<1x16x128xf32, #tpu.memory_space<vmem>>, %arg3: memref<1x16x128xf32, #tpu.memory_space<vmem>>, %arg4: memref<16x1xf32, #tpu.memory_space<vmem>>, %arg5: memref<16x16xf32, #tpu.memory_space<vmem>>, %arg6: memref<16x16xf32, #tpu.memory_space<vmem>>, %arg7: memref<1x16x16xf32, #tpu.memory_space<vmem>>, %arg8: memref<16x16xf32, #tpu.memory_space<vmem>>, %arg9: memref<16x1xf32, #tpu.memory_space<vmem>>, %arg10: memref<16x1xf32, #tpu.memory_space<vmem>>) attributes {dimension_semantics = [#tpu.dimension_semantics<parallel>, #tpu.dimension_semantics<arbitrary>], iteration_bounds = array<i64: 2, 2>, scalar_prefetch = 0 : i64, scratch_operands = 3 : i64, tpu.core_type = #tpu.core_type<tc>, window_params = [{transform_indices = @transform_0, window_bounds = array<i64: 1, 16, 128>}, {transform_indices = @transform_1, window_bounds = array<i64: 1, 16, 128>}, {pipeline_mode = #tpu.pipeline_mode<synchronous>, transform_indices = @transform_2, window_bounds = array<i64: 16, 1>}, {pipeline_mode = #tpu.pipeline_mode<synchronous>, transform_indices = @transform_3, window_bounds = array<i64: 16, 16>}, {pipeline_mode = #tpu.pipeline_mode<synchronous>, transform_indices = @transform_4, window_bounds = array<i64: 16, 16>}, {transform_indices = @transform_5, window_bounds = array<i64: 1, 16, 16>}]} {
    %c0_i32 = arith.constant 0 : i32
    %0 = arith.cmpi eq, %arg1, %c0_i32 : i32
    %1 = arith.extui %0 : i1 to i32
    %c0_i32_0 = arith.constant 0 : i32
    %2 = arith.cmpi ne, %1, %c0_i32_0 : i32
    scf.if %2 {
      %cst_21 = arith.constant 0.000000e+00 : f32
      %26 = vector.broadcast %cst_21 : f32 to vector<16x16xf32>
      %c0_22 = arith.constant 0 : index
      %c0_23 = arith.constant 0 : index
      %27 = vector.load %arg8[%c0_22, %c0_23] : memref<16x16xf32, #tpu.memory_space<vmem>>, vector<16x16xf32>
      tpu.vector_store %arg8[%c0_22, %c0_23], %26 {strides = array<i32>} : memref<16x16xf32, #tpu.memory_space<vmem>>, vector<16x16xf32>,
      %cst_24 = arith.constant 0.000000e+00 : f32
      %28 = vector.broadcast %cst_24 : f32 to vector<16x1xf32>
      %c0_25 = arith.constant 0 : index
      %c0_26 = arith.constant 0 : index
      %29 = vector.load %arg9[%c0_25, %c0_26] : memref<16x1xf32, #tpu.memory_space<vmem>>, vector<16x1xf32>
      tpu.vector_store %arg9[%c0_25, %c0_26], %28 {strides = array<i32>} : memref<16x1xf32, #tpu.memory_space<vmem>>, vector<16x1xf32>,
      %cst_27 = arith.constant 0.000000e+00 : f32
      %30 = vector.broadcast %cst_27 : f32 to vector<16x1xf32>
      %c0_28 = arith.constant 0 : index
      %c0_29 = arith.constant 0 : index
      %31 = vector.load %arg10[%c0_28, %c0_29] : memref<16x1xf32, #tpu.memory_space<vmem>>, vector<16x1xf32>
      tpu.vector_store %arg10[%c0_28, %c0_29], %30 {strides = array<i32>} : memref<16x1xf32, #tpu.memory_space<vmem>>, vector<16x1xf32>,
    } else {
    }
    %c0 = arith.constant 0 : index
    %c0_1 = arith.constant 0 : index
    %c0_2 = arith.constant 0 : index
    %3 = vector.load %arg2[%c0, %c0_1, %c0_2] : memref<1x16x128xf32, #tpu.memory_space<vmem>>, vector<1x16x128xf32>
    %4 = vector.shape_cast %3 : vector<1x16x128xf32> to vector<16x128xf32>
    %c0_3 = arith.constant 0 : index
    %c0_4 = arith.constant 0 : index
    %c0_5 = arith.constant 0 : index
    %5 = vector.load %arg3[%c0_3, %c0_4, %c0_5] : memref<1x16x128xf32, #tpu.memory_space<vmem>>, vector<1x16x128xf32>
    %6 = vector.shape_cast %5 : vector<1x16x128xf32> to vector<16x128xf32>
    %c0_6 = arith.constant 0 : index
    %c0_7 = arith.constant 0 : index
    %7 = vector.load %arg8[%c0_6, %c0_7] : memref<16x16xf32, #tpu.memory_space<vmem>>, vector<16x16xf32>
    %cst = arith.constant dense<0.000000e+00> : vector<16x16xf32>
    %8 = tpu.matmul %4, %6, %cst {dimension_numbers = #tpu.dot_dimension_numbers<[1], [1], [0], [0], [0, 0, 1, 0], [], []>} : vector<16x128xf32>, vector<16x128xf32>, vector<16x16xf32> -> vector<16x16xf32>
    %9 = arith.addf %7, %8 : vector<16x16xf32>
    %c0_8 = arith.constant 0 : index
    %c0_9 = arith.constant 0 : index
    %10 = vector.load %arg8[%c0_8, %c0_9] : memref<16x16xf32, #tpu.memory_space<vmem>>, vector<16x16xf32>
    tpu.vector_store %arg8[%c0_8, %c0_9], %9 {strides = array<i32>} : memref<16x16xf32, #tpu.memory_space<vmem>>, vector<16x16xf32>,
    %c0_10 = arith.constant 0 : index
    %c0_11 = arith.constant 0 : index
    %11 = vector.load %arg9[%c0_10, %c0_11] : memref<16x1xf32, #tpu.memory_space<vmem>>, vector<16x1xf32>
    %12 = arith.mulf %4, %4 : vector<16x128xf32>
    %cst_12 = arith.constant dense<0.000000e+00> : vector<16xf32>
    %13 = vector.multi_reduction <add>, %12, %cst_12 [1] : vector<16x128xf32> to vector<16xf32>
    %14 = vector.shape_cast %13 : vector<16xf32> to vector<16x1xf32>
    %15 = arith.addf %11, %14 : vector<16x1xf32>
    %c0_13 = arith.constant 0 : index
    %c0_14 = arith.constant 0 : index
    %16 = vector.load %arg9[%c0_13, %c0_14] : memref<16x1xf32, #tpu.memory_space<vmem>>, vector<16x1xf32>
    tpu.vector_store %arg9[%c0_13, %c0_14], %15 {strides = array<i32>} : memref<16x1xf32, #tpu.memory_space<vmem>>, vector<16x1xf32>,
    %c0_15 = arith.constant 0 : index
    %c0_16 = arith.constant 0 : index
    %17 = vector.load %arg10[%c0_15, %c0_16] : memref<16x1xf32, #tpu.memory_space<vmem>>, vector<16x1xf32>
    %18 = arith.mulf %6, %6 : vector<16x128xf32>
    %cst_17 = arith.constant dense<0.000000e+00> : vector<16xf32>
    %19 = vector.multi_reduction <add>, %18, %cst_17 [1] : vector<16x128xf32> to vector<16xf32>
    %20 = vector.shape_cast %19 : vector<16xf32> to vector<16x1xf32>
    %21 = arith.addf %17, %20 : vector<16x1xf32>
    %c0_18 = arith.constant 0 : index
    %c0_19 = arith.constant 0 : index
    %22 = vector.load %arg10[%c0_18, %c0_19] : memref<16x1xf32, #tpu.memory_space<vmem>>, vector<16x1xf32>
    tpu.vector_store %arg10[%c0_18, %c0_19], %21 {strides = array<i32>} : memref<16x1xf32, #tpu.memory_space<vmem>>, vector<16x1xf32>,
    %c1_i32 = arith.constant 1 : i32
    %23 = arith.cmpi eq, %arg1, %c1_i32 : i32
    %24 = arith.extui %23 : i1 to i32
    %c0_i32_20 = arith.constant 0 : i32
    %25 = arith.cmpi ne, %24, %c0_i32_20 : i32
    scf.if %25 {
      %c0_21 = arith.constant 0 : index
      %c0_22 = arith.constant 0 : index
      %26 = vector.load %arg9[%c0_21, %c0_22] : memref<16x1xf32, #tpu.memory_space<vmem>>, vector<16x1xf32>
      %cst_23 = arith.constant 1.000000e-24 : f32
      %27 = vector.broadcast %cst_23 : f32 to vector<16x1xf32>
      %28 = arith.maximumf %26, %27 : vector<16x1xf32>
      %29 = math.rsqrt %28 : vector<16x1xf32>
      %c0_24 = arith.constant 0 : index
      %c0_25 = arith.constant 0 : index
      %30 = vector.load %arg10[%c0_24, %c0_25] : memref<16x1xf32, #tpu.memory_space<vmem>>, vector<16x1xf32>
      %cst_26 = arith.constant 1.000000e-24 : f32
      %31 = vector.broadcast %cst_26 : f32 to vector<16x1xf32>
      %32 = arith.maximumf %30, %31 : vector<16x1xf32>
      %33 = math.rsqrt %32 : vector<16x1xf32>
      %c0_27 = arith.constant 0 : index
      %c0_28 = arith.constant 0 : index
      %34 = vector.load %arg8[%c0_27, %c0_28] : memref<16x16xf32, #tpu.memory_space<vmem>>, vector<16x16xf32>
      %c0_29 = arith.constant 0 : index
      %c0_30 = arith.constant 0 : index
      %35 = vector.load %arg4[%c0_29, %c0_30] : memref<16x1xf32, #tpu.memory_space<vmem>>, vector<16x1xf32>
      %36 = arith.mulf %29, %35 : vector<16x1xf32>
      %37 = vector.broadcast %36 : vector<16x1xf32> to vector<16x16xf32>
      %38 = arith.mulf %34, %37 : vector<16x16xf32>
      %c0_31 = arith.constant 0 : index
      %c0_32 = arith.constant 0 : index
      %39 = vector.load %arg6[%c0_31, %c0_32] : memref<16x16xf32, #tpu.memory_space<vmem>>, vector<16x16xf32>
      %40 = vector.broadcast %33 : vector<16x1xf32> to vector<16x16xf32>
      %41 = arith.mulf %39, %40 : vector<16x16xf32>
      %cst_33 = arith.constant dense<0.000000e+00> : vector<16x16xf32>
      %42 = tpu.matmul %38, %41, %cst_33 {dimension_numbers = #tpu.dot_dimension_numbers<[1], [0], [0], [1], [0, 0, 1, 1], [], []>} : vector<16x16xf32>, vector<16x16xf32>, vector<16x16xf32> -> vector<16x16xf32>
      %c0_34 = arith.constant 0 : index
      %c0_35 = arith.constant 0 : index
      %43 = vector.load %arg5[%c0_34, %c0_35] : memref<16x16xf32, #tpu.memory_space<vmem>>, vector<16x16xf32>
      %44 = arith.addf %42, %43 : vector<16x16xf32>
      %cst_36 = arith.constant dense<0xFF800000> : vector<16xf32>
      %45 = vector.multi_reduction <maximumf>, %44, %cst_36 [1] : vector<16x16xf32> to vector<16xf32>
      %46 = vector.shape_cast %45 : vector<16xf32> to vector<16x1xf32>
      %47 = vector.broadcast %46 : vector<16x1xf32> to vector<16x16xf32>
      %48 = arith.subf %44, %47 : vector<16x16xf32>
      %49 = math.exp %48 : vector<16x16xf32>
      %cst_37 = arith.constant dense<0.000000e+00> : vector<16xf32>
      %50 = vector.multi_reduction <add>, %49, %cst_37 [1] : vector<16x16xf32> to vector<16xf32>
      %51 = vector.shape_cast %50 : vector<16xf32> to vector<16x1xf32>
      %52 = vector.broadcast %51 : vector<16x1xf32> to vector<16x16xf32>
      %53 = arith.divf %49, %52 : vector<16x16xf32>
      %c0_38 = arith.constant 0 : index
      %c0_39 = arith.constant 0 : index
      %c0_40 = arith.constant 0 : index
      %54 = vector.load %arg7[%c0_38, %c0_39, %c0_40] : memref<1x16x16xf32, #tpu.memory_space<vmem>>, vector<1x16x16xf32>
      %55 = vector.shape_cast %54 : vector<1x16x16xf32> to vector<16x16xf32>
      %56 = vector.shape_cast %53 : vector<16x16xf32> to vector<1x16x16xf32>
      tpu.vector_store %arg7[%c0_38, %c0_39, %c0_40], %56 {strides = array<i32>} : memref<1x16x16xf32, #tpu.memory_space<vmem>>, vector<1x16x16xf32>,
    } else {
    }
    return
  }
  func.func @transform_0(%arg0: i32, %arg1: i32) -> (i32, i32, i32) {
    %c0_i32 = arith.constant 0 : i32
    %c0_i32_0 = arith.constant 0 : i32
    return %arg0, %c0_i32, %arg1 : i32, i32, i32
  }
  func.func @transform_1(%arg0: i32, %arg1: i32) -> (i32, i32, i32) {
    %c0_i32 = arith.constant 0 : i32
    %c0_i32_0 = arith.constant 0 : i32
    return %arg0, %c0_i32, %arg1 : i32, i32, i32
  }
  func.func @transform_2(%arg0: i32, %arg1: i32) -> (i32, i32) {
    %c0_i32 = arith.constant 0 : i32
    %c0_i32_0 = arith.constant 0 : i32
    %c0_i32_1 = arith.constant 0 : i32
    return %c0_i32, %c0_i32_0 : i32, i32
  }
  func.func @transform_3(%arg0: i32, %arg1: i32) -> (i32, i32) {
    %c0_i32 = arith.constant 0 : i32
    %c0_i32_0 = arith.constant 0 : i32
    %c0_i32_1 = arith.constant 0 : i32
    return %c0_i32, %c0_i32_0 : i32, i32
  }
  func.func @transform_4(%arg0: i32, %arg1: i32) -> (i32, i32) {
    %c0_i32 = arith.constant 0 : i32
    %c0_i32_0 = arith.constant 0 : i32
    %c0_i32_1 = arith.constant 0 : i32
    return %c0_i32, %c0_i32_0 : i32, i32
  }
  func.func @transform_5(%arg0: i32, %arg1: i32) -> (i32, i32, i32) {
    %c0_i32 = arith.constant 0 : i32
    %c0_i32_0 = arith.constant 0 : i32
    %c0_i32_1 = arith.constant 0 : i32
    return %arg0, %c0_i32, %c0_i32_0 : i32, i32, i32
  }
}

module attributes {stable_mosaic.version = 11 : i64} {
  func.func @_attn_apply_proj_kernel(%arg0: i32, %arg1: i32, %arg2: memref<1x16x16xf32, #tpu.memory_space<vmem>>, %arg3: memref<1x16x128xf32, #tpu.memory_space<vmem>>, %arg4: memref<16x16xf32, #tpu.memory_space<vmem>>, %arg5: memref<16x1xf32, #tpu.memory_space<vmem>>, %arg6: memref<1x16x128xf32, #tpu.memory_space<vmem>>) attributes {dimension_semantics = [#tpu.dimension_semantics<parallel>, #tpu.dimension_semantics<parallel>], iteration_bounds = array<i64: 2, 2>, scalar_prefetch = 0 : i64, scratch_operands = 0 : i64, tpu.core_type = #tpu.core_type<tc>, window_params = [{transform_indices = @transform_0, window_bounds = array<i64: 1, 16, 16>}, {transform_indices = @transform_1, window_bounds = array<i64: 1, 16, 128>}, {pipeline_mode = #tpu.pipeline_mode<synchronous>, transform_indices = @transform_2, window_bounds = array<i64: 16, 16>}, {pipeline_mode = #tpu.pipeline_mode<synchronous>, transform_indices = @transform_3, window_bounds = array<i64: 16, 1>}, {transform_indices = @transform_4, window_bounds = array<i64: 1, 16, 128>}]} {
    %c0 = arith.constant 0 : index
    %c0_0 = arith.constant 0 : index
    %c0_1 = arith.constant 0 : index
    %0 = vector.load %arg3[%c0, %c0_0, %c0_1] : memref<1x16x128xf32, #tpu.memory_space<vmem>>, vector<1x16x128xf32>
    %1 = vector.shape_cast %0 : vector<1x16x128xf32> to vector<16x128xf32>
    %c0_2 = arith.constant 0 : index
    %c0_3 = arith.constant 0 : index
    %c0_4 = arith.constant 0 : index
    %2 = vector.load %arg2[%c0_2, %c0_3, %c0_4] : memref<1x16x16xf32, #tpu.memory_space<vmem>>, vector<1x16x16xf32>
    %3 = vector.shape_cast %2 : vector<1x16x16xf32> to vector<16x16xf32>
    %cst = arith.constant dense<0.000000e+00> : vector<16x128xf32>
    %4 = tpu.matmul %3, %1, %cst {dimension_numbers = #tpu.dot_dimension_numbers<[1], [0], [0], [1], [0, 0, 1, 1], [], []>} : vector<16x16xf32>, vector<16x128xf32>, vector<16x128xf32> -> vector<16x128xf32>
    %c0_5 = arith.constant 0 : index
    %c0_6 = arith.constant 0 : index
    %5 = vector.load %arg4[%c0_5, %c0_6] : memref<16x16xf32, #tpu.memory_space<vmem>>, vector<16x16xf32>
    %cst_7 = arith.constant dense<0.000000e+00> : vector<16x128xf32>
    %6 = tpu.matmul %5, %4, %cst_7 {dimension_numbers = #tpu.dot_dimension_numbers<[1], [0], [0], [1], [0, 0, 1, 1], [], []>} : vector<16x16xf32>, vector<16x128xf32>, vector<16x128xf32> -> vector<16x128xf32>
    %c0_8 = arith.constant 0 : index
    %c0_9 = arith.constant 0 : index
    %7 = vector.load %arg5[%c0_8, %c0_9] : memref<16x1xf32, #tpu.memory_space<vmem>>, vector<16x1xf32>
    %8 = vector.broadcast %7 : vector<16x1xf32> to vector<16x128xf32>
    %9 = arith.addf %6, %8 : vector<16x128xf32>
    %c0_10 = arith.constant 0 : index
    %c0_11 = arith.constant 0 : index
    %c0_12 = arith.constant 0 : index
    %10 = vector.load %arg6[%c0_10, %c0_11, %c0_12] : memref<1x16x128xf32, #tpu.memory_space<vmem>>, vector<1x16x128xf32>
    %11 = vector.shape_cast %10 : vector<1x16x128xf32> to vector<16x128xf32>
    %12 = vector.shape_cast %9 : vector<16x128xf32> to vector<1x16x128xf32>
    tpu.vector_store %arg6[%c0_10, %c0_11, %c0_12], %12 {strides = array<i32>} : memref<1x16x128xf32, #tpu.memory_space<vmem>>, vector<1x16x128xf32>,
    return
  }
  func.func @transform_0(%arg0: i32, %arg1: i32) -> (i32, i32, i32) {
    %c0_i32 = arith.constant 0 : i32
    %c0_i32_0 = arith.constant 0 : i32
    %c0_i32_1 = arith.constant 0 : i32
    return %arg0, %c0_i32, %c0_i32_0 : i32, i32, i32
  }
  func.func @transform_1(%arg0: i32, %arg1: i32) -> (i32, i32, i32) {
    %c1_i32 = arith.constant 1 : i32
    %c0_i32 = arith.constant 0 : i32
    return %arg0, %c1_i32, %arg1 : i32, i32, i32
  }
  func.func @transform_2(%arg0: i32, %arg1: i32) -> (i32, i32) {
    %c0_i32 = arith.constant 0 : i32
    %c0_i32_0 = arith.constant 0 : i32
    %c0_i32_1 = arith.constant 0 : i32
    return %c0_i32, %c0_i32_0 : i32, i32
  }
  func.func @transform_3(%arg0: i32, %arg1: i32) -> (i32, i32) {
    %c0_i32 = arith.constant 0 : i32
    %c0_i32_0 = arith.constant 0 : i32
    %c0_i32_1 = arith.constant 0 : i32
    return %c0_i32, %c0_i32_0 : i32, i32
  }
  func.func @transform_4(%arg0: i32, %arg1: i32) -> (i32, i32, i32) {
    %c0_i32 = arith.constant 0 : i32
    %c0_i32_0 = arith.constant 0 : i32
    return %arg0, %c0_i32, %arg1 : i32, i32, i32
  }
}

</mosaic_0001>

<bundles_post_ra>
// kernel: attention2_forward.5
= control target key start
LH: loop header
LB: loop body
LE: loop exit
PB: predicated region body
PF: predicated region fallthrough
CT: control target
= control target key end

     0   :  { %s2865_s0 = inlined_call_operand.hbm [shape: f32[2,16,256], index: 0, kind: input, shape index: {}]   ;;  %s2866_s1 = inlined_call_operand.hbm [shape: f32[32,16], index: 1, kind: input, shape index: {}]   ;;  %s2867_s2 = inlined_call_operand.hbm [shape: f32[32,1], index: 2, kind: input, shape index: {}]   ;;  %s2868_s3 = inlined_call_operand.hbm [shape: f32[32,9], index: 3, kind: input, shape index: {}]   ;;  %s2869_s4 = inlined_call_operand.hbm [shape: f32[32,1], index: 4, kind: input, shape index: {}]   ;;  %s2870_s5 = inlined_call_operand.hbm [shape: f32[2,256], index: 5, kind: input, shape index: {}]   ;;  %s2871_s6 = inlined_call_operand.hbm [shape: f32[2,32,256], index: 6, kind: output, shape index: {}]  }
   0x1   :  { %2905 = sst [smem:[#allocation33_spill]] %s2865_s0 }
   0x2   :  { %2906 = sst [smem:[#allocation34_spill]] %s2866_s1 }
   0x3   :  { %2907 = sst [smem:[#allocation35_spill]] %s2867_s2 }
   0x4   :  { %2908 = sst [smem:[#allocation36_spill]] %s2868_s3 }
   0x5   :  { %2909 = sst [smem:[#allocation37_spill]] %s2869_s4 }
   0x6   :  { %2910 = sst [smem:[#allocation38_spill]] %s2870_s5 }
   0x7   :  { %2911 = sst [smem:[#allocation39_spill]] %s2871_s6 }
   0x8   :  { %11 = vsyncpa [#allocation4], 0 }
   0x9   :  { %13 = vsyncpa [#allocation4 + $0x1], 0 }
   0xa   :  { %14 = vsyncpa [#allocation7], 0 }
   0xb   :  { %16 = vsyncpa [#allocation7 + $0x1], 0 }
   0xc   :  { %17 = vsyncpa [#allocation10], 0 }
   0xd   :  { %19 = vsyncpa [#allocation10 + $0x1], 0 }
   0xe   :  { %20 = vsyncpa [#allocation13], 0 }
   0xf   :  { %21 = vsyncpa [#allocation5], 0 }
  0x10   :  { %23 = vsyncpa [#allocation5 + $0x1], 0  ;;  %s1966_s21 = smov 0   ;;  %s1968_s22 = smov 0  }
  0x11   :  { %s1970_s23 = smov 0   ;;  %s1972_s24 = smov 0  }
  0x12   :  { %s1974_s25 = smov 0   ;;  %s1976_s26 = smov 0  }
  0x13   :  { %s1978_s27 = smov 0   ;;  %s1980_s28 = smov 0  }
  0x14   :  { %s1982_s29 = smov 0   ;;  %s1984_s30 = smov 0  }
  0x15   :  { %s1986_s7 = smov 0   ;;  %s1988_s8 = smov 0  }
  0x16   :  { %s1990_s9 = smov 0   ;;  %s1992_s10 = smov 0  }
  0x17 LB: > { %2912 = sst [smem:[#allocation20_spill]] %s1841_s21  ;;  %s38_s11 = sadd.s32 1, %s1885_s8  ;;  %s1893_s10 = sphi %s1992_s10, %s29_s10   ;;  %s1889_s9 = sphi %s1990_s9, %s2974_s9   ;;  %s1885_s8 = sphi %s1988_s8, %s2973_s8   ;;  %s1881_s7 = sphi %s1986_s7, %s2982_s7   ;;  %s1877_s30 = sphi %s1984_s30, %s2971_s30   ;;  %s1873_s29 = sphi %s1982_s29, %s2981_s29   ;;  %s1869_s28 = sphi %s1980_s28, %s2980_s28   ;;  %s1865_s27 = sphi %s1978_s27, %s2979_s27   ;;  %s1861_s26 = sphi %s1976_s26, %s2970_s26   ;;  %s1857_s25 = sphi %s1974_s25, %s2978_s25   ;;  %s1853_s24 = sphi %s1972_s24, %s2977_s24   ;;  %s1849_s23 = sphi %s1970_s23, %s2976_s23   ;;  %s1845_s22 = sphi %s1968_s22, %s2975_s22   ;;  %s1841_s21 = sphi %s1966_s21, %s2968_s21  }
  0x18   : > { %2913 = sst [smem:[#allocation21_spill]] %s1845_s22  ;;  %p2878_p0 = scmp.eq.s32.totalorder %s1893_s10, 0 }
  0x19   : > { %2914 = sst [smem:[#allocation22_spill]] %s1861_s26  ;;  %p2038_p1 = scmp.ge.s32.totalorder %s38_s11, 2 }
  0x1a   : > { %2915 = sst [smem:[#allocation23_spill]] %s1877_s30  ;;  %s74_s13 = sadd.s32 1, %s1861_s26 }
  0x1b   : > { %2916 = sst [smem:[#allocation24_spill]] %s1881_s7  ;;  %p81_p2 = scmp.ne.s32.totalorder %s1861_s26, %s1857_s25 }
  0x1c   : > { %2917 = sst [smem:[#allocation25_spill]] %s1885_s8  ;;  %s2984_s11 = smov (%p2038_p1, %s38_s11), 0 }
  0x1d   : > { %2918 = sst [smem:[#allocation26_spill]] %s1889_s9  ;;  %p83_p3 = por %p81_p2, %p2878_p0 }
  0x1e   : > { %s2919_s12 = scalar_select %p2038_p1, 1, 0 }
  0x1f   : > { %2920 = sst [smem:[#allocation27_spill]] %s2984_s11  ;;  %p2877_p4 = scmp.lt.s32.totalorder %s1893_s10, 4 }
  0x20   : > { %s2054_s14 = ssub.s32 %s1885_s8, %s2984_s11  ;;  %s272_s16 = sand.u32 1, %s1861_s26  }
  0x21   : > { %p72_p5 = scmp.eq.s32.totalorder %s2054_s14, 0  ;;  %s2060_s17 = sshll.u32 %s1885_s8, 8 }
  0x22   : > { %s2065_s19 = sshll.u32 %s272_s16, 4  ;;  %s2922_s1 = sld [smem:[#allocation34_spill]] }
  0x23   : > { %s2063_s18 = scalar_select %p72_p5, %s1861_s26, %s74_s13  }
  0x24   : > { %p2075_p6 = pnand %p2877_p4, %p83_p3  ;;  %s274_s13 = scalar_lea.vmem [#allocation6], %s2065_s19 }
  0x25   : > { %2921 = sst [smem:[#allocation28_spill]] %s2063_s18  ;;  %s281_s11 = sshll.u32 %s274_s13, 4  ;;  %s2080_s11 = int_to_ptr.vmem [resolvable:$true] %s281_s11 }
  0x26   : > { %s2923_s15 = scalar_select %p2075_p6, 1, 0 }
  0x27   : > { %s2924_s16 = sand.u32 1, %s1893_s10   ;;  %p2090_p8 = pneg %p2075_p6 }
  0x28   : > { %s2071_s7 = scalar_lea.hbm %s2922_s1, %s2060_s17  ;;  %s2084_s8 = scalar_lea.sflag [#allocation7], %s2924_s16 }
  0x29   : > { %s1557_s6 = scalar_lea.hbm %s2071_s7, 256  ;;  %s1562_s13 = scalar_lea.hbm %s2922_s1, 512 }
  0x2a   : > { %p1558_p7 = scmp.ne.s32.totalorder %s2071_s7, %s1557_s6  ;;  %p1563_p11 = scmp.lt.u32.totalorder %s2071_s7, %s2922_s1 }
  0x2b   : > { %s2925_s20 = scalar_select %p2090_p8, 1, 0 }
  0x2c   : > { %p1560_p9 = pnand %p2090_p8, %p1558_p7  ;;  %p1564_p12 = scmp.lt.u32.totalorder %s1562_s13, %s1557_s6 }
  0x2d   : > { %p1566_p2 = scmp.lt.u32.totalorder %s1557_s6, %s2071_s7 }
  0x2e   : > { %p1561_p10 = pneg %p1560_p9  ;;  %p1565_p13 = por %p1564_p12, %p1563_p11 }
  0x30   : > { %p1567_p3 = por %p1566_p2, %p1565_p13 }
  0x32   : > { %p1568_p5 = pnand %p1567_p3, %p1561_p10 }
  0x34   : > { %1571 = shalt.err (!%p1568_p5)
}
  0x35   : > { %s1572_s16 = scalar_lea.vmem %s2080_s11, 256  ;;  %s1895_s26 = smov [#allocation6]  }
  0x36   : > { %p1573_p7 = scmp.ne.s32.totalorder %s2080_s11, %s1572_s16  ;;  %s1577_s18 = sshll.u32 %s1895_s26, 4  ;;  %s1578_s18 = int_to_ptr.vmem [resolvable:$false] %s1577_s18 }
  0x37   : > { %s1579_s4 = scalar_lea.vmem %s1578_s18, 512  ;;  %p1580_p0 = scmp.lt.s32.totalorder %s2080_s11, %s1578_s18 }
  0x38   : > { %p1575_p9 = pnand %p1573_p7, %p2090_p8  ;;  %p1581_p1 = scmp.lt.s32.totalorder %s1579_s4, %s1572_s16 }
  0x3a   : > { %p1576_p4 = pneg %p1575_p9  ;;  %p1582_p11 = por %p1581_p1, %p1580_p0 }
  0x3c   : > { %p1583_p12 = pnand %p1582_p11, %p1576_p4 }
  0x3e   : > { %1586 = shalt.err (!%p1583_p12)
}
  0x3f   : > { %s2882_s30 = smov 128   ;;  %s2885_s6 = smov 8  }
  0x40   : > { %1378 = dma.hbm_to_vmem [thread:$0]  (!%p2075_p6), %s2071_s7, 256, %s2080_s11, %s2084_s8, %s2882_s30, %s2882_s30, %s2885_s6  }
  0x41   : > { %s2926_s3 = sld [smem:[#allocation36_spill]]  ;;  %s316_s18 = scalar_lea.vmem [#allocation9], %s2065_s19 }
  0x42   : > { %s323_s4 = sshll.u32 %s316_s18, 4  ;;  %s2927_s1 = sand.u32 1, %s1893_s10   ;;  %s2124_s4 = int_to_ptr.vmem [resolvable:$true] %s323_s4 }
  0x43   : > { %s2128_s2 = scalar_lea.sflag [#allocation10], %s2927_s1 }
  0x47   : > { %s2121_s26 = scalar_lea.hbm %s2926_s3, %s2060_s17  ;;  %s1592_s13 = scalar_lea.hbm %s2926_s3, 512 }
  0x48   : > { %s1587_s0 = scalar_lea.hbm %s2121_s26, 256  ;;  %p1593_p10 = scmp.lt.u32.totalorder %s2121_s26, %s2926_s3 }
  0x49   : > { %p1588_p0 = scmp.ne.s32.totalorder %s2121_s26, %s1587_s0  ;;  %p1594_p13 = scmp.lt.u32.totalorder %s1592_s13, %s1587_s0 }
  0x4a   : > { %p1596_p3 = scmp.lt.u32.totalorder %s1587_s0, %s2121_s26 }
  0x4b   : > { %p1590_p1 = pnand %p1588_p0, %p2090_p8  ;;  %p1595_p2 = por %p1594_p13, %p1593_p10 }
  0x4d   : > { %p1591_p4 = pneg %p1590_p1  ;;  %p1597_p5 = por %p1596_p3, %p1595_p2 }
  0x4f   : > { %p1598_p7 = pnand %p1597_p5, %p1591_p4 }
  0x51   : > { %1601 = shalt.err (!%p1598_p7)
}
  0x52   : > { %s1602_s1 = scalar_lea.vmem %s2124_s4, 256  ;;  %s1898_s18 = smov [#allocation9]  }
  0x53   : > { %p1603_p9 = scmp.ne.s32.totalorder %s2124_s4, %s1602_s1  ;;  %s1607_s7 = sshll.u32 %s1898_s18, 4  ;;  %s1608_s7 = int_to_ptr.vmem [resolvable:$false] %s1607_s7 }
  0x54   : > { %s1609_s30 = scalar_lea.vmem %s1608_s7, 512  ;;  %p1610_p0 = scmp.lt.s32.totalorder %s2124_s4, %s1608_s7 }
  0x55   : > { %p1605_p11 = pnand %p1603_p9, %p2090_p8  ;;  %p1611_p1 = scmp.lt.s32.totalorder %s1609_s30, %s1602_s1 }
  0x57   : > { %p1606_p12 = pneg %p1605_p11  ;;  %p1612_p10 = por %p1611_p1, %p1610_p0 }
  0x59   : > { %p1613_p13 = pnand %p1612_p10, %p1606_p12 }
  0x5b   : > { %1616 = shalt.err (!%p1613_p13)
}
  0x5c   : > { %s2928_s0 = smov 128   ;;  %s2156_s11 = sadd.s32 4294967295, %s1893_s10  }
  0x5d   : > { %1384 = dma.hbm_to_vmem [thread:$0]  (!%p2075_p6), %s2121_s26, 256, %s2124_s4, %s2128_s2, %s2928_s0, %s2928_s0, %s2885_s6  }
  0x5e   : > { %s1304_s13 = sadd.s32 4294967294, %s1893_s10   ;;  %p61_p4 = scmp.ne.s32.totalorder %s1869_s28, %s1865_s27 }
  0x5f   : > { %p2893_p2 = scmp.eq.s32.totalorder %s2156_s11, 0  ;;  %p87_p3 = scmp.ne.s32.totalorder %s1857_s25, %s1853_s24 }
  0x60   : > { %p211_p7 = scmp.ne.s32.totalorder %s1849_s23, %s1845_s22  ;;  %p212_p11 = scmp.eq.s32.totalorder %s2156_s11, 3 }
  0x61   : > { %p2167_p5 = por %p2893_p2, %p61_p4  ;;  %p2175_p9 = por %p87_p3, %p2893_p2 }
  0x62   : > { %p217_p12 = scmp.ne.s32.totalorder %s1845_s22, %s1841_s21  ;;  %p218_p0 = scmp.eq.s32.totalorder %s1304_s13, 3 }
  0x63   : > { %s2929_s1 = scalar_select %p2167_p5, 1, 0 }
  0x64   : > { %s2930_s26 = scalar_select %p2175_p9, 1, 0 }
  0x65   : > { %p2182_p1 = por %p212_p11, %p211_p7  ;;  %p1305_p10 = scmp.ge.s32.totalorder %s1893_s10, 1 }
  0x66   : > { %2931 = sst [smem:[#allocation29_spill]] %s2930_s26  ;;  %p2187_p13 = por %p218_p0, %p217_p12 }
  0x67   : > { %s2932_s24 = scalar_select %p2182_p1, 1, 0 }
  0x68   : > { %s2934_s27 = scalar_select %p2187_p13, 1, 0 }
  0x69   : > { %2933 = sst [smem:[#allocation30_spill]] %s2932_s24  ;;  %p225_p4 = scmp.lt.s32.totalorder %s1893_s10, 5 }
  0x6a   : > { %2935 = sst [smem:[#allocation31_spill]] %s2934_s27  ;;  %s1899_s18 = smov [#allocation12]  }
  0x6b   : > { %p2192_p5 = pnand %p1305_p10, %p225_p4  ;;  %s238_s7 = sshll.u32 %s1899_s18, 4  ;;  %s239_s7 = int_to_ptr.vmem [resolvable:$true] %s238_s7 }
  0x6c   : > { %s41_s13 = sadd.s32 1, %s1889_s9  ;;  %p2938_p11 = scmp.ne.s32.totalorder %s2919_s12, 0 }
  0x6d   : > { %s2936_s4 = scalar_select %p2192_p5, 1, 0 }
  0x6e   : > { %p1368_p3 = pneg %p2192_p5  ;;  %s2986_s13 = smov (!%p2938_p11, %s41_s13), %s1889_s9 }
  0x6f   : > { %s48_s6 = sadd.s32 1, %s1873_s29  ;;  %s2939_s5 = sld [smem:[#allocation38_spill]] }
  0x70   : > { %p2200_p7 = pnand %p1368_p3, %p2893_p2 }
  0x72   : > { %p1619_p0 = pneg %p2200_p7 }
  0x75   : > { %s1617_s27 = scalar_lea.hbm %s2939_s5, 64 }
  0x76   : > { %p1618_p12 = scmp.ne.s32.totalorder %s2939_s5, %s1617_s27  ;;  %p1624_p3 = scmp.lt.u32.totalorder %s1617_s27, %s2939_s5 }
  0x78   : > { %p1620_p10 = pnand %p1619_p0, %p1618_p12 }
  0x7a   : > { %p1621_p4 = pneg %p1620_p10 }
  0x7c   : > { %p1626_p2 = pnand %p1624_p3, %p1621_p4 }
  0x7e   : > { %1629 = shalt.err (!%p1626_p2)
}
  0x7f   : > { %s1630_s12 = scalar_lea.vmem %s239_s7, 64  ;;  %p1638_p9 = scmp.lt.s32.totalorder %s239_s7, %s239_s7 }
  0x80   : > { %p1631_p11 = scmp.ne.s32.totalorder %s239_s7, %s1630_s12  ;;  %p1639_p5 = scmp.lt.s32.totalorder %s1630_s12, %s1630_s12 }
  0x82   : > { %p1633_p13 = pnand %p1631_p11, %p1619_p0  ;;  %p1640_p6 = por %p1639_p5, %p1638_p9 }
  0x84   : > { %p1634_p1 = pneg %p1633_p13 }
  0x86   : > { %p1641_p8 = pnand %p1640_p6, %p1634_p1 }
  0x88   : > { %1644 = shalt.err (!%p1641_p8)
}
  0x89   : > { %1371 = dma.hbm_to_vmem [thread:$0]  (!%p2200_p7), %s2939_s5, 64, %s239_s7, [#allocation13]  }
  0x8a   : > { %p43_p2 = scmp.ge.s32.totalorder %s2986_s13, 2  ;;  %p55_p6 = scmp.ne.s32.totalorder %s1873_s29, %s1869_s28 }
  0x8b   : > { %s249_s22 = sand.u32 1, %s1873_s29   ;;  %s1340_s16 = sshll.u32 %s1889_s9, 9 }
  0x8c   : > { %s2988_s13 = smov (%p43_p2, %s2986_s13), 0  ;;  %p2941_p8 = scmp.eq.s32.totalorder %s1893_s10, 0 }
  0x8d   : > { %2940 = sst [smem:[#allocation32_spill]] %s2988_s13  ;;  %s45_s24 = ssub.s32 %s1889_s9, %s2988_s13 }
  0x8e   : > { %p57_p5 = por %p2941_p8, %p55_p6  ;;  %s1308_s27 = sshll.u32 %s249_s22, 5 }
  0x8f   : > { %p46_p9 = scmp.eq.s32.totalorder %s45_s24, 0  ;;  %s198_s30 = sor.u32 %s2054_s14, %s45_s24 }
  0x90   : > { %p199_p1 = scmp.eq.s32.totalorder %s198_s30, 0  ;;  %s2942_s12 = sadd.s32 1, %s1849_s23 }
  0x91   : > { %s2239_s18 = scalar_select %p46_p9, %s1873_s29, %s48_s6  }
  0x92   : > { %s2244_s7 = scalar_select %p199_p1, %s1849_s23, %s2942_s12  }
  0x93   : > { %s2943_s5 = sld [smem:[#allocation33_spill]]  ;;  %s253_s13 = scalar_lea.vmem [#allocation3], %s1308_s27 }
  0x94   : > { %s260_s9 = sshll.u32 %s253_s13, 4  ;;  %p2944_p13 = scmp.lt.s32.totalorder %s1893_s10, 4  ;;  %s2251_s9 = int_to_ptr.vmem [resolvable:$true] %s260_s9 }
  0x95   : > { %s2259_s6 = scalar_lea.sflag [#allocation4], %s249_s22 }
  0x96   : > { %p2255_p7 = pnand %p2944_p13, %p57_p5 }
  0x98   : > { %p1647_p0 = pneg %p2255_p7 }
  0x99   : > { %s2249_s26 = scalar_lea.hbm %s2943_s5, %s1340_s16  ;;  %s1650_s27 = scalar_lea.hbm %s2943_s5, 1024 }
  0x9a   : > { %s1645_s24 = scalar_lea.hbm %s2249_s26, 512  ;;  %p1651_p3 = scmp.lt.u32.totalorder %s2249_s26, %s2943_s5 }
  0x9b   : > { %p1646_p12 = scmp.ne.s32.totalorder %s2249_s26, %s1645_s24  ;;  %p1652_p11 = scmp.lt.u32.totalorder %s1650_s27, %s1645_s24 }
  0x9c   : > { %p1654_p6 = scmp.lt.u32.totalorder %s1645_s24, %s2249_s26 }
  0x9d   : > { %p1648_p10 = pnand %p1647_p0, %p1646_p12  ;;  %p1653_p2 = por %p1652_p11, %p1651_p3 }
  0x9f   : > { %p1649_p4 = pneg %p1648_p10  ;;  %p1655_p8 = por %p1654_p6, %p1653_p2 }
  0xa1   : > { %p1656_p5 = pnand %p1655_p8, %p1649_p4 }
  0xa3   : > { %1659 = shalt.err (!%p1656_p5)
}
  0xa4   : > { %s1660_s22 = scalar_lea.vmem %s2251_s9, 512  ;;  %s1900_s3 = smov [#allocation3]  }
  0xa5   : > { %p1661_p9 = scmp.ne.s32.totalorder %s2251_s9, %s1660_s22  ;;  %s1665_s21 = sshll.u32 %s1900_s3, 4  ;;  %s1666_s21 = int_to_ptr.vmem [resolvable:$false] %s1665_s21 }
  0xa6   : > { %s1667_s13 = scalar_lea.vmem %s1666_s21, 1024  ;;  %p1668_p12 = scmp.lt.s32.totalorder %s2251_s9, %s1666_s21 }
  0xa7   : > { %p1663_p1 = pnand %p1661_p9, %p1647_p0  ;;  %p1669_p10 = scmp.lt.s32.totalorder %s1667_s13, %s1660_s22 }
  0xa9   : > { %p1664_p13 = pneg %p1663_p1  ;;  %p1670_p3 = por %p1669_p10, %p1668_p12 }
  0xab   : > { %p1671_p11 = pnand %p1670_p3, %p1664_p13 }
  0xad   : > { %1674 = shalt.err (!%p1671_p11)
}
  0xae   : > { %s1901_s24 = smov 256   ;;  %s1902_s16 = smov 16  }
  0xaf   : > { %1375 = dma.hbm_to_vmem [thread:$0]  (!%p2255_p7), %s2249_s26, 512, %s2251_s9, %s2259_s6, %s1901_s24, %s1901_s24, %s1902_s16  }
  0xb0   : > { %s2946_s12 = sld [smem:[#allocation35_spill]]  ;;  %s295_s22 = scalar_lea.vmem [#allocation8], %s2065_s19 }
  0xb1   : > { %s302_s21 = sshll.u32 %s295_s22, 4  ;;  %p2947_p4 = scmp.ne.s32.totalorder %s2925_s20, 0  ;;  %s2294_s21 = int_to_ptr.vmem [resolvable:$true] %s302_s21 }
  0xb6   : > { %s2291_s3 = scalar_lea.hbm %s2946_s12, %s2060_s17  ;;  %s1680_s26 = scalar_lea.hbm %s2946_s12, 512 }
  0xb7   : > { %s1675_s13 = scalar_lea.hbm %s2291_s3, 256  ;;  %p1681_p7 = scmp.lt.u32.totalorder %s2291_s3, %s2946_s12 }
  0xb8   : > { %p1676_p0 = scmp.ne.s32.totalorder %s2291_s3, %s1675_s13  ;;  %p1682_p8 = scmp.lt.u32.totalorder %s1680_s26, %s1675_s13 }
  0xb9   : > { %p1684_p9 = scmp.lt.u32.totalorder %s1675_s13, %s2291_s3 }
  0xba   : > { %p1678_p2 = pnand %p1676_p0, %p2947_p4  ;;  %p1683_p5 = por %p1682_p8, %p1681_p7 }
  0xbc   : > { %p1679_p6 = pneg %p1678_p2  ;;  %p1685_p1 = por %p1684_p9, %p1683_p5 }
  0xbe   : > { %p1686_p13 = pnand %p1685_p1, %p1679_p6 }
  0xc0   : > { %1689 = shalt.err (!%p1686_p13)
}
  0xc1   : > { %s1690_s16 = scalar_lea.vmem %s2294_s21, 256  ;;  %s1903_s27 = smov [#allocation8]  }
  0xc2   : > { %p1691_p12 = scmp.ne.s32.totalorder %s2294_s21, %s1690_s16  ;;  %s1695_s30 = sshll.u32 %s1903_s27, 4  ;;  %s1696_s30 = int_to_ptr.vmem [resolvable:$false] %s1695_s30 }
  0xc3   : > { %s1697_s22 = scalar_lea.vmem %s1696_s30, 512  ;;  %p1698_p11 = scmp.lt.s32.totalorder %s2294_s21, %s1696_s30 }
  0xc4   : > { %p1693_p10 = pnand %p1691_p12, %p2947_p4  ;;  %p1699_p0 = scmp.lt.s32.totalorder %s1697_s22, %s1690_s16 }
  0xc6   : > { %p1694_p3 = pneg %p1693_p10  ;;  %p1700_p2 = por %p1699_p0, %p1698_p11 }
  0xc8   : > { %p1701_p7 = pnand %p1700_p2, %p1694_p3 }
  0xca   : > { %1704 = shalt.err (!%p1701_p7)
}
  0xcb   : > { %p2948_p6 = scmp.ne.s32.totalorder %s2923_s15, 0  ;;  %s2949_s13 = smov 8  }
  0xcc   : > { %s2950_s26 = sld [smem:[#allocation37_spill]]  ;;  %s337_s16 = scalar_lea.vmem [#allocation11], %s2065_s19 }
  0xcd   : > { %1381 = dma.hbm_to_vmem [thread:$0]  (!%p2948_p6), %s2291_s3, 256, %s2294_s21, %s2084_s8, %s2928_s0, %s2928_s0, %s2949_s13  }
  0xce   : > { %s344_s27 = sshll.u32 %s337_s16, 4  ;;  %s2328_s27 = int_to_ptr.vmem [resolvable:$true] %s344_s27 }
  0xd2   : > { %s2951_s6 = smov %s2950_s26  ;;  %s2325_s24 = scalar_lea.hbm %s2950_s26, %s2060_s17 }
  0xd3   : > { %s1705_s30 = scalar_lea.hbm %s2325_s24, 256  ;;  %s1710_s3 = scalar_lea.hbm %s2951_s6, 512 }
  0xd4   : > { %p1706_p8 = scmp.ne.s32.totalorder %s2325_s24, %s1705_s30  ;;  %p1711_p1 = scmp.lt.u32.totalorder %s2325_s24, %s2951_s6 }
  0xd5   : > { %p1712_p13 = scmp.lt.u32.totalorder %s1710_s3, %s1705_s30  ;;  %p1714_p10 = scmp.lt.u32.totalorder %s1705_s30, %s2325_s24 }
  0xd6   : > { %p1708_p5 = pnand %p1706_p8, %p2947_p4 }
  0xd7   : > { %p1713_p12 = por %p1712_p13, %p1711_p1 }
  0xd8   : > { %p1709_p9 = pneg %p1708_p5 }
  0xd9   : > { %p1715_p3 = por %p1714_p10, %p1713_p12 }
  0xdb   : > { %p1716_p11 = pnand %p1715_p3, %p1709_p9 }
  0xdd   : > { %1719 = shalt.err (!%p1716_p11)
}
  0xde   : > { %s1720_s19 = scalar_lea.vmem %s2328_s27, 256  ;;  %s1904_s14 = smov [#allocation11]  }
  0xdf   : > { %p1721_p0 = scmp.ne.s32.totalorder %s2328_s27, %s1720_s19  ;;  %s1725_s9 = sshll.u32 %s1904_s14, 4  ;;  %s1726_s9 = int_to_ptr.vmem [resolvable:$false] %s1725_s9 }
  0xe0   : > { %s1727_s26 = scalar_lea.vmem %s1726_s9, 512  ;;  %p1728_p8 = scmp.lt.s32.totalorder %s2328_s27, %s1726_s9 }
  0xe1   : > { %p1723_p2 = pnand %p1721_p0, %p2947_p4  ;;  %p1729_p5 = scmp.lt.s32.totalorder %s1727_s26, %s1720_s19 }
  0xe3   : > { %p1724_p7 = pneg %p1723_p2  ;;  %p1730_p1 = por %p1729_p5, %p1728_p8 }
  0xe5   : > { %p1731_p13 = pnand %p1730_p1, %p1724_p7 }
  0xe7   : > { %1734 = shalt.err (!%p1731_p13)
}
  0xe8   : > { %1387 = dma.hbm_to_vmem [thread:$0]  (!%p2948_p6), %s2325_s24, 256, %s2328_s27, %s2128_s2, %s2928_s0, %s2928_s0, %s2949_s13  }
  0xe9   : > { %p2952_p4 = scmp.ne.s32.totalorder %s2936_s4, 0 }
  0xea   : > { %s358_s20 = sand.u32 (!%p2952_p4), 1, %s1869_s28   ;;  %p2953_p9 = scmp.ne.s32.totalorder (!%p2952_p4), %s2929_s1, 0 }
  0xeb   : > { %356 = sbr.rel (%p2952_p4) target bundleno = 839 (0x347), region = 44  ;;  %s1324_s16 = sshll.u32 (!%p2952_p4), %s358_s20, 5 }
  0xec   : > { %s359_s30 = scalar_lea.sflag (!%p2952_p4), [#allocation4], %s358_s20  ;;  %s2358_s22 = scalar_lea.vmem (!%p2952_p4), [#allocation3], %s1324_s16 }
  0xf2   : > { %1820 = dma.done.wait (%p2953_p9), %s359_s30, 512  }
  0xf3   : > { %1822 = vsyncadd (%p2953_p9), %s359_s30, 4294966784  ;;  %s2954_s15 = sld [smem:[#allocation29_spill]]  ;;  %s367_s8 = sand.u32 1, %s2156_s11  }
  0xf4   : > { %s369_s2 = sand.u32 1, %s1857_s25   ;;  %s368_s4 = scalar_lea.sflag [#allocation7], %s367_s8 }
  0xf5   : > { %s2366_s0 = sshll.u32 %s369_s2, 4 }
  0xf6   : > { %s371_s13 = scalar_lea.vmem [#allocation6], %s2366_s0 }
  0xf9   : > { %p2955_p6 = scmp.ne.s32.totalorder %s2954_s15, 0 }
  0xfb   : > { %1824 = dma.done.wait (%p2955_p6), %s368_s4, 512  }
  0xfc   : > { %1826 = vsyncadd (%p2955_p6), %s368_s4, 4294966784  ;;  %s380_s1 = scalar_lea.vmem [#allocation8], %s2366_s0  ;;  %s386_s24 = scalar_lea.sflag [#allocation10], %s367_s8 }
  0xfd   : > { %s389_s27 = scalar_lea.vmem [#allocation9], %s2366_s0 }
  0xfe   : > { %1828 = dma.done.wait (%p2955_p6), %s386_s24, 512  }
  0xff   : > { %1830 = vsyncadd (%p2955_p6), %s386_s24, 4294966784  ;;  %s398_s3 = scalar_lea.vmem [#allocation11], %s2366_s0  ;;  %p2956_p12 = scmp.eq.s32.totalorder %s2156_s11, 0 }
 0x101   : > { %1832 = dma.done.wait (%p2956_p12), [#allocation13], 64   ;;  %p2957_p10 = pmov %p2956_p12 }
 0x102   : > { %v1905_v0 = vmov 0.0   ;;  %v1906_v1 = vmov 0   ;;  %v601_v2 = vlaneseq  ;;  %v459_v3 = vld [vmem:[%s2358_s22 + $0x8] sm:$0xff]  ;;  %v461_v4 = vld [vmem:[%s2358_s22 + $0x18] sm:$0xff]  ;;  %v458_v5 = vld [vmem:[%s2358_s22] sm:$0xff]  ;;  %vm474_vm0 = vcmask 130048  }
 0x103   : > { %1834 = vsyncadd (%p2957_p10), [#allocation13], 4294967232  ;;  %545 = vmatprep.mubr.f32.mxu0 %v1905_v0  ;;  %558 = vst [vmem:[#allocation2] sm:$0xff] %v1905_v0  ;;  %551 = vmatprep.mubr.f32.mxu1 %v1905_v0  ;;  %v1346_v6 = vpack.c.bf16 %v461_v4, %v459_v3  ;;  %v460_v7 = vld [vmem:[%s2358_s22 + $0x10] sm:$0xff]  ;;  %v2398_v10 = vld [vmem:[%s389_s27 + $0x8] sm:$0xff]  ;;  %v1907_v17 = vmov 1  }
 0x104   : > { %562 = vst [vmem:[#allocation2 + $0x18] sm:$0xff] %v1905_v0  ;;  %1538 = vset.pattern.permute.xlu0 %v1906_v1  ;;  %1539 = vset.pattern.permute.xlu1 %v1906_v1  ;;  %v1348_v8 = vpack.c.bf16 %v460_v7, %v458_v5  ;;  %v462_v9 = vld [vmem:[%s380_s1] sm:$0xff]  ;;  %v602_v11 = vshrl.u32 %v601_v2, 7  ;;  %v457_v13 = vld [vmem:[%s371_s13 + $0x8] sm:$0xff]  ;;  %s1908_s11 = smov 2   ;;  %v1909_v22 = vmov 2  }
 0x105   : > { %1347 = vmatprep.subr.bf16.mxu0 %v1346_v6  ;;  %1350 = vmatprep.subr.bf16.mxu1 %v1346_v6  ;;  %v456_v12 = vld [vmem:[%s371_s13] sm:$0xff]  ;;  %v463_v14 = vld [vmem:[%s380_s1 + $0x8] sm:$0xff]  ;;  %s1910_s21 = smov 16   ;;  %v1911_v26 = vmov 3   ;;  %v1912_v27 = vmov 4   ;;  %v1913_v28 = vmov 5  }
 0x106   : > { %1349 = vmatpush1.bf16.msra.mxu0 %v1348_v8  ;;  %1351 = vmatpush1.bf16.msra.mxu1 %v1348_v8  ;;  %v603_v15 = vsub.s32 0, %v602_v11  ;;  %v595_v16 = vld [vmem:[#allocation12 + $0x1] ss:$2 sm:$0x3]  ;;  %v607_v19 = vsub.s32 1, %v602_v11  ;;  %v1914_v29 = vmov 6  }
 0x107   : > { %466 = vperm.xlu0 %1538, %v462_v9   ;;  %624 = vperm.xlu1 %1539, %v2398_v10   ;;  %v615_v20 = vld [vmem:[%s389_s27] sm:$0xff]  ;;  %s1915_s17 = smov 18   ;;  %v1916_v30 = vmov 7   ;;  %v1917_v31 = vmov 8   ;;  %s1918_s19 = smov 32   ;;  %v1084_v32 = vld [vmem:[%s398_s3 + $0x8] sm:$0xff] }
 0x108   : > { %v690_v18 = vrot.slane %v595_v16, %v603_v15  ;;  %v694_v21 = vrot.slane %v595_v16, %v607_v19  ;;  %v593_v23 = vld [vmem:[#allocation12] ss:$2 sm:$0x3]  ;;  %s1919_s14 = smov 34   ;;  %vm560_vm1 = vcmask 277504   ;;  %s1920_s9 = smov 17  }
 0x109   : > { %1331 = vmatmul.mubr.msk.f32.vlgmr.msra.gmra.mrb[0].mxu0 %vm474_vm0, %v456_v12  ;;  %1332 = vmatmul.mubr.msk.f32.vlgmr.msra.gmra.mrb[0].mxu1 %vm474_vm0, %v457_v13  ;;  %v2412_v24 = vrot.slane %v593_v23, %v607_v19  ;;  %v2417_v25 = vrot.slane %v593_v23, %v603_v15  ;;  %v1083_v33 = vld [vmem:[%s398_s3] sm:$0xff]  ;;  %561 = vst.msk [vmem:[#allocation2 + $0x10] sm:$0xff] %vm560_vm1, %v1905_v0  ;;  %564 = vst.msk [vmem:[#allocation2 + $0x28] sm:$0xff] %vm560_vm1, %v1905_v0  ;;  %vm586_vm2 = vcmask 1047688   ;;  %vm577_vm3 = vcmask 138240   ;;  %s1921_s26 = smov 127  }
 0x10a   : > { %s1922_s20 = smov 111   ;;  %s1923_s16 = smov 95   ;;  %vm699_vm4 = vcmask 15360   ;;  %vm863_vm5 = vcmask 146432   ;;  %vm923_vm6 = vcmask 261120   ;;  %vm673_vm7 = vcmask 1039360  }
 0x10b   : > { %471 = vperm.xlu0 %1538, %v463_v14   ;;  %1541 = vset.pattern.permute.xlu1 %v1907_v17  ;;  %s1924_s30 = smov 112   ;;  %s1925_s22 = smov 110   ;;  %vm742_vm8 = vcmask 1031168   ;;  %vm801_vm9 = vcmask 916480   ;;  %vm846_vm10 = vcmask 908288   ;;  %vm906_vm11 = vcmask 900096  }
 0x10c   : > { %646 = vperm.xlu1 %1541, %v2398_v10   ;;  %s1926_s15 = smov 126   ;;  %s1927_s8 = smov 96   ;;  %vm966_vm12 = vcmask 785408   ;;  %vm1011_vm13 = vcmask 777216   ;;  %vm1070_vm14 = vcmask 769024  }
 0x10d   : > { %s1928_s2 = smov 94   ;;  %s2958_s0 = sld [smem:[#allocation21_spill]] }
 0x10e   : > { %s2959_s4 = sld [smem:[#allocation23_spill]]  ;;  %s2960_s13 = sld [smem:[#allocation24_spill]] }
 0x10f   : > { %1540 = vset.pattern.permute.xlu0 %v1907_v17 }
 0x110   : > { %695 = vrot.lane.b32.xlu1 %v690_v18, %s1908_s11  ;;  %642 = vperm.xlu0 %1540, %v615_v20  }
 0x111   : > { %1542 = vset.pattern.permute.xlu1 %v1909_v22 }
 0x113   : > { %s448_s1 = sand.u32 1, %s2958_s0  }
 0x114   : > { %711 = vperm.xlu1 %1542, %v615_v20   ;;  %697 = vrot.lane.b32.xlu0 %v694_v21, %s1908_s11  ;;  %s1345_s24 = sshll.u32 %s2959_s4, 2  ;;  %s1336_s27 = sshll.u32 %s2960_s13, 3 }
 0x115   : > { %1543 = vset.pattern.permute.xlu0 %v1909_v22  ;;  %s1330_s3 = sshll.u32 %s448_s1, 5  ;;  %s1117_s11 = sadd.s32 %s1345_s24, %s1336_s27 }
 0x118   : > { %757 = vrot.lane.b32.xlu1 %v2412_v24, %s1910_s21  ;;  %715 = vperm.xlu0 %1543, %v2398_v10  }
 0x119   : > { %1545 = vset.pattern.permute.xlu1 %v1911_v26 }
 0x11c   : > { %774 = vperm.xlu1 %1545, %v2398_v10   ;;  %755 = vrot.lane.b32.xlu0 %v2417_v25, %s1910_s21 }
 0x11d   : > { %1544 = vset.pattern.permute.xlu0 %v1911_v26 }
 0x120   : > { %1546 = vset.pattern.permute.xlu1 %v1912_v27  ;;  %770 = vperm.xlu0 %1544, %v615_v20  }
 0x121   : > { %815 = vperm.xlu1 %1546, %v615_v20  }
 0x124   : > { %1547 = vset.pattern.permute.xlu0 %v1912_v27 }
 0x125   : > { %1548 = vset.pattern.permute.xlu1 %v1913_v28  ;;  %819 = vperm.xlu0 %1547, %v2398_v10  }
 0x126   : > { %875 = vperm.xlu1 %1548, %v615_v20  }
 0x129   : > { %1549 = vset.pattern.permute.xlu0 %v1914_v29 }
 0x12a   : > { %879 = vperm.xlu1 %1548, %v2398_v10   ;;  %935 = vperm.xlu0 %1549, %v615_v20  }
 0x12e   : > { %1550 = vset.pattern.permute.xlu1 %v1914_v29  ;;  %861 = vrot.lane.b32.xlu0 %v694_v21, %s1915_s17 }
 0x12f   : > { %939 = vperm.xlu1 %1550, %v2398_v10   ;;  %1552 = vset.pattern.permute.xlu0 %v1916_v30 }
 0x132   : > { %984 = vperm.xlu0 %1552, %v2398_v10  }
 0x133   : > { %859 = vrot.lane.b32.xlu1 %v690_v18, %s1915_s17  ;;  %s2961_s17 = sld [smem:[#allocation30_spill]] }
 0x134   : > { %1551 = vset.pattern.permute.xlu1 %v1916_v30 }
 0x136   : > { %1553 = vset.pattern.permute.xlu0 %v1917_v31 }
 0x137   : > { %980 = vperm.xlu1 %1551, %v615_v20   ;;  %1039 = vperm.xlu0 %1553, %v615_v20  }
 0x139   : > { %p2963_p11 = scmp.ne.s32.totalorder %s2961_s17, 0 }
 0x13b   : > { %919 = vrot.lane.b32.xlu1 %v2417_v25, %s1918_s19  ;;  %1554 = vset.pattern.permute.xlu0 %v1906_v1 }
 0x13c   : > { %1555 = vset.pattern.permute.xlu1 %v1917_v31  ;;  %619 = vperm.xlu0 %1554, %v615_v20  }
 0x13f   : > { %921 = vrot.lane.b32.xlu1 %v2412_v24, %s1918_s19  ;;  %s450_s19 = scalar_lea.vmem [#allocation14], %s1330_s3 }
 0x140   : > { %1026 = vrot.lane.b32.xlu0 %v694_v21, %s1919_s14 }
 0x143   : > { %1043 = vperm.xlu1 %1555, %v2398_v10  }
 0x144   : > { %1092 = vperm.xlu0 %1554, %v1084_v32  }
 0x147   : > { %1024 = vrot.lane.b32.xlu1 %v690_v18, %s1919_s14  ;;  %s1120_s14 = sshll.u32 %s450_s19, 4  ;;  %s2778_s14 = int_to_ptr.vmem [resolvable:$true] %s1120_s14 }
 0x148   : > { %1556 = vset.pattern.permute.xlu1 %v1906_v1 }
 0x14b   : > { %1087 = vperm.xlu1 %1556, %v1083_v33  }
 0x186   : > { %v467_v34 = vpop.permute.xlu0 %466  ;;  %v2439_v44 = vpop.permute.xlu1 %624 }
 0x18a   : > { %v472_v35 = vpop.permute.xlu0 %471 }
 0x18b   : > { %v2441_v45 = vpop.permute.xlu1 %646 }
 0x18f   : > { %v2443_v46 = vpop.permute.xlu1 %695  ;;  %v2449_v49 = vpop.permute.xlu0 %642 }
 0x193   : > { %v2445_v47 = vpop.permute.xlu1 %711  ;;  %v2453_v51 = vpop.permute.xlu0 %697 }
 0x197   : > { %v2447_v48 = vpop.permute.xlu1 %757  ;;  %v2457_v53 = vpop.permute.xlu0 %715 }
 0x19b   : > { %v2451_v50 = vpop.permute.xlu1 %774  ;;  %v2461_v55 = vpop.permute.xlu0 %755 }
 0x19f   : > { %v2465_v57 = vpop.permute.xlu0 %770 }
 0x1a0   : > { %v2455_v52 = vpop.permute.xlu1 %815 }
 0x1a4   : > { %v2469_v59 = vpop.permute.xlu0 %819 }
 0x1a5   : > { %v2459_v54 = vpop.permute.xlu1 %875 }
 0x1a9   : > { %v2463_v56 = vpop.permute.xlu1 %879  ;;  %v2473_v61 = vpop.permute.xlu0 %935 }
 0x1ad   : > { %v2477_v63 = vpop.permute.xlu0 %861 }
 0x1ae   : > { %v2467_v58 = vpop.permute.xlu1 %939 }
 0x1b1   : > { %v2479_v0 = vpop.permute.xlu0 %984 }
 0x1b2   : > { %v2471_v60 = vpop.permute.xlu1 %859 }
 0x1b6   : > { %v2475_v62 = vpop.permute.xlu1 %980  ;;  %v2483_v2 = vpop.permute.xlu0 %1039 }
 0x1ba   : > { %v2481_v1 = vpop.permute.xlu1 %919 }
 0x1bb   : > { %v2489_v5 = vpop.permute.xlu0 %619 }
 0x1be   : > { %v2485_v3 = vpop.permute.xlu1 %921 }
 0x1bf   : > { %v2493_v7 = vpop.permute.xlu0 %1026 }
 0x1c2   : > { %v2487_v4 = vpop.permute.xlu1 %1043 }
 0x1c3   : > { %v2497_v9 = vpop.permute.xlu0 %1092 }
 0x1c6   : > { %v2491_v6 = vpop.permute.xlu1 %1024 }
 0x1ca   : > { %v2495_v8 = vpop.permute.xlu1 %1087 }
 0x1dc   : > { %v547_v36 = vpop.f32.mrb[0].mxu0  ;;  %v553_v37 = vpop.f32.mrb[0].mxu1 }
 0x1dd   : > { %v548_v38 = vadd.f32 %v547_v36, %v467_v34  ;;  %v554_v39 = vadd.f32 %v553_v37, %v472_v35  ;;  %v549_v40 = vpop.f32.mrb[1].mxu0  ;;  %v555_v41 = vpop.f32.mrb[1].mxu1 }
 0x1de   : > { %v550_v42 = vadd.f32 %v549_v40, %v467_v34  ;;  %v556_v43 = vadd.f32 %v555_v41, %v472_v35 }
 0x1df   : > { %573 = vrot.lane.b32.xlu0 %v554_v39, %s1920_s9  ;;  %569 = vrot.lane.b32.xlu1 %v548_v38, %s1920_s9 }
 0x1e3   : > { %571 = vrot.lane.b32.xlu1 %v550_v42, %s1920_s9 }
 0x1e7   : > { %575 = vrot.lane.b32.xlu1 %v556_v43, %s1920_s9  ;;  %s1337_s9 = sshll.u32 %s1117_s11, 7 }
 0x251   : > { %v574_v10 = vpop.permute.xlu0 %573  ;;  %v570_v11 = vpop.permute.xlu1 %569 }
 0x252   : > { %590 = vst.msk [vmem:[#allocation2 + $0x18] sm:$0xff] %vm586_vm2, %v574_v10  ;;  %587 = vst.msk [vmem:[#allocation2] sm:$0xff] %vm586_vm2, %v570_v11 }
 0x255   : > { %v572_v12 = vpop.permute.xlu1 %571 }
 0x256   : > { %v2499_v13 = vsel %vm577_vm3, %v570_v11, %v572_v12  ;;  %589 = vst.msk [vmem:[#allocation2 + $0x10] sm:$0xff] %vm577_vm3, %v572_v12 }
 0x257   : > { %v650_v33 = vmul.f32 %v2449_v49, %v2499_v13  ;;  %v823_v37 = vmul.f32 %v2455_v52, %v2499_v13 }
 0x259   : > { %v576_v14 = vpop.permute.xlu1 %575  ;;  %v2501_v15 = vld [vmem:[#allocation2 + $0x18] sm:$0xff]  ;;  %v2503_v16 = vld [vmem:[#allocation2] sm:$0xff] }
 0x25a   : > { %v2505_v17 = vsel %vm577_vm3, %v574_v10, %v576_v14  ;;  %592 = vst.msk [vmem:[#allocation2 + $0x28] sm:$0xff] %vm577_vm3, %v576_v14  ;;  %v652_v18 = vmul.f32 %v2441_v45, %v2501_v15  ;;  %v649_v19 = vmul.f32 %v2449_v49, %v2503_v16  ;;  %v825_v20 = vmul.f32 %v2469_v59, %v2501_v15 }
 0x25b   : > { %v822_v21 = vmul.f32 %v2455_v52, %v2503_v16  ;;  %v987_v23 = vmul.f32 %v2475_v62, %v2503_v16  ;;  %v990_v27 = vmul.f32 %v2479_v0, %v2501_v15  ;;  %v766_v34 = vmul.f32 %v2461_v55, %v2501_v15 }
 0x25c   : > { %667 = vrot.lane.b32.xlu0 %v652_v18, %s1921_s26  ;;  %661 = vrot.lane.b32.xlu1 %v649_v19, %s1921_s26  ;;  %v653_v38 = vmul.f32 %v2441_v45, %v2505_v17  ;;  %v871_v39 = vmul.f32 %v2471_v60, %v2501_v15  ;;  %v704_v40 = vmul.f32 %v2443_v46, %v2503_v16 }
 0x25d   : > { %v2531_v29 = vld [vmem:[#allocation2 + $0x10] sm:$0xff]  ;;  %v780_v36 = vmul.f32 %v2451_v50, %v766_v34  ;;  %v931_v43 = vmul.f32 %v2481_v1, %v2501_v15  ;;  %v763_v10 = vmul.f32 %v2461_v55, %v2503_v16  ;;  %v991_v11 = vmul.f32 %v2479_v0, %v2505_v17 }
 0x25e   : > { %v651_v30 = vmul.f32 %v2449_v49, %v2531_v29  ;;  %v989_v31 = vmul.f32 %v2475_v62, %v2531_v29  ;;  %v824_v32 = vmul.f32 %v2455_v52, %v2531_v29  ;;  %v885_v41 = vmul.f32 %v2463_v56, %v871_v39 }
 0x25f   : > { %v718_v42 = vmul.f32 %v2445_v47, %v704_v40  ;;  %v945_v49 = vmul.f32 %v2467_v58, %v931_v43  ;;  %v777_v12 = vmul.f32 %v2465_v57, %v763_v10  ;;  %v1032_v14 = vmul.f32 %v2491_v6, %v2503_v16 }
 0x260   : > { %840 = vrot.lane.b32.xlu0 %v825_v20, %s1922_s20  ;;  %834 = vrot.lane.b32.xlu1 %v822_v21, %s1922_s20  ;;  %v826_v19 = vmul.f32 %v2469_v59, %v2505_v17  ;;  %v706_v20 = vmul.f32 %v2453_v51, %v2531_v29  ;;  %v1035_v34 = vmul.f32 %v2491_v6, %v2501_v15 }
 0x261   : > { %v2519_v22 = vld [vmem:[#allocation2 + $0x28] sm:$0xff]  ;;  %v1046_v18 = vmul.f32 %v2483_v2, %v1032_v14  ;;  %v759_v43 = vsel %vm474_vm0, %v2461_v55, %v2447_v48  ;;  %v930_v10 = vmul.f32 %v2485_v3, %v2531_v29 }
 0x262   : > { %v654_v26 = vmul.f32 %v2441_v45, %v2519_v22  ;;  %v827_v28 = vmul.f32 %v2469_v59, %v2519_v22  ;;  %v992_v35 = vmul.f32 %v2479_v0, %v2519_v22  ;;  %v707_v45 = vmul.f32 %v2443_v46, %v2501_v15 }
 0x263   : > { %v868_v0 = vmul.f32 %v2471_v60, %v2503_v16  ;;  %v720_v21 = vmul.f32 %v2445_v47, %v706_v20  ;;  %v928_v59 = vmul.f32 %v2481_v1, %v2503_v16 }
 0x264   : > { %999 = vrot.lane.b32.xlu1 %v987_v23, %s1923_s16  ;;  %671 = vrot.lane.b32.xlu0 %v654_v26, %s1921_s26  ;;  %v721_v52 = vmul.f32 %v2457_v53, %v707_v45  ;;  %v768_v26 = vmul.f32 %v2447_v48, %v2519_v22  ;;  %v764_v45 = vmul.f32 %v759_v43, %v2499_v13 }
 0x265   : > { %v882_v23 = vmul.f32 %v2459_v54, %v868_v0 }
 0x268   : > { %1005 = vrot.lane.b32.xlu1 %v990_v27, %s1923_s16  ;;  %844 = vrot.lane.b32.xlu0 %v827_v28, %s1922_s20  ;;  %v782_v27 = vmul.f32 %v2451_v50, %v768_v26  ;;  %v942_v28 = vmul.f32 %v2473_v61, %v928_v59 }
 0x26c   : > { %665 = vrot.lane.b32.xlu1 %v651_v30, %s1921_s26  ;;  %1003 = vrot.lane.b32.xlu0 %v989_v31, %s1923_s16  ;;  %v873_v30 = vmul.f32 %v2477_v63, %v2519_v22 }
 0x26e   : > { %v887_v31 = vmul.f32 %v2463_v56, %v873_v30 }
 0x270   : > { %838 = vrot.lane.b32.xlu1 %v824_v32, %s1922_s20  ;;  %663 = vrot.lane.b32.xlu0 %v650_v33, %s1921_s26  ;;  %v988_v32 = vmul.f32 %v2475_v62, %v2499_v13  ;;  %v933_v33 = vmul.f32 %v2485_v3, %v2519_v22  ;;  %v709_v62 = vmul.f32 %v2453_v51, %v2519_v22 }
 0x272   : > { %v723_v40 = vmul.f32 %v2457_v53, %v709_v62 }
 0x274   : > { %1009 = vrot.lane.b32.xlu1 %v992_v35, %s1923_s16  ;;  %795 = vrot.lane.b32.xlu0 %v780_v36, %s1924_s30  ;;  %v947_v35 = vmul.f32 %v2467_v58, %v933_v33  ;;  %v1049_v36 = vmul.f32 %v2487_v4, %v1035_v34 }
 0x278   : > { %836 = vrot.lane.b32.xlu0 %v823_v37, %s1922_s20  ;;  %669 = vrot.lane.b32.xlu1 %v653_v38, %s1921_s26  ;;  %v1034_v37 = vmul.f32 %v2493_v7, %v2531_v29  ;;  %v700_v38 = vsel %vm699_vm4, %v2443_v46, %v2453_v51 }
 0x27a   : > { %v1048_v39 = vmul.f32 %v2483_v2, %v1034_v37 }
 0x27c   : > { %900 = vrot.lane.b32.xlu0 %v885_v41, %s1925_s22  ;;  %730 = vrot.lane.b32.xlu1 %v718_v42, %s1926_s15  ;;  %v708_v41 = vmul.f32 %v700_v38, %v2505_v17  ;;  %v765_v42 = vmul.f32 %v2447_v48, %v2531_v29  ;;  %v778_v48 = vmul.f32 %v2465_v57, %v764_v45 }
 0x27e   : > { %v722_v46 = vmul.f32 %v2457_v53, %v708_v41  ;;  %v779_v51 = vmul.f32 %v2465_v57, %v765_v42 }
 0x280   : > { %960 = vrot.lane.b32.xlu0 %v945_v49, %s1927_s8  ;;  %736 = vrot.lane.b32.xlu1 %v721_v52, %s1926_s15  ;;  %v870_v49 = vmul.f32 %v2477_v63, %v2531_v29  ;;  %v864_v52 = vsel %vm863_vm5, %v2471_v60, %v2477_v63  ;;  %v944_v60 = vmul.f32 %v2473_v61, %v930_v10 }
 0x281   : > { %v869_v53 = vmul.f32 %v864_v52, %v2499_v13  ;;  %v705_v63 = vmul.f32 %v700_v38, %v2499_v13  ;;  %v1028_v29 = vsel %vm560_vm1, %v2491_v6, %v2493_v7  ;;  %v872_v20 = vmul.f32 %v864_v52, %v2505_v17 }
 0x282   : > { %v884_v55 = vmul.f32 %v2459_v54, %v870_v49  ;;  %v1033_v0 = vmul.f32 %v1028_v29, %v2499_v13 }
 0x284   : > { %1007 = vrot.lane.b32.xlu0 %v991_v11, %s1923_s16  ;;  %789 = vrot.lane.b32.xlu1 %v777_v12, %s1924_s30  ;;  %v924_v11 = vsel %vm923_vm6, %v2481_v1, %v2485_v3  ;;  %v883_v12 = vmul.f32 %v2459_v54, %v869_v53  ;;  %v719_v1 = vmul.f32 %v2445_v47, %v705_v63 }
 0x285   : > { %v929_v57 = vmul.f32 %v924_v11, %v2499_v13  ;;  %v1036_v54 = vmul.f32 %v1028_v29, %v2505_v17  ;;  %v767_v3 = vmul.f32 %v759_v43, %v2505_v17  ;;  %v886_v47 = vmul.f32 %v2463_v56, %v872_v20 }
 0x287   : > { %v943_v14 = vmul.f32 %v2473_v61, %v929_v57  ;;  %v932_v61 = vmul.f32 %v924_v11, %v2505_v17 }
 0x288   : > { %1058 = vrot.lane.b32.xlu0 %v1046_v18, %s1928_s2  ;;  %842 = vrot.lane.b32.xlu1 %v826_v19, %s1922_s20  ;;  %v1050_v18 = vmul.f32 %v2487_v4, %v1036_v54  ;;  %v781_v19 = vmul.f32 %v2451_v50, %v767_v3  ;;  %v1047_v50 = vmul.f32 %v2483_v2, %v1033_v0 }
 0x289   : > { %v946_v6 = vmul.f32 %v2467_v58, %v932_v61 }
 0x28c   : > { %734 = vrot.lane.b32.xlu0 %v720_v21, %s1926_s15  ;;  %894 = vrot.lane.b32.xlu1 %v882_v23, %s1925_s22  ;;  %v1037_v21 = vmul.f32 %v2493_v7, %v2519_v22 }
 0x28e   : > { %v1051_v23 = vmul.f32 %v2487_v4, %v1037_v21  ;;  %v611_v4 = vmul.f32 %v2503_v16, %v2417_v25  ;;  %v613_v16 = vmul.f32 %v2501_v15, %v2417_v25 }
 0x290   : > { %799 = vrot.lane.b32.xlu0 %v782_v27, %s1924_s30  ;;  %954 = vrot.lane.b32.xlu1 %v942_v28, %s1927_s8 }
 0x294   : > { %904 = vrot.lane.b32.xlu0 %v887_v31, %s1925_s22  ;;  %1001 = vrot.lane.b32.xlu1 %v988_v32, %s1923_s16  ;;  %v612_v31 = vmul.f32 %v2412_v24, %v2499_v13  ;;  %v627_v32 = vmul.f32 %v2489_v5, %v611_v4  ;;  %v614_v13 = vmul.f32 %v2412_v24, %v2505_v17  ;;  %s2962_s16 = sld [smem:[#allocation39_spill]] }
 0x296   : > { %v628_v33 = vmul.f32 %v2489_v5, %v612_v31  ;;  %v629_v5 = vmul.f32 %v2439_v44, %v613_v16  ;;  %v630_v42 = vmul.f32 %v2439_v44, %v614_v13 }
 0x298   : > { %964 = vrot.lane.b32.xlu0 %v947_v35, %s1927_s8  ;;  %1064 = vrot.lane.b32.xlu1 %v1049_v36, %s1928_s2 }
 0x29c   : > { %1062 = vrot.lane.b32.xlu0 %v1048_v39, %s1928_s2  ;;  %740 = vrot.lane.b32.xlu1 %v723_v40, %s1926_s15 }
 0x2a0   : > { %738 = vrot.lane.b32.xlu0 %v722_v46, %s1926_s15  ;;  %793 = vrot.lane.b32.xlu1 %v779_v51, %s1924_s30 }
 0x2a4   : > { %791 = vrot.lane.b32.xlu0 %v778_v48, %s1924_s30  ;;  %898 = vrot.lane.b32.xlu1 %v884_v55, %s1925_s22 }
 0x2a8   : > { %896 = vrot.lane.b32.xlu0 %v883_v12, %s1925_s22  ;;  %958 = vrot.lane.b32.xlu1 %v944_v60, %s1927_s8 }
 0x2ac   : > { %956 = vrot.lane.b32.xlu0 %v943_v14, %s1927_s8  ;;  %732 = vrot.lane.b32.xlu1 %v719_v1, %s1926_s15  ;;  %s1735_s15 = scalar_lea.vmem %s2778_s14, 512 }
 0x2ad   : > { %p1736_p3 = scmp.ne.s32.totalorder %s2778_s14, %s1735_s15 }
 0x2af   : > { %p1737_p0 = pnand %p1736_p3, %p2963_p11 }
 0x2b0   : > { %1066 = vrot.lane.b32.xlu0 %v1050_v18, %s1928_s2  ;;  %797 = vrot.lane.b32.xlu1 %v781_v19, %s1924_s30  ;;  %s2784_s30 = scalar_lea.hbm %s2962_s16, %s1337_s9 }
 0x2b1   : > { %p1738_p2 = pneg %p1737_p0 }
 0x2b4   : > { %902 = vrot.lane.b32.xlu1 %v886_v47, %s1925_s22  ;;  %s2788_s22 = scalar_lea.sflag [#allocation5], %s448_s1 }
 0x2b8   : > { %962 = vrot.lane.b32.xlu1 %v946_v6, %s1927_s8  ;;  %s1929_s8 = smov [#allocation14]  }
 0x2bc   : > { %1060 = vrot.lane.b32.xlu1 %v1047_v50, %s1928_s2 }
 0x2c0   : > { %1068 = vrot.lane.b32.xlu1 %v1051_v23, %s1928_s2  ;;  %s1739_s2 = sshll.u32 %s1929_s8, 4  ;;  %s1740_s2 = int_to_ptr.vmem [resolvable:$false] %s1739_s2 }
 0x2c1   : > { %s1741_s4 = scalar_lea.vmem %s1740_s2, 1024  ;;  %p1742_p7 = scmp.lt.s32.totalorder %s2778_s14, %s1740_s2 }
 0x2c2   : > { %p1743_p8 = scmp.lt.s32.totalorder %s1741_s4, %s1735_s15 }
 0x2c4   : > { %p1744_p5 = por %p1743_p8, %p1742_p7 }
 0x2c6   : > { %p1745_p1 = pnand %p1744_p5, %p1738_p2 }
 0x2ce   : > { %v668_v56 = vpop.permute.xlu0 %667  ;;  %v662_v26 = vpop.permute.xlu1 %661 }
 0x2d2   : > { %v2687_v59 = vpop.permute.xlu0 %840  ;;  %v2689_v58 = vpop.permute.xlu1 %834 }
 0x2d6   : > { %v672_v27 = vpop.permute.xlu0 %671  ;;  %v2691_v28 = vpop.permute.xlu1 %999 }
 0x2da   : > { %v2693_v30 = vpop.permute.xlu0 %844  ;;  %v2695_v2 = vpop.permute.xlu1 %1005 }
 0x2de   : > { %v2697_v7 = vpop.permute.xlu0 %1003  ;;  %v666_v22 = vpop.permute.xlu1 %665 }
 0x2e2   : > { %v664_v34 = vpop.permute.xlu0 %663  ;;  %v839_v35 = vpop.permute.xlu1 %838 }
 0x2e3   : > { %v674_v36 = vsel %vm673_vm7, %v662_v26, %v664_v34  ;;  %v675_v37 = vsel %vm673_vm7, %v664_v34, %v666_v22 }
 0x2e4   : > { %v682_v62 = vadd.f32 %v674_v36, %v627_v32  ;;  %v683_v38 = vadd.f32 %v675_v37, %v628_v33 }
 0x2e6   : > { %v796_v39 = vpop.permute.xlu0 %795  ;;  %v2707_v40 = vpop.permute.xlu1 %1009 }
 0x2ea   : > { %v837_v41 = vpop.permute.xlu0 %836  ;;  %v670_v43 = vpop.permute.xlu1 %669 }
 0x2eb   : > { %v676_v46 = vsel %vm673_vm7, %v668_v56, %v670_v43  ;;  %v677_v51 = vsel %vm673_vm7, %v670_v43, %v672_v27  ;;  %v847_v34 = vsel %vm846_vm10, %v2689_v58, %v837_v41  ;;  %v848_v36 = vsel %vm846_vm10, %v837_v41, %v839_v35 }
 0x2ec   : > { %v684_v45 = vadd.f32 %v676_v46, %v629_v5  ;;  %v685_v49 = vadd.f32 %v677_v51, %v630_v42 }
 0x2ee   : > { %v2717_v52 = vpop.permute.xlu0 %900  ;;  %v731_v48 = vpop.permute.xlu1 %730 }
 0x2f2   : > { %v2719_v55 = vpop.permute.xlu0 %960  ;;  %v737_v25 = vpop.permute.xlu1 %736 }
 0x2f6   : > { %v2721_v15 = vpop.permute.xlu0 %1007  ;;  %v790_v24 = vpop.permute.xlu1 %789 }
 0x2fa   : > { %v2723_v17 = vpop.permute.xlu0 %1058  ;;  %v843_v53 = vpop.permute.xlu1 %842 }
 0x2fb   : > { %v849_v43 = vsel %vm846_vm10, %v2687_v59, %v843_v53  ;;  %v850_v46 = vsel %vm846_vm10, %v843_v53, %v2693_v30 }
 0x2fe   : > { %v735_v44 = vpop.permute.xlu0 %734  ;;  %v895_v10 = vpop.permute.xlu1 %894 }
 0x302   : > { %v800_v11 = vpop.permute.xlu0 %799  ;;  %v955_v12 = vpop.permute.xlu1 %954 }
 0x306   : > { %v905_v60 = vpop.permute.xlu0 %904  ;;  %v1002_v57 = vpop.permute.xlu1 %1001 }
 0x30a   : > { %v2725_v63 = vpop.permute.xlu0 %964  ;;  %v2727_v29 = vpop.permute.xlu1 %1064 }
 0x30e   : > { %v2729_v14 = vpop.permute.xlu0 %1062  ;;  %v741_v1 = vpop.permute.xlu1 %740 }
 0x312   : > { %v739_v54 = vpop.permute.xlu0 %738  ;;  %v794_v3 = vpop.permute.xlu1 %793 }
 0x313   : > { %v745_v6 = vsel %vm742_vm8, %v737_v25, %v739_v54  ;;  %v746_v0 = vsel %vm742_vm8, %v739_v54, %v741_v1 }
 0x314   : > { %v753_v22 = vadd.f32 %v745_v6, %v684_v45  ;;  %v754_v4 = vadd.f32 %v746_v0, %v685_v49 }
 0x316   : > { %v899_v18 = vpop.permute.xlu1 %898  ;;  %v792_v19 = vpop.permute.xlu0 %791 }
 0x317   : > { %v802_v26 = vsel %vm801_vm9, %v790_v24, %v792_v19  ;;  %v803_v27 = vsel %vm801_vm9, %v792_v19, %v794_v3 }
 0x31a   : > { %v959_v20 = vpop.permute.xlu1 %958  ;;  %v897_v47 = vpop.permute.xlu0 %896 }
 0x31b   : > { %v907_v51 = vsel %vm906_vm11, %v895_v10, %v897_v47  ;;  %v908_v58 = vsel %vm906_vm11, %v897_v47, %v899_v18  ;;  %v1013_v10 = vsel %vm1011_vm13, %v1002_v57, %v2697_v7  ;;  %v1014_v7 = vsel %vm1011_vm13, %v2695_v2, %v2721_v15 }
 0x31e   : > { %v733_v61 = vpop.permute.xlu1 %732 }
 0x31f   : > { %v743_v50 = vsel %vm742_vm8, %v731_v48, %v733_v61  ;;  %v744_v21 = vsel %vm742_vm8, %v733_v61, %v735_v44  ;;  %v1012_v44 = vsel %vm1011_vm13, %v2691_v28, %v1002_v57  ;;  %v1015_v57 = vsel %vm1011_vm13, %v2721_v15, %v2707_v40 }
 0x320   : > { %v751_v23 = vadd.f32 %v743_v50, %v682_v62  ;;  %v752_v56 = vadd.f32 %v744_v21, %v683_v38  ;;  %v957_v38 = vpop.permute.xlu0 %956 }
 0x321   : > { %v967_v48 = vsel %vm966_vm12, %v955_v12, %v957_v38  ;;  %v968_v25 = vsel %vm966_vm12, %v957_v38, %v959_v20 }
 0x322   : > { %v810_v31 = vadd.f32 %v802_v26, %v751_v23  ;;  %v811_v32 = vadd.f32 %v803_v27, %v752_v56  ;;  %v798_v33 = vpop.permute.xlu1 %797 }
 0x323   : > { %v804_v37 = vsel %vm801_vm9, %v796_v39, %v798_v33  ;;  %v805_v62 = vsel %vm801_vm9, %v798_v33, %v800_v11 }
 0x324   : > { %v855_v16 = vadd.f32 %v847_v34, %v810_v31  ;;  %v856_v13 = vadd.f32 %v848_v36, %v811_v32  ;;  %v812_v5 = vadd.f32 %v804_v37, %v753_v22  ;;  %v813_v42 = vadd.f32 %v805_v62, %v754_v4  ;;  %v1067_v28 = vpop.permute.xlu0 %1066 }
 0x326   : > { %v857_v35 = vadd.f32 %v849_v43, %v812_v5  ;;  %v858_v41 = vadd.f32 %v850_v46, %v813_v42  ;;  %v903_v39 = vpop.permute.xlu1 %902  ;;  %v915_v45 = vadd.f32 %v907_v51, %v855_v16  ;;  %v916_v49 = vadd.f32 %v908_v58, %v856_v13 }
 0x327   : > { %v909_v59 = vsel %vm906_vm11, %v2717_v52, %v903_v39  ;;  %v910_v24 = vsel %vm906_vm11, %v903_v39, %v905_v60 }
 0x328   : > { %v975_v30 = vadd.f32 %v967_v48, %v915_v45  ;;  %v976_v53 = vadd.f32 %v968_v25, %v916_v49  ;;  %v917_v11 = vadd.f32 %v909_v59, %v857_v35  ;;  %v918_v12 = vadd.f32 %v910_v24, %v858_v41 }
 0x32a   : > { %v963_v1 = vpop.permute.xlu1 %962  ;;  %v1020_v54 = vadd.f32 %v1012_v44, %v975_v30  ;;  %v1021_v3 = vadd.f32 %v1013_v10, %v976_v53 }
 0x32b   : > { %v969_v52 = vsel %vm966_vm12, %v2719_v55, %v963_v1  ;;  %v970_v60 = vsel %vm966_vm12, %v963_v1, %v2725_v63  ;;  %v1073_v63 = vsel %vm1070_vm14, %v2727_v29, %v1067_v28 }
 0x32c   : > { %v977_v18 = vadd.f32 %v969_v52, %v917_v11  ;;  %v978_v19 = vadd.f32 %v970_v60, %v918_v12 }
 0x32e   : > { %v1022_v55 = vadd.f32 %v1014_v7, %v977_v18  ;;  %v1061_v20 = vpop.permute.xlu1 %1060  ;;  %v1023_v47 = vadd.f32 %v1015_v57, %v978_v19 }
 0x32f   : > { %v1071_v61 = vsel %vm1070_vm14, %v2723_v17, %v1061_v20  ;;  %v1072_v2 = vsel %vm1070_vm14, %v1061_v20, %v2729_v14 }
 0x330   : > { %v1081_v6 = vadd.f32 %v1073_v63, %v1022_v55  ;;  %v1079_v0 = vadd.f32 %v1071_v61, %v1020_v54  ;;  %v1080_v50 = vadd.f32 %v1072_v2, %v1021_v3 }
 0x332   : > { %v1097_v40 = vadd.f32 %v2497_v9, %v1081_v6  ;;  %v1095_v15 = vadd.f32 %v2495_v8, %v1079_v0  ;;  %v1096_v21 = vadd.f32 %v2495_v8, %v1080_v50  ;;  %v1069_v23 = vpop.permute.xlu1 %1068 }
 0x333   : > { %v1074_v17 = vsel %vm1070_vm14, %v1067_v28, %v1069_v23 }
 0x334   : > { %1101 = vst [vmem:[%s450_s19 + $0x10] sm:$0xff] %v1097_v40  ;;  %1099 = vst [vmem:[%s450_s19] sm:$0xff] %v1095_v15  ;;  %v1082_v29 = vadd.f32 %v1074_v17, %v1023_v47 }
 0x335   : > { %1100 = vst [vmem:[%s450_s19 + $0x8] sm:$0xff] %v1096_v21 }
 0x336   : > { %v1098_v14 = vadd.f32 %v2497_v9, %v1082_v29 }
 0x338   : > { %1102 = vst [vmem:[%s450_s19 + $0x18] sm:$0xff] %v1098_v14 }
 0x339   : > { %1748 = shalt.err (!%p1745_p1)
}
 0x33a   : > { %s1749_s0 = scalar_lea.hbm %s2784_s30, 512  ;;  %s1753_s24 = scalar_lea.hbm %s2962_s16, 2048 }
 0x33b   : > { %p1750_p13 = scmp.ne.s32.totalorder %s2784_s30, %s1749_s0  ;;  %p1754_p6 = scmp.lt.u32.totalorder %s2784_s30, %s2962_s16 }
 0x33c   : > { %p1755_p12 = scmp.lt.u32.totalorder %s1753_s24, %s1749_s0  ;;  %p1757_p3 = scmp.lt.u32.totalorder %s1749_s0, %s2784_s30 }
 0x33d   : > { %p1751_p4 = pnand %p1750_p13, %p2963_p11 }
 0x33e   : > { %p1756_p10 = por %p1755_p12, %p1754_p6 }
 0x33f   : > { %p1752_p9 = pneg %p1751_p4 }
 0x340   : > { %p1758_p0 = por %p1757_p3, %p1756_p10 }
 0x342   : > { %p1759_p2 = pnand %p1758_p0, %p1752_p9 }
 0x344   : > { %1762 = shalt.err (!%p1759_p2)
}
 0x345   : > { %s1930_s11 = smov 256  }
 0x346   : > { %1366 = dma.vmem_to_hbm [thread:$0]  (%p2963_p11), %s2778_s14, 512, %s2784_s30, %s2788_s22, %s1930_s11, %s1930_s11, %s1910_s21  }
 0x347 PF: > { %s2964_s19 = sld [smem:[#allocation20_spill]]  ;;  %s2965_s9 = sld [smem:[#allocation31_spill]] }
 0x348   : > { %p1395_p7 = scmp.ge.s32.totalorder %s1893_s10, 2 }
 0x34d   : > { %s1135_s26 = sand.u32 1, %s2964_s19   ;;  %p2966_p8 = scmp.ne.s32.totalorder %s2965_s9, 0 }
 0x34e   : > { %s1136_s20 = scalar_lea.sflag [#allocation5], %s1135_s26 }
 0x34f   : > { %p1389_p5 = pnand %p1395_p7, %p2966_p8 }
 0x351   : > { %1836 = dma.done.wait (!%p1389_p5), %s1136_s20, 512  }
 0x352   : > { %1838 = vsyncadd (!%p1389_p5), %s1136_s20, 4294966784  ;;  %s29_s10 = sadd.s32 1, %s1893_s10   ;;  %s2968_s21 = sld [smem:[#allocation21_spill]] }
 0x353   : > { %p2818_p1 = scmp.ge.s32.totalorder %s29_s10, 6   ;;  %s2969_s14 = sld [smem:[#allocation22_spill]] }
 0x354   : > { %s2970_s26 = sld [smem:[#allocation28_spill]]  ;;  %s2971_s30 = sld [smem:[#allocation25_spill]] }
 0x355   : > { %s2972_s15 = sld [smem:[#allocation26_spill]]  ;;  %s2973_s8 = sld [smem:[#allocation27_spill]] }
 0x356   : > { %s2974_s9 = sld [smem:[#allocation32_spill]]  ;;  %s2975_s22 = smov %s1849_s23 }
 0x357   : > { %s2976_s23 = smov %s2244_s7  ;;  %s2977_s24 = smov %s1857_s25 }
 0x358   : > { %s2979_s27 = smov %s1869_s28  ;;  %s2980_s28 = smov %s1873_s29 }
 0x359   : > { %s2978_s25 = smov %s2969_s14  ;;  %s2981_s29 = smov %s2239_s18 }
 0x35a   :  { %28 = sbr.rel (!%p2818_p1) target bundleno = 23 (0x17), region = 142 }
 0x35b   : > { %s2982_s7 = smov %s2972_s15 }
 0x361   :  { %1141 = vsyncpa [#allocation4], 1 }
 0x362   :  { %1143 = vsyncpa [#allocation4 + $0x1], 1 }
 0x363   :  { %1144 = vsyncpa [#allocation7], 1 }
 0x364   :  { %1146 = vsyncpa [#allocation7 + $0x1], 1 }
 0x365   :  { %1147 = vsyncpa [#allocation10], 1 }
 0x366   :  { %1149 = vsyncpa [#allocation10 + $0x1], 1 }
 0x367   :  { %1150 = vsyncpa [#allocation13], 1 }
 0x368   :  { %1151 = vsyncpa [#allocation5], 1 }
 0x369   :  { %1153 = vsyncpa [#allocation5 + $0x1], 1 }

// kernel: attention2_forward.4
= control target key start
LH: loop header
LB: loop body
LE: loop exit
PB: predicated region body
PF: predicated region fallthrough
CT: control target
= control target key end

     0   :  { %s2252_s0 = inlined_call_operand.hbm [shape: f32[2,16,256], index: 0, kind: input, shape index: {}]   ;;  %s2253_s1 = inlined_call_operand.hbm [shape: f32[16,16], index: 1, kind: input, shape index: {}]   ;;  %s2254_s2 = inlined_call_operand.hbm [shape: f32[16,1], index: 2, kind: input, shape index: {}]   ;;  %s2255_s3 = inlined_call_operand.hbm [shape: f32[16,9], index: 3, kind: input, shape index: {}]   ;;  %s2256_s4 = inlined_call_operand.hbm [shape: f32[16,1], index: 4, kind: input, shape index: {}]   ;;  %s2257_s5 = inlined_call_operand.hbm [shape: f32[2,256], index: 5, kind: input, shape index: {}]   ;;  %s2258_s6 = inlined_call_operand.hbm [shape: f32[2,16,256], index: 6, kind: output, shape index: {}]  }
   0x1   :  { %2284 = sst [smem:[#allocation32_spill]] %s2252_s0 }
   0x2   :  { %2285 = sst [smem:[#allocation33_spill]] %s2253_s1 }
   0x3   :  { %2286 = sst [smem:[#allocation34_spill]] %s2254_s2 }
   0x4   :  { %2287 = sst [smem:[#allocation35_spill]] %s2255_s3 }
   0x5   :  { %2288 = sst [smem:[#allocation36_spill]] %s2256_s4 }
   0x6   :  { %2289 = sst [smem:[#allocation37_spill]] %s2257_s5 }
   0x7   :  { %2290 = sst [smem:[#allocation38_spill]] %s2258_s6 }
   0x8   :  { %11 = vsyncpa [#allocation4], 0 }
   0x9   :  { %13 = vsyncpa [#allocation4 + $0x1], 0 }
   0xa   :  { %14 = vsyncpa [#allocation7], 0 }
   0xb   :  { %16 = vsyncpa [#allocation7 + $0x1], 0 }
   0xc   :  { %17 = vsyncpa [#allocation10], 0 }
   0xd   :  { %19 = vsyncpa [#allocation10 + $0x1], 0 }
   0xe   :  { %20 = vsyncpa [#allocation13], 0 }
   0xf   :  { %21 = vsyncpa [#allocation5], 0 }
  0x10   :  { %23 = vsyncpa [#allocation5 + $0x1], 0  ;;  %s1668_s21 = smov 0   ;;  %s1670_s22 = smov 0  }
  0x11   :  { %s1672_s23 = smov 0   ;;  %s1674_s24 = smov 0  }
  0x12   :  { %s1676_s25 = smov 0   ;;  %s1678_s26 = smov 0  }
  0x13   :  { %s1680_s27 = smov 0   ;;  %s1682_s28 = smov 0  }
  0x14   :  { %s1684_s29 = smov 0   ;;  %s1686_s30 = smov 0  }
  0x15   :  { %s1688_s7 = smov 0   ;;  %s1690_s8 = smov 0  }
  0x16   :  { %s1692_s9 = smov 0   ;;  %s1694_s10 = smov 0  }
  0x17 LB: > { %2291 = sst [smem:[#allocation20_spill]] %s1546_s21  ;;  %s38_s11 = sadd.s32 1, %s1590_s8  ;;  %s1598_s10 = sphi %s1694_s10, %s29_s10   ;;  %s1594_s9 = sphi %s1692_s9, %s2349_s9   ;;  %s1590_s8 = sphi %s1690_s8, %s2348_s8   ;;  %s1586_s7 = sphi %s1688_s7, %s2347_s7   ;;  %s1582_s30 = sphi %s1686_s30, %s2358_s30   ;;  %s1578_s29 = sphi %s1684_s29, %s2357_s29   ;;  %s1574_s28 = sphi %s1682_s28, %s2356_s28   ;;  %s1570_s27 = sphi %s1680_s27, %s2355_s27   ;;  %s1566_s26 = sphi %s1678_s26, %s2345_s26   ;;  %s1562_s25 = sphi %s1676_s25, %s2354_s25   ;;  %s1558_s24 = sphi %s1674_s24, %s2353_s24   ;;  %s1554_s23 = sphi %s1672_s23, %s2352_s23   ;;  %s1550_s22 = sphi %s1670_s22, %s2351_s22   ;;  %s1546_s21 = sphi %s1668_s21, %s2350_s21  }
  0x18   : > { %2292 = sst [smem:[#allocation21_spill]] %s1566_s26  ;;  %p2265_p0 = scmp.eq.s32.totalorder %s1598_s10, 0 }
  0x19   : > { %2293 = sst [smem:[#allocation22_spill]] %s1582_s30  ;;  %p1740_p1 = scmp.ge.s32.totalorder %s38_s11, 2 }
  0x1a   : > { %2294 = sst [smem:[#allocation23_spill]] %s1586_s7  ;;  %s74_s13 = sadd.s32 1, %s1566_s26 }
  0x1b   : > { %2295 = sst [smem:[#allocation24_spill]] %s1590_s8  ;;  %p81_p2 = scmp.ne.s32.totalorder %s1566_s26, %s1562_s25 }
  0x1c   : > { %2296 = sst [smem:[#allocation25_spill]] %s1594_s9  ;;  %s2360_s11 = smov (%p1740_p1, %s38_s11), 0 }
  0x1d   : > { %s2297_s12 = scalar_select %p1740_p1, 1, 0 }
  0x1e   : > { %2298 = sst [smem:[#allocation26_spill]] %s2360_s11  ;;  %p83_p3 = por %p81_p2, %p2265_p0 }
  0x1f   : > { %p2264_p4 = scmp.lt.s32.totalorder %s1598_s10, 4  ;;  %s1756_s14 = ssub.s32 %s1590_s8, %s2360_s11 }
  0x20   : > { %p72_p5 = scmp.eq.s32.totalorder %s1756_s14, 0  ;;  %s272_s16 = sand.u32 1, %s1566_s26  }
  0x21   : > { %s1762_s17 = sshll.u32 %s1590_s8, 7  ;;  %s1767_s19 = sshll.u32 %s272_s16, 3 }
  0x22   : > { %s1765_s18 = scalar_select %p72_p5, %s1566_s26, %s74_s13  }
  0x23   : > { %s2300_s1 = sld [smem:[#allocation33_spill]]  ;;  %p1777_p6 = pnand %p2264_p4, %p83_p3 }
  0x24   : > { %2299 = sst [smem:[#allocation27_spill]] %s1765_s18  ;;  %s274_s13 = scalar_lea.vmem [#allocation6], %s1767_s19 }
  0x25   : > { %s2301_s15 = scalar_select %p1777_p6, 1, 0 }
  0x26   : > { %s281_s11 = sshll.u32 %s274_s13, 4  ;;  %s2302_s16 = sand.u32 1, %s1598_s10   ;;  %s1782_s11 = int_to_ptr.vmem [resolvable:$true] %s281_s11 }
  0x27   : > { %s1786_s8 = scalar_lea.sflag [#allocation7], %s2302_s16  ;;  %p1792_p8 = pneg %p1777_p6 }
  0x28   : > { %2303 = sst [smem:[#allocation28_spill]] %s1786_s8 }
  0x29   : > { %s1773_s7 = scalar_lea.hbm %s2300_s1, %s1762_s17  ;;  %s1267_s13 = scalar_lea.hbm %s2300_s1, 256 }
  0x2a   : > { %s1262_s6 = scalar_lea.hbm %s1773_s7, 128  ;;  %p1268_p11 = scmp.lt.u32.totalorder %s1773_s7, %s2300_s1 }
  0x2b   : > { %p1263_p7 = scmp.ne.s32.totalorder %s1773_s7, %s1262_s6  ;;  %p1269_p12 = scmp.lt.u32.totalorder %s1267_s13, %s1262_s6 }
  0x2c   : > { %s2304_s20 = scalar_select %p1792_p8, 1, 0 }
  0x2d   : > { %p1265_p9 = pnand %p1792_p8, %p1263_p7  ;;  %p1270_p13 = por %p1269_p12, %p1268_p11 }
  0x2e   : > { %p1271_p2 = scmp.lt.u32.totalorder %s1262_s6, %s1773_s7 }
  0x2f   : > { %p1266_p10 = pneg %p1265_p9 }
  0x30   : > { %p1272_p3 = por %p1271_p2, %p1270_p13 }
  0x32   : > { %p1273_p5 = pnand %p1272_p3, %p1266_p10 }
  0x34   : > { %1276 = shalt.err (!%p1273_p5)
}
  0x35   : > { %s1277_s16 = scalar_lea.vmem %s1782_s11, 128  ;;  %s1600_s26 = smov [#allocation6]  }
  0x36   : > { %p1278_p7 = scmp.ne.s32.totalorder %s1782_s11, %s1277_s16  ;;  %s1282_s18 = sshll.u32 %s1600_s26, 4  ;;  %s1283_s18 = int_to_ptr.vmem [resolvable:$false] %s1282_s18 }
  0x37   : > { %s1284_s4 = scalar_lea.vmem %s1283_s18, 256  ;;  %p1285_p0 = scmp.lt.s32.totalorder %s1782_s11, %s1283_s18 }
  0x38   : > { %p1280_p9 = pnand %p1278_p7, %p1792_p8  ;;  %p1286_p1 = scmp.lt.s32.totalorder %s1284_s4, %s1277_s16 }
  0x3a   : > { %p1281_p4 = pneg %p1280_p9  ;;  %p1287_p11 = por %p1286_p1, %p1285_p0 }
  0x3c   : > { %p1288_p12 = pnand %p1287_p11, %p1281_p4 }
  0x3e   : > { %1291 = shalt.err (!%p1288_p12)
}
  0x3f   : > { %1095 = dma.hbm_to_vmem [thread:$0]  (!%p1777_p6), %s1773_s7, 128, %s1782_s11, %s1786_s8  }
  0x40   : > { %s2305_s3 = sld [smem:[#allocation35_spill]]  ;;  %s310_s16 = scalar_lea.vmem [#allocation9], %s1767_s19 }
  0x41   : > { %s317_s26 = sshll.u32 %s310_s16, 4  ;;  %s2306_s18 = sand.u32 1, %s1598_s10   ;;  %s318_s26 = int_to_ptr.vmem [resolvable:$true] %s317_s26 }
  0x42   : > { %s1825_s4 = scalar_lea.sflag [#allocation10], %s2306_s18 }
  0x46   : > { %s1820_s13 = scalar_lea.hbm %s2305_s3, %s1762_s17  ;;  %s1297_s30 = scalar_lea.hbm %s2305_s3, 256 }
  0x47   : > { %s1292_s1 = scalar_lea.hbm %s1820_s13, 128  ;;  %p1298_p10 = scmp.lt.u32.totalorder %s1820_s13, %s2305_s3 }
  0x48   : > { %p1293_p0 = scmp.ne.s32.totalorder %s1820_s13, %s1292_s1  ;;  %p1299_p13 = scmp.lt.u32.totalorder %s1297_s30, %s1292_s1 }
  0x49   : > { %p1301_p3 = scmp.lt.u32.totalorder %s1292_s1, %s1820_s13 }
  0x4a   : > { %p1295_p1 = pnand %p1293_p0, %p1792_p8  ;;  %p1300_p2 = por %p1299_p13, %p1298_p10 }
  0x4c   : > { %p1296_p4 = pneg %p1295_p1  ;;  %p1302_p5 = por %p1301_p3, %p1300_p2 }
  0x4e   : > { %p1303_p7 = pnand %p1302_p5, %p1296_p4 }
  0x50   : > { %1306 = shalt.err (!%p1303_p7)
}
  0x51   : > { %s1307_s16 = scalar_lea.vmem %s318_s26, 128  ;;  %s1601_s18 = smov [#allocation9]  }
  0x52   : > { %p1308_p9 = scmp.ne.s32.totalorder %s318_s26, %s1307_s16  ;;  %s1312_s2 = sshll.u32 %s1601_s18, 4  ;;  %s1313_s2 = int_to_ptr.vmem [resolvable:$false] %s1312_s2 }
  0x53   : > { %s1314_s7 = scalar_lea.vmem %s1313_s2, 256  ;;  %p1315_p0 = scmp.lt.s32.totalorder %s318_s26, %s1313_s2 }
  0x54   : > { %p1310_p11 = pnand %p1308_p9, %p1792_p8  ;;  %p1316_p1 = scmp.lt.s32.totalorder %s1314_s7, %s1307_s16 }
  0x56   : > { %p1311_p12 = pneg %p1310_p11  ;;  %p1317_p6 = por %p1316_p1, %p1315_p0 }
  0x58   : > { %p1318_p10 = pnand %p1317_p6, %p1311_p12 }
  0x5a   : > { %1321 = shalt.err (!%p1318_p10)
}
  0x5b   : > { %p2307_p13 = scmp.ne.s32.totalorder %s2301_s15, 0  ;;  %s1846_s1 = sadd.s32 4294967295, %s1598_s10  }
  0x5c   : > { %s1034_s2 = sadd.s32 4294967294, %s1598_s10   ;;  %p61_p6 = scmp.ne.s32.totalorder %s1574_s28, %s1570_s27 }
  0x5d   : > { %1101 = dma.hbm_to_vmem [thread:$0]  (!%p2307_p13), %s1820_s13, 128, %s318_s26, %s1825_s4  }
  0x5e   : > { %p2276_p4 = scmp.eq.s32.totalorder %s1846_s1, 0  ;;  %p87_p2 = scmp.ne.s32.totalorder %s1562_s25, %s1558_s24 }
  0x5f   : > { %p211_p5 = scmp.ne.s32.totalorder %s1554_s23, %s1550_s22  ;;  %p212_p9 = scmp.eq.s32.totalorder %s1846_s1, 3 }
  0x60   : > { %p1857_p3 = por %p2276_p4, %p61_p6  ;;  %p1865_p7 = por %p87_p2, %p2276_p4 }
  0x61   : > { %p217_p11 = scmp.ne.s32.totalorder %s1550_s22, %s1546_s21  ;;  %p218_p12 = scmp.eq.s32.totalorder %s1034_s2, 3 }
  0x62   : > { %s2308_s11 = scalar_select %p1857_p3, 1, 0 }
  0x63   : > { %s2309_s13 = scalar_select %p1865_p7, 1, 0 }
  0x64   : > { %p1872_p0 = por %p212_p9, %p211_p5  ;;  %p1035_p1 = scmp.ge.s32.totalorder %s1598_s10, 1 }
  0x65   : > { %p1877_p10 = por %p218_p12, %p217_p11  ;;  %p225_p6 = scmp.lt.s32.totalorder %s1598_s10, 5 }
  0x66   : > { %s2310_s24 = scalar_select %p1872_p0, 1, 0 }
  0x67   : > { %s2312_s27 = scalar_select %p1877_p10, 1, 0 }
  0x68   : > { %2311 = sst [smem:[#allocation29_spill]] %s2310_s24  ;;  %p1882_p3 = pnand %p1035_p1, %p225_p6 }
  0x69   : > { %2313 = sst [smem:[#allocation30_spill]] %s2312_s27  ;;  %s1602_s30 = smov [#allocation12]  }
  0x6a   : > { %s2314_s26 = scalar_select %p1882_p3, 1, 0 }
  0x6b   : > { %s238_s6 = sshll.u32 %s1602_s30, 4  ;;  %p1085_p2 = pneg %p1882_p3  ;;  %s239_s6 = int_to_ptr.vmem [resolvable:$true] %s238_s6 }
  0x6c   : > { %s41_s18 = sadd.s32 1, %s1594_s9  ;;  %p2316_p9 = scmp.ne.s32.totalorder %s2297_s12, 0 }
  0x6d   : > { %p1890_p5 = pnand %p1085_p2, %p2276_p4  ;;  %s48_s7 = sadd.s32 1, %s1578_s29 }
  0x6e   : > { %s2362_s18 = smov (!%p2316_p9, %s41_s18), %s1594_s9  ;;  %s2317_s5 = sld [smem:[#allocation37_spill]] }
  0x6f   : > { %p1324_p12 = pneg %p1890_p5 }
  0x74   : > { %s1322_s3 = scalar_lea.hbm %s2317_s5, 64 }
  0x75   : > { %p1323_p11 = scmp.ne.s32.totalorder %s2317_s5, %s1322_s3  ;;  %p1329_p2 = scmp.lt.u32.totalorder %s1322_s3, %s2317_s5 }
  0x77   : > { %p1325_p1 = pnand %p1324_p12, %p1323_p11 }
  0x79   : > { %p1326_p6 = pneg %p1325_p1 }
  0x7b   : > { %p1331_p4 = pnand %p1329_p2, %p1326_p6 }
  0x7d   : > { %1334 = shalt.err (!%p1331_p4)
}
  0x7e   : > { %s1335_s12 = scalar_lea.vmem %s239_s6, 64  ;;  %p1343_p7 = scmp.lt.s32.totalorder %s239_s6, %s239_s6 }
  0x7f   : > { %p1336_p9 = scmp.ne.s32.totalorder %s239_s6, %s1335_s12  ;;  %p1344_p3 = scmp.lt.s32.totalorder %s1335_s12, %s1335_s12 }
  0x81   : > { %p1338_p10 = pnand %p1336_p9, %p1324_p12  ;;  %p1345_p13 = por %p1344_p3, %p1343_p7 }
  0x83   : > { %p1339_p0 = pneg %p1338_p10 }
  0x85   : > { %p1346_p8 = pnand %p1345_p13, %p1339_p0 }
  0x87   : > { %1349 = shalt.err (!%p1346_p8)
}
  0x88   : > { %1088 = dma.hbm_to_vmem [thread:$0]  (!%p1890_p5), %s2317_s5, 64, %s239_s6, [#allocation13]  }
  0x89   : > { %p43_p4 = scmp.ge.s32.totalorder %s2362_s18, 2  ;;  %p55_p13 = scmp.ne.s32.totalorder %s1578_s29, %s1574_s28 }
  0x8a   : > { %s249_s3 = sand.u32 1, %s1578_s29   ;;  %s1064_s24 = sshll.u32 %s1594_s9, 9 }
  0x8b   : > { %s2364_s18 = smov (%p43_p4, %s2362_s18), 0  ;;  %p2319_p8 = scmp.eq.s32.totalorder %s1598_s10, 0 }
  0x8c   : > { %2318 = sst [smem:[#allocation31_spill]] %s2364_s18  ;;  %s45_s27 = ssub.s32 %s1594_s9, %s2364_s18 }
  0x8d   : > { %p57_p3 = por %p2319_p8, %p55_p13  ;;  %s1038_s16 = sshll.u32 %s249_s3, 5 }
  0x8e   : > { %p46_p7 = scmp.eq.s32.totalorder %s45_s27, 0  ;;  %s198_s2 = sor.u32 %s1756_s14, %s45_s27 }
  0x8f   : > { %p199_p0 = scmp.eq.s32.totalorder %s198_s2, 0  ;;  %s2320_s12 = sadd.s32 1, %s1554_s23 }
  0x90   : > { %s1929_s30 = scalar_select %p46_p7, %s1578_s29, %s48_s7  }
  0x91   : > { %s1934_s6 = scalar_select %p199_p0, %s1554_s23, %s2320_s12  }
  0x92   : > { %s2321_s0 = sld [smem:[#allocation32_spill]]  ;;  %s253_s18 = scalar_lea.vmem [#allocation3], %s1038_s16 }
  0x93   : > { %s260_s9 = sshll.u32 %s253_s18, 4  ;;  %p2322_p10 = scmp.lt.s32.totalorder %s1598_s10, 4  ;;  %s1941_s9 = int_to_ptr.vmem [resolvable:$true] %s260_s9 }
  0x94   : > { %s1949_s7 = scalar_lea.sflag [#allocation4], %s249_s3 }
  0x95   : > { %p1945_p5 = pnand %p2322_p10, %p57_p3 }
  0x97   : > { %p1352_p12 = pneg %p1945_p5 }
  0x98   : > { %s1939_s5 = scalar_lea.hbm %s2321_s0, %s1064_s24  ;;  %s1355_s16 = scalar_lea.hbm %s2321_s0, 1024 }
  0x99   : > { %s1350_s27 = scalar_lea.hbm %s1939_s5, 512  ;;  %p1356_p2 = scmp.lt.u32.totalorder %s1939_s5, %s2321_s0 }
  0x9a   : > { %p1351_p11 = scmp.ne.s32.totalorder %s1939_s5, %s1350_s27  ;;  %p1357_p9 = scmp.lt.u32.totalorder %s1355_s16, %s1350_s27 }
  0x9b   : > { %p1359_p13 = scmp.lt.u32.totalorder %s1350_s27, %s1939_s5 }
  0x9c   : > { %p1353_p1 = pnand %p1352_p12, %p1351_p11  ;;  %p1358_p4 = por %p1357_p9, %p1356_p2 }
  0x9e   : > { %p1354_p6 = pneg %p1353_p1  ;;  %p1360_p8 = por %p1359_p13, %p1358_p4 }
  0xa0   : > { %p1361_p3 = pnand %p1360_p8, %p1354_p6 }
  0xa2   : > { %1364 = shalt.err (!%p1361_p3)
}
  0xa3   : > { %s1365_s3 = scalar_lea.vmem %s1941_s9, 512  ;;  %s1603_s21 = smov [#allocation3]  }
  0xa4   : > { %p1366_p7 = scmp.ne.s32.totalorder %s1941_s9, %s1365_s3  ;;  %s1370_s8 = sshll.u32 %s1603_s21, 4  ;;  %s1371_s8 = int_to_ptr.vmem [resolvable:$false] %s1370_s8 }
  0xa5   : > { %s1372_s18 = scalar_lea.vmem %s1371_s8, 1024  ;;  %p1373_p11 = scmp.lt.s32.totalorder %s1941_s9, %s1371_s8 }
  0xa6   : > { %p1368_p0 = pnand %p1366_p7, %p1352_p12  ;;  %p1374_p1 = scmp.lt.s32.totalorder %s1372_s18, %s1365_s3 }
  0xa8   : > { %p1369_p10 = pneg %p1368_p0  ;;  %p1375_p2 = por %p1374_p1, %p1373_p11 }
  0xaa   : > { %p1376_p9 = pnand %p1375_p2, %p1369_p10 }
  0xac   : > { %1379 = shalt.err (!%p1376_p9)
}
  0xad   : > { %s1604_s27 = smov 256   ;;  %s1605_s24 = smov 16  }
  0xae   : > { %1092 = dma.hbm_to_vmem [thread:$0]  (!%p1945_p5), %s1939_s5, 512, %s1941_s9, %s1949_s7, %s1604_s27, %s1604_s27, %s1605_s24  }
  0xaf   : > { %s2324_s12 = sld [smem:[#allocation34_spill]]  ;;  %s292_s3 = scalar_lea.vmem [#allocation8], %s1767_s19 }
  0xb0   : > { %s299_s8 = sshll.u32 %s292_s3, 4  ;;  %p2325_p6 = scmp.ne.s32.totalorder %s2304_s20, 0  ;;  %s300_s8 = int_to_ptr.vmem [resolvable:$true] %s299_s8 }
  0xb5   : > { %s1981_s21 = scalar_lea.hbm %s2324_s12, %s1762_s17  ;;  %s1385_s5 = scalar_lea.hbm %s2324_s12, 256 }
  0xb6   : > { %s1380_s18 = scalar_lea.hbm %s1981_s21, 128  ;;  %p1386_p5 = scmp.lt.u32.totalorder %s1981_s21, %s2324_s12 }
  0xb7   : > { %p1381_p12 = scmp.ne.s32.totalorder %s1981_s21, %s1380_s18  ;;  %p1387_p8 = scmp.lt.u32.totalorder %s1385_s5, %s1380_s18 }
  0xb8   : > { %p1389_p7 = scmp.lt.u32.totalorder %s1380_s18, %s1981_s21 }
  0xb9   : > { %p1383_p4 = pnand %p1381_p12, %p2325_p6  ;;  %p1388_p3 = por %p1387_p8, %p1386_p5 }
  0xbb   : > { %p1384_p13 = pneg %p1383_p4  ;;  %p1390_p0 = por %p1389_p7, %p1388_p3 }
  0xbd   : > { %p1391_p10 = pnand %p1390_p0, %p1384_p13 }
  0xbf   : > { %1394 = shalt.err (!%p1391_p10)
}
  0xc0   : > { %s1395_s27 = scalar_lea.vmem %s300_s8, 128  ;;  %s1606_s24 = smov [#allocation8]  }
  0xc1   : > { %p1396_p11 = scmp.ne.s32.totalorder %s300_s8, %s1395_s27  ;;  %s1400_s16 = sshll.u32 %s1606_s24, 4  ;;  %s1401_s16 = int_to_ptr.vmem [resolvable:$false] %s1400_s16 }
  0xc2   : > { %s1402_s0 = scalar_lea.vmem %s1401_s16, 256  ;;  %p1403_p9 = scmp.lt.s32.totalorder %s300_s8, %s1401_s16 }
  0xc3   : > { %p1398_p1 = pnand %p1396_p11, %p2325_p6  ;;  %p1404_p12 = scmp.lt.s32.totalorder %s1402_s0, %s1395_s27 }
  0xc5   : > { %p1399_p2 = pneg %p1398_p1  ;;  %p1405_p4 = por %p1404_p12, %p1403_p9 }
  0xc7   : > { %p1406_p5 = pnand %p1405_p4, %p1399_p2 }
  0xc9   : > { %1409 = shalt.err (!%p1406_p5)
}
  0xca   : > { %p2326_p8 = scmp.ne.s32.totalorder %s2301_s15, 0  ;;  %s2327_s2 = sld [smem:[#allocation28_spill]] }
  0xcb   : > { %s2328_s14 = sld [smem:[#allocation36_spill]]  ;;  %s328_s9 = scalar_lea.vmem [#allocation11], %s1767_s19 }
  0xcc   : > { %s335_s7 = sshll.u32 %s328_s9, 4  ;;  %s336_s7 = int_to_ptr.vmem [resolvable:$true] %s335_s7 }
  0xd0   : > { %1098 = dma.hbm_to_vmem [thread:$0]  (!%p2326_p8), %s1981_s21, 128, %s300_s8, %s2327_s2  }
  0xd1   : > { %s2006_s5 = scalar_lea.hbm %s2328_s14, %s1762_s17  ;;  %s1415_s21 = scalar_lea.hbm %s2328_s14, 256 }
  0xd2   : > { %s1410_s27 = scalar_lea.hbm %s2006_s5, 128  ;;  %p1416_p0 = scmp.lt.u32.totalorder %s2006_s5, %s2328_s14 }
  0xd3   : > { %p1411_p13 = scmp.ne.s32.totalorder %s2006_s5, %s1410_s27  ;;  %p1417_p10 = scmp.lt.u32.totalorder %s1415_s21, %s1410_s27 }
  0xd4   : > { %p1419_p1 = scmp.lt.u32.totalorder %s1410_s27, %s2006_s5 }
  0xd5   : > { %p1413_p3 = pnand %p1411_p13, %p2325_p6  ;;  %p1418_p11 = por %p1417_p10, %p1416_p0 }
  0xd7   : > { %p1414_p7 = pneg %p1413_p3  ;;  %p1420_p2 = por %p1419_p1, %p1418_p11 }
  0xd9   : > { %p1421_p9 = pnand %p1420_p2, %p1414_p7 }
  0xdb   : > { %1424 = shalt.err (!%p1421_p9)
}
  0xdc   : > { %s1425_s17 = scalar_lea.vmem %s336_s7, 128  ;;  %s1607_s19 = smov [#allocation11]  }
  0xdd   : > { %p1426_p12 = scmp.ne.s32.totalorder %s336_s7, %s1425_s17  ;;  %s1430_s2 = sshll.u32 %s1607_s19, 4  ;;  %s1431_s2 = int_to_ptr.vmem [resolvable:$false] %s1430_s2 }
  0xde   : > { %s1432_s3 = scalar_lea.vmem %s1431_s2, 256  ;;  %p1433_p13 = scmp.lt.s32.totalorder %s336_s7, %s1431_s2 }
  0xdf   : > { %p1428_p4 = pnand %p1426_p12, %p2325_p6  ;;  %p1434_p3 = scmp.lt.s32.totalorder %s1432_s3, %s1425_s17 }
  0xe1   : > { %p1429_p5 = pneg %p1428_p4  ;;  %p1435_p8 = por %p1434_p3, %p1433_p13 }
  0xe3   : > { %p1436_p0 = pnand %p1435_p8, %p1429_p5 }
  0xe5   : > { %1439 = shalt.err (!%p1436_p0)
}
  0xe6   : > { %p2329_p10 = scmp.ne.s32.totalorder %s2301_s15, 0  ;;  %p2330_p7 = scmp.ne.s32.totalorder %s2314_s26, 0 }
  0xe7   : > { %s346_s20 = sand.u32 (!%p2330_p7), 1, %s1574_s28   ;;  %p2331_p6 = scmp.ne.s32.totalorder (!%p2330_p7), %s2308_s11, 0 }
  0xe8   : > { %1104 = dma.hbm_to_vmem [thread:$0]  (!%p2329_p10), %s2006_s5, 128, %s336_s7, %s1825_s4  }
  0xe9   : > { %344 = sbr.rel (%p2330_p7) target bundleno = 786 (0x312), region = 44  ;;  %s1050_s18 = sshll.u32 (!%p2330_p7), %s346_s20, 5 }
  0xea   : > { %s347_s9 = scalar_lea.sflag (!%p2330_p7), [#allocation4], %s346_s20  ;;  %s2030_s27 = scalar_lea.vmem (!%p2330_p7), [#allocation3], %s1050_s18 }
  0xf0   : > { %1525 = dma.done.wait (%p2331_p6), %s347_s9, 512  }
  0xf1   : > { %1527 = vsyncadd (%p2331_p6), %s347_s9, 4294966784  ;;  %s355_s15 = sand.u32 1, %s1846_s1   ;;  %s357_s4 = sand.u32 1, %s1562_s25  }
  0xf2   : > { %s2038_s5 = sshll.u32 %s357_s4, 3  ;;  %s356_s26 = scalar_lea.sflag [#allocation7], %s355_s15 }
  0xf3   : > { %s359_s7 = scalar_lea.vmem [#allocation6], %s2038_s5  ;;  %p2332_p8 = scmp.ne.s32.totalorder %s2309_s13, 0 }
  0xf5   : > { %1529 = dma.done.wait (%p2332_p8), %s356_s26, 256  }
  0xf6   : > { %1531 = vsyncadd (%p2332_p8), %s356_s26, 4294967040  ;;  %s368_s11 = scalar_lea.vmem [#allocation8], %s2038_s5  ;;  %s374_s24 = scalar_lea.sflag [#allocation10], %s355_s15 }
  0xf7   : > { %s377_s16 = scalar_lea.vmem [#allocation9], %s2038_s5 }
  0xf8   : > { %1533 = dma.done.wait (%p2332_p8), %s374_s24, 256  }
  0xf9   : > { %1535 = vsyncadd (%p2332_p8), %s374_s24, 4294967040  ;;  %s386_s21 = scalar_lea.vmem [#allocation11], %s2038_s5  ;;  %p2333_p11 = scmp.eq.s32.totalorder %s1846_s1, 0 }
  0xfb   : > { %1537 = dma.done.wait (%p2333_p11), [#allocation13], 64   ;;  %p2334_p1 = pmov %p2333_p11 }
  0xfc   : > { %v1608_v0 = vmov 0.0   ;;  %v1609_v1 = vmov 0   ;;  %v1610_v2 = vmov 1   ;;  %v550_v3 = vlaneseq  ;;  %v441_v4 = vld [vmem:[%s2030_s27 + $0x8] sm:$0xff]  ;;  %v443_v5 = vld [vmem:[%s2030_s27 + $0x18] sm:$0xff]  ;;  %v440_v6 = vld [vmem:[%s2030_s27] sm:$0xff] }
  0xfd   : > { %1539 = vsyncadd (%p2334_p1), [#allocation13], 4294967232  ;;  %518 = vmatprep.mubr.f32.mxu0 %v1608_v0  ;;  %525 = vst [vmem:[#allocation2] sm:$0xff] %v1608_v0  ;;  %1252 = vset.pattern.permute.xlu0 %v1609_v1  ;;  %v1065_v8 = vpack.c.bf16 %v443_v5, %v441_v4  ;;  %v442_v9 = vld [vmem:[%s2030_s27 + $0x10] sm:$0xff]  ;;  %v562_v12 = vld [vmem:[%s377_s16] sm:$0xff]  ;;  %vm450_vm0 = vcmask 130048  }
  0xfe   : > { %1253 = vset.pattern.permute.xlu1 %v1610_v2  ;;  %v551_v7 = vshrl.u32 %v550_v3, 7  ;;  %v444_v10 = vld [vmem:[%s368_s11] sm:$0xff]  ;;  %v1067_v11 = vpack.c.bf16 %v442_v9, %v440_v6  ;;  %v439_v13 = vld [vmem:[%s359_s7] sm:$0xff]  ;;  %v1611_v16 = vmov 2   ;;  %v1612_v18 = vmov 3   ;;  %s1613_s1 = smov 2  }
  0xff   : > { %447 = vperm.xlu0 %1252, %v444_v10   ;;  %1066 = vmatprep.subr.bf16.mxu0 %v1065_v8  ;;  %v546_v15 = vld [vmem:[#allocation12 + $0x1] ss:$2 sm:$0x3]  ;;  %v544_v21 = vld [vmem:[#allocation12] ss:$2 sm:$0x3] }
 0x100   : > { %576 = vperm.xlu1 %1253, %v562_v12   ;;  %1068 = vmatpush1.bf16.msra.mxu0 %v1067_v11  ;;  %v552_v14 = vsub.s32 0, %v551_v7  ;;  %v556_v17 = vsub.s32 1, %v551_v7  ;;  %v1614_v23 = vmov 4   ;;  %s1615_s13 = smov 16   ;;  %v1616_v25 = vmov 6   ;;  %s1619_s8 = smov 17  }
 0x101   : > { %v1617_v26 = vmov 5   ;;  %v1618_v27 = vmov 7   ;;  %vm527_vm1 = vcmask 277504   ;;  %s1620_s0 = smov 18   ;;  %v1621_v33 = vmov 8   ;;  %s1622_s17 = smov 32  }
 0x102   : > { %v602_v19 = vrot.slane %v546_v15, %v552_v14  ;;  %v606_v20 = vrot.slane %v546_v15, %v556_v17  ;;  %v2064_v22 = vrot.slane %v544_v21, %v552_v14  ;;  %v2066_v24 = vrot.slane %v544_v21, %v556_v17  ;;  %528 = vst.msk [vmem:[#allocation2 + $0x10] sm:$0xff] %vm527_vm1, %v1608_v0  ;;  %s1623_s19 = smov 34   ;;  %v826_v34 = vld [vmem:[%s386_s21] sm:$0xff]  ;;  %s1624_s2 = smov 127  }
 0x103   : > { %1254 = vset.pattern.permute.xlu0 %v1611_v16  ;;  %1057 = vmatmul.mubr.msk.f32.vlgmr.msra.gmra.mrb[0].mxu0 %vm450_vm0, %v439_v13  ;;  %vm540_vm2 = vcmask 1047688   ;;  %vm535_vm3 = vcmask 138240   ;;  %s1625_s3 = smov 111   ;;  %s1626_s20 = smov 112   ;;  %vm611_vm4 = vcmask 15360   ;;  %vm738_vm5 = vcmask 261120  }
 0x104   : > { %1255 = vset.pattern.permute.xlu1 %v1612_v18  ;;  %620 = vperm.xlu0 %1254, %v562_v12   ;;  %s1627_s18 = smov 110   ;;  %s1628_s9 = smov 95   ;;  %vm703_vm6 = vcmask 146432   ;;  %vm591_vm7 = vcmask 1039360   ;;  %vm635_vm8 = vcmask 1031168   ;;  %vm669_vm9 = vcmask 916480  }
 0x105   : > { %654 = vperm.xlu1 %1255, %v562_v12   ;;  %s1629_s27 = smov 126   ;;  %s1630_s15 = smov 96   ;;  %vm692_vm10 = vcmask 908288   ;;  %vm727_vm11 = vcmask 900096   ;;  %vm762_vm12 = vcmask 785408   ;;  %vm785_vm13 = vcmask 777216  }
 0x106   : > { %s1631_s4 = smov 94   ;;  %s2335_s5 = sld [smem:[#allocation22_spill]]  ;;  %vm819_vm14 = vcmask 769024  }
 0x107   : > { %s2336_s26 = sld [smem:[#allocation23_spill]]  ;;  %s436_s7 = sand.u32 1, %s1550_s22  }
 0x108   : > { %609 = vrot.lane.b32.xlu0 %v606_v20, %s1613_s1  ;;  %s1056_s11 = sshll.u32 %s436_s7, 4 }
 0x109   : > { %607 = vrot.lane.b32.xlu1 %v602_v19, %s1613_s1  ;;  %1257 = vset.pattern.permute.xlu0 %v1617_v26  ;;  %s2337_s1 = sld [smem:[#allocation29_spill]] }
 0x10a   : > { %1256 = vset.pattern.permute.xlu1 %v1614_v23 }
 0x10c   : > { %642 = vrot.lane.b32.xlu0 %v2064_v22, %s1615_s13  ;;  %s1059_s24 = sshll.u32 %s2335_s5, 1 }
 0x10d   : > { %677 = vperm.xlu1 %1256, %v562_v12   ;;  %s1060_s16 = sshll.u32 %s2336_s26, 2 }
 0x10e   : > { %s849_s21 = sadd.s32 %s1060_s16, %s1059_s24 }
 0x10f   : > { %p2339_p9 = scmp.ne.s32.totalorder %s2337_s1, 0 }
 0x111   : > { %644 = vrot.lane.b32.xlu1 %v2066_v24, %s1615_s13  ;;  %s1061_s13 = sshll.u32 %s849_s21, 7 }
 0x112   : > { %1258 = vset.pattern.permute.xlu1 %v1616_v25 }
 0x115   : > { %747 = vperm.xlu1 %1258, %v562_v12  }
 0x119   : > { %1259 = vset.pattern.permute.xlu1 %v1618_v27 }
 0x17e   : > { %v448_v28 = vpop.permute.xlu0 %447 }
 0x17f   : > { %v577_v35 = vpop.permute.xlu1 %576 }
 0x183   : > { %v2078_v39 = vpop.permute.xlu0 %620 }
 0x184   : > { %v2076_v36 = vpop.permute.xlu1 %654 }
 0x187   : > { %v2082_v41 = vpop.permute.xlu0 %609 }
 0x188   : > { %v608_v37 = vpop.permute.xlu1 %607 }
 0x189   : > { %v612_v7 = vsel %vm611_vm4, %v608_v37, %v2082_v41 }
 0x18b   : > { %v2086_v43 = vpop.permute.xlu0 %642 }
 0x18c   : > { %v678_v38 = vpop.permute.xlu1 %677 }
 0x190   : > { %v2080_v40 = vpop.permute.xlu1 %644 }
 0x191   : > { %v646_v26 = vsel %vm450_vm0, %v2086_v43, %v2080_v40 }
 0x194   : > { %v2084_v42 = vpop.permute.xlu1 %747 }
 0x1d6   : > { %v520_v29 = vpop.f32.mrb[0].mxu0 }
 0x1d7   : > { %v521_v30 = vadd.f32 %v520_v29, %v448_v28  ;;  %v522_v31 = vpop.f32.mrb[1].mxu0 }
 0x1d8   : > { %v523_v32 = vadd.f32 %v522_v31, %v448_v28 }
 0x1d9   : > { %531 = vrot.lane.b32.xlu0 %v521_v30, %s1619_s8 }
 0x1da   : > { %533 = vrot.lane.b32.xlu1 %v523_v32, %s1619_s8  ;;  %s438_s8 = scalar_lea.vmem [#allocation14], %s1056_s11 }
 0x1dd   : > { %712 = vperm.xlu0 %1257, %v562_v12  }
 0x1de   : > { %699 = vrot.lane.b32.xlu1 %v602_v19, %s1620_s0 }
 0x1e1   : > { %701 = vrot.lane.b32.xlu0 %v606_v20, %s1620_s0  ;;  %s853_s0 = sshll.u32 %s438_s8, 4  ;;  %s2175_s0 = int_to_ptr.vmem [resolvable:$true] %s853_s0 }
 0x1e2   : > { %770 = vperm.xlu1 %1259, %v562_v12   ;;  %1260 = vset.pattern.permute.xlu0 %v1621_v33 }
 0x1e5   : > { %734 = vrot.lane.b32.xlu0 %v2064_v22, %s1622_s17 }
 0x1e6   : > { %736 = vrot.lane.b32.xlu1 %v2066_v24, %s1622_s17 }
 0x1e9   : > { %804 = vperm.xlu0 %1260, %v562_v12  }
 0x1ea   : > { %792 = vrot.lane.b32.xlu1 %v602_v19, %s1623_s19 }
 0x1ed   : > { %1261 = vset.pattern.permute.xlu0 %v1609_v1 }
 0x1ee   : > { %565 = vperm.xlu0 %1261, %v562_v12   ;;  %794 = vrot.lane.b32.xlu1 %v606_v20, %s1623_s19 }
 0x1f2   : > { %829 = vperm.xlu0 %1261, %v826_v34  }
 0x24b   : > { %v532_v44 = vpop.permute.xlu0 %531 }
 0x24c   : > { %541 = vst.msk [vmem:[#allocation2] sm:$0xff] %vm540_vm2, %v532_v44  ;;  %v534_v45 = vpop.permute.xlu1 %533 }
 0x24d   : > { %v2088_v46 = vsel %vm535_vm3, %v532_v44, %v534_v45  ;;  %543 = vst.msk [vmem:[#allocation2 + $0x10] sm:$0xff] %vm535_vm3, %v534_v45 }
 0x24e   : > { %v681_v55 = vmul.f32 %v678_v38, %v2088_v46  ;;  %v580_v4 = vmul.f32 %v577_v35, %v2088_v46  ;;  %v617_v9 = vmul.f32 %v612_v7, %v2088_v46  ;;  %v651_v30 = vmul.f32 %v646_v26, %v2088_v46 }
 0x250   : > { %v700_v54 = vpop.permute.xlu1 %699  ;;  %v624_v14 = vmul.f32 %v2078_v39, %v617_v9  ;;  %v658_v34 = vmul.f32 %v2076_v36, %v651_v30 }
 0x253   : > { %v2090_v47 = vld [vmem:[#allocation2] sm:$0xff] }
 0x254   : > { %v579_v48 = vmul.f32 %v577_v35, %v2090_v47  ;;  %v2093_v49 = vld [vmem:[#allocation2 + $0x10] sm:$0xff]  ;;  %v650_v51 = vmul.f32 %v2086_v43, %v2090_v47  ;;  %v680_v52 = vmul.f32 %v678_v38, %v2090_v47  ;;  %v708_v57 = vmul.f32 %v700_v54, %v2090_v47 }
 0x255   : > { %v581_v50 = vmul.f32 %v577_v35, %v2093_v49  ;;  %v652_v63 = vmul.f32 %v2080_v40, %v2093_v49  ;;  %v682_v0 = vmul.f32 %v678_v38, %v2093_v49  ;;  %v616_v5 = vmul.f32 %v608_v37, %v2090_v47 }
 0x256   : > { %585 = vrot.lane.b32.xlu1 %v579_v48, %s1624_s2  ;;  %v657_v53 = vmul.f32 %v2076_v36, %v650_v51  ;;  %v618_v17 = vmul.f32 %v2082_v41, %v2093_v49 }
 0x257   : > { %589 = vrot.lane.b32.xlu0 %v581_v50, %s1624_s2  ;;  %v659_v3 = vmul.f32 %v2076_v36, %v652_v63  ;;  %v623_v12 = vmul.f32 %v2078_v39, %v616_v5 }
 0x258   : > { %v625_v25 = vmul.f32 %v2078_v39, %v618_v17 }
 0x25a   : > { %686 = vrot.lane.b32.xlu1 %v680_v52, %s1625_s3 }
 0x25b   : > { %663 = vrot.lane.b32.xlu0 %v657_v53, %s1626_s20 }
 0x25c   : > { %v2104_v56 = vpop.permute.xlu0 %712 }
 0x25d   : > { %v715_v58 = vmul.f32 %v2104_v56, %v708_v57 }
 0x25f   : > { %688 = vrot.lane.b32.xlu0 %v681_v55, %s1625_s3 }
 0x260   : > { %v702_v61 = vpop.permute.xlu0 %701 }
 0x261   : > { %v2108_v59 = vpop.permute.xlu1 %770  ;;  %v710_v2 = vmul.f32 %v702_v61, %v2093_v49  ;;  %v704_v31 = vsel %vm703_vm6, %v700_v54, %v702_v61  ;;  %v561_v61 = vmul.f32 %v2066_v24, %v2088_v46 }
 0x262   : > { %v773_v60 = vmul.f32 %v2108_v59, %v2090_v47  ;;  %v774_v62 = vmul.f32 %v2108_v59, %v2088_v46  ;;  %v709_v33 = vmul.f32 %v704_v31, %v2088_v46  ;;  %v775_v38 = vmul.f32 %v2108_v59, %v2093_v49 }
 0x263   : > { %721 = vrot.lane.b32.xlu0 %v715_v58, %s1627_s18  ;;  %v717_v8 = vmul.f32 %v2104_v56, %v710_v2 }
 0x264   : > { %779 = vrot.lane.b32.xlu1 %v773_v60, %s1628_s9  ;;  %v735_v6 = vpop.permute.xlu0 %734  ;;  %v716_v35 = vmul.f32 %v2104_v56, %v709_v33  ;;  %v560_v60 = vmul.f32 %v2090_v47, %v2064_v22 }
 0x265   : > { %v737_v1 = vpop.permute.xlu1 %736  ;;  %v743_v10 = vmul.f32 %v735_v6, %v2090_v47 }
 0x266   : > { %v739_v16 = vsel %vm738_vm5, %v735_v6, %v737_v1  ;;  %v745_v21 = vmul.f32 %v737_v1, %v2093_v49 }
 0x267   : > { %781 = vrot.lane.b32.xlu0 %v774_v62, %s1628_s9  ;;  %v750_v15 = vmul.f32 %v2084_v42, %v743_v10  ;;  %v744_v19 = vmul.f32 %v739_v16, %v2088_v46 }
 0x268   : > { %690 = vrot.lane.b32.xlu1 %v682_v0, %s1625_s3  ;;  %v805_v18 = vpop.permute.xlu0 %804  ;;  %v752_v29 = vmul.f32 %v2084_v42, %v745_v21 }
 0x269   : > { %v793_v11 = vpop.permute.xlu1 %792  ;;  %v751_v28 = vmul.f32 %v2084_v42, %v744_v19 }
 0x26a   : > { %v800_v13 = vmul.f32 %v793_v11, %v2090_v47 }
 0x26b   : > { %667 = vrot.lane.b32.xlu0 %v659_v3, %s1626_s20 }
 0x26c   : > { %587 = vrot.lane.b32.xlu1 %v580_v4, %s1624_s2  ;;  %v807_v20 = vmul.f32 %v805_v18, %v800_v13  ;;  %s2338_s2 = sld [smem:[#allocation38_spill]] }
 0x26d   : > { %v795_v23 = vpop.permute.xlu1 %794  ;;  %v566_v41 = vpop.permute.xlu0 %565 }
 0x26e   : > { %v802_v27 = vmul.f32 %v795_v23, %v2093_v49  ;;  %v796_v37 = vsel %vm527_vm1, %v793_v11, %v795_v23  ;;  %v568_v0 = vmul.f32 %v566_v41, %v560_v60  ;;  %v569_v1 = vmul.f32 %v566_v41, %v561_v61 }
 0x26f   : > { %725 = vrot.lane.b32.xlu0 %v717_v8, %s1627_s18  ;;  %v801_v39 = vmul.f32 %v796_v37, %v2088_v46 }
 0x270   : > { %629 = vrot.lane.b32.xlu1 %v623_v12, %s1629_s27  ;;  %v809_v32 = vmul.f32 %v805_v18, %v802_v27 }
 0x271   : > { %v808_v40 = vmul.f32 %v805_v18, %v801_v39  ;;  %v2157_v36 = vpop.permute.xlu0 %829 }
 0x272   : > { %s2173_s3 = scalar_lea.hbm %s2338_s2, %s1061_s13 }
 0x273   : > { %631 = vrot.lane.b32.xlu0 %v624_v14, %s1629_s27 }
 0x274   : > { %756 = vrot.lane.b32.xlu1 %v750_v15, %s1630_s15 }
 0x277   : > { %813 = vrot.lane.b32.xlu0 %v807_v20, %s1631_s4 }
 0x278   : > { %633 = vrot.lane.b32.xlu1 %v625_v25, %s1629_s27 }
 0x27b   : > { %758 = vrot.lane.b32.xlu0 %v751_v28, %s1630_s15 }
 0x27c   : > { %760 = vrot.lane.b32.xlu1 %v752_v29, %s1630_s15 }
 0x27f   : > { %817 = vrot.lane.b32.xlu0 %v809_v32, %s1631_s4 }
 0x280   : > { %665 = vrot.lane.b32.xlu1 %v658_v34, %s1626_s20  ;;  %s837_s20 = scalar_lea.sflag [#allocation5], %s436_s7 }
 0x284   : > { %723 = vrot.lane.b32.xlu1 %v716_v35, %s1627_s18  ;;  %s1440_s18 = scalar_lea.vmem %s2175_s0, 256 }
 0x285   : > { %p1441_p2 = scmp.ne.s32.totalorder %s2175_s0, %s1440_s18 }
 0x287   : > { %p1442_p12 = pnand %p1441_p2, %p2339_p9 }
 0x288   : > { %783 = vrot.lane.b32.xlu1 %v775_v38, %s1628_s9  ;;  %s1632_s9 = smov [#allocation14]  }
 0x289   : > { %p1443_p4 = pneg %p1442_p12  ;;  %s1444_s27 = sshll.u32 %s1632_s9, 4  ;;  %s1445_s27 = int_to_ptr.vmem [resolvable:$false] %s1444_s27 }
 0x28a   : > { %s1446_s15 = scalar_lea.vmem %s1445_s27, 512  ;;  %p1447_p5 = scmp.lt.s32.totalorder %s2175_s0, %s1445_s27 }
 0x28b   : > { %p1448_p13 = scmp.lt.s32.totalorder %s1446_s15, %s1440_s18 }
 0x28c   : > { %815 = vrot.lane.b32.xlu1 %v808_v40, %s1631_s4 }
 0x28d   : > { %p1449_p3 = por %p1448_p13, %p1447_p5 }
 0x28f   : > { %p1450_p0 = pnand %p1449_p3, %p1443_p4 }
 0x2c8   : > { %v586_v43 = vpop.permute.xlu1 %585 }
 0x2c9   : > { %v590_v42 = vpop.permute.xlu0 %589 }
 0x2cc   : > { %v687_v48 = vpop.permute.xlu1 %686 }
 0x2cd   : > { %v664_v44 = vpop.permute.xlu0 %663 }
 0x2d1   : > { %v689_v45 = vpop.permute.xlu0 %688 }
 0x2d2   : > { %v693_v11 = vsel %vm692_vm10, %v687_v48, %v689_v45 }
 0x2d5   : > { %v722_v50 = vpop.permute.xlu0 %721 }
 0x2d6   : > { %v780_v51 = vpop.permute.xlu1 %779 }
 0x2d9   : > { %v782_v52 = vpop.permute.xlu0 %781 }
 0x2da   : > { %v691_v53 = vpop.permute.xlu1 %690  ;;  %v786_v29 = vsel %vm785_vm13, %v780_v51, %v782_v52 }
 0x2db   : > { %v694_v12 = vsel %vm692_vm10, %v689_v45, %v691_v53 }
 0x2dd   : > { %v668_v54 = vpop.permute.xlu0 %667 }
 0x2de   : > { %v588_v49 = vpop.permute.xlu1 %587 }
 0x2df   : > { %v592_v62 = vsel %vm591_vm7, %v586_v43, %v588_v49  ;;  %v593_v63 = vsel %vm591_vm7, %v588_v49, %v590_v42 }
 0x2e0   : > { %v596_v5 = vadd.f32 %v592_v62, %v568_v0  ;;  %v597_v6 = vadd.f32 %v593_v63, %v569_v1 }
 0x2e1   : > { %v726_v56 = vpop.permute.xlu0 %725 }
 0x2e2   : > { %v630_v55 = vpop.permute.xlu1 %629 }
 0x2e5   : > { %v632_v58 = vpop.permute.xlu0 %631 }
 0x2e6   : > { %v757_v57 = vpop.permute.xlu1 %756  ;;  %v636_v3 = vsel %vm635_vm8, %v630_v55, %v632_v58 }
 0x2e7   : > { %v640_v8 = vadd.f32 %v636_v3, %v596_v5 }
 0x2e9   : > { %v814_v7 = vpop.permute.xlu0 %813 }
 0x2ea   : > { %v634_v59 = vpop.permute.xlu1 %633 }
 0x2eb   : > { %v637_v4 = vsel %vm635_vm8, %v632_v58, %v634_v59 }
 0x2ec   : > { %v641_v9 = vadd.f32 %v637_v4, %v597_v6 }
 0x2ed   : > { %v759_v13 = vpop.permute.xlu0 %758 }
 0x2ee   : > { %v761_v2 = vpop.permute.xlu1 %760  ;;  %v763_v21 = vsel %vm762_vm12, %v757_v57, %v759_v13 }
 0x2ef   : > { %v764_v23 = vsel %vm762_vm12, %v759_v13, %v761_v2 }
 0x2f1   : > { %v818_v30 = vpop.permute.xlu0 %817 }
 0x2f2   : > { %v666_v22 = vpop.permute.xlu1 %665 }
 0x2f3   : > { %v670_v47 = vsel %vm669_vm9, %v664_v44, %v666_v22  ;;  %v671_v10 = vsel %vm669_vm9, %v666_v22, %v668_v54 }
 0x2f4   : > { %v674_v24 = vadd.f32 %v670_v47, %v640_v8  ;;  %v675_v46 = vadd.f32 %v671_v10, %v641_v9 }
 0x2f6   : > { %v724_v14 = vpop.permute.xlu1 %723  ;;  %v697_v15 = vadd.f32 %v693_v11, %v674_v24  ;;  %v698_v16 = vadd.f32 %v694_v12, %v675_v46 }
 0x2f7   : > { %v728_v17 = vsel %vm727_vm11, %v722_v50, %v724_v14  ;;  %v729_v18 = vsel %vm727_vm11, %v724_v14, %v726_v56 }
 0x2f8   : > { %v732_v19 = vadd.f32 %v728_v17, %v697_v15  ;;  %v733_v20 = vadd.f32 %v729_v18, %v698_v16 }
 0x2fa   : > { %v767_v25 = vadd.f32 %v763_v21, %v732_v19  ;;  %v784_v26 = vpop.permute.xlu1 %783  ;;  %v768_v27 = vadd.f32 %v764_v23, %v733_v20 }
 0x2fb   : > { %v787_v28 = vsel %vm785_vm13, %v782_v52, %v784_v26 }
 0x2fc   : > { %v791_v31 = vadd.f32 %v787_v28, %v768_v27  ;;  %v790_v33 = vadd.f32 %v786_v29, %v767_v25 }
 0x2fe   : > { %v816_v32 = vpop.permute.xlu1 %815 }
 0x2ff   : > { %v820_v34 = vsel %vm819_vm14, %v814_v7, %v816_v32  ;;  %v821_v35 = vsel %vm819_vm14, %v816_v32, %v818_v30 }
 0x300   : > { %v824_v37 = vadd.f32 %v820_v34, %v790_v33  ;;  %v825_v38 = vadd.f32 %v821_v35, %v791_v31 }
 0x302   : > { %v832_v39 = vadd.f32 %v2157_v36, %v824_v37  ;;  %v833_v40 = vadd.f32 %v2157_v36, %v825_v38 }
 0x304   : > { %834 = vst [vmem:[%s438_s8] sm:$0xff] %v832_v39  ;;  %835 = vst [vmem:[%s438_s8 + $0x8] sm:$0xff] %v833_v40 }
 0x305   : > { %1453 = shalt.err (!%p1450_p0)
}
 0x306   : > { %s1454_s4 = scalar_lea.hbm %s2173_s3, 256  ;;  %s1458_s7 = scalar_lea.hbm %s2338_s2, 1024 }
 0x307   : > { %p1455_p10 = scmp.ne.s32.totalorder %s2173_s3, %s1454_s4  ;;  %p1459_p8 = scmp.lt.u32.totalorder %s2173_s3, %s2338_s2 }
 0x308   : > { %p1460_p11 = scmp.lt.u32.totalorder %s1458_s7, %s1454_s4  ;;  %p1462_p2 = scmp.lt.u32.totalorder %s1454_s4, %s2173_s3 }
 0x309   : > { %p1456_p7 = pnand %p1455_p10, %p2339_p9 }
 0x30a   : > { %p1461_p1 = por %p1460_p11, %p1459_p8 }
 0x30b   : > { %p1457_p6 = pneg %p1456_p7 }
 0x30c   : > { %p1463_p12 = por %p1462_p2, %p1461_p1 }
 0x30e   : > { %p1464_p4 = pnand %p1463_p12, %p1457_p6 }
 0x310   : > { %1467 = shalt.err (!%p1464_p4)
}
 0x311   : > { %1083 = dma.vmem_to_hbm [thread:$0]  (%p2339_p9), %s2175_s0, 256, %s2173_s3, %s837_s20  }
 0x312 PF: > { %s2340_s16 = sld [smem:[#allocation20_spill]]  ;;  %s2341_s21 = sld [smem:[#allocation30_spill]] }
 0x313   : > { %p1112_p5 = scmp.ge.s32.totalorder %s1598_s10, 2 }
 0x318   : > { %s865_s13 = sand.u32 1, %s2340_s16   ;;  %p2342_p13 = scmp.ne.s32.totalorder %s2341_s21, 0 }
 0x319   : > { %s866_s8 = scalar_lea.sflag [#allocation5], %s865_s13 }
 0x31a   : > { %p1106_p3 = pnand %p1112_p5, %p2342_p13 }
 0x31c   : > { %1541 = dma.done.wait (!%p1106_p3), %s866_s8, 256  }
 0x31d   : > { %1543 = vsyncadd (!%p1106_p3), %s866_s8, 4294967040  ;;  %s29_s10 = sadd.s32 1, %s1598_s10   ;;  %s2344_s1 = sld [smem:[#allocation21_spill]] }
 0x31e   : > { %p2205_p0 = scmp.ge.s32.totalorder %s29_s10, 6   ;;  %s2345_s26 = sld [smem:[#allocation27_spill]] }
 0x31f   : > { %s2346_s0 = sld [smem:[#allocation24_spill]]  ;;  %s2347_s7 = sld [smem:[#allocation25_spill]] }
 0x320   : > { %s2348_s8 = sld [smem:[#allocation26_spill]]  ;;  %s2349_s9 = sld [smem:[#allocation31_spill]] }
 0x321   : > { %s2350_s21 = smov %s1550_s22  ;;  %s2351_s22 = smov %s1554_s23 }
 0x322   : > { %s2352_s23 = smov %s1934_s6  ;;  %s2353_s24 = smov %s1562_s25 }
 0x323   : > { %s2354_s25 = smov %s2344_s1  ;;  %s2355_s27 = smov %s1574_s28 }
 0x324   : > { %s2356_s28 = smov %s1578_s29  ;;  %s2357_s29 = smov %s1929_s30 }
 0x325   : > { %s2358_s30 = smov %s2346_s0  ;;  %28 = sbr.rel (!%p2205_p0) target bundleno = 23 (0x17), region = 142 }
 0x32c   :  { %871 = vsyncpa [#allocation4], 1 }
 0x32d   :  { %873 = vsyncpa [#allocation4 + $0x1], 1 }
 0x32e   :  { %874 = vsyncpa [#allocation7], 1 }
 0x32f   :  { %876 = vsyncpa [#allocation7 + $0x1], 1 }
 0x330   :  { %877 = vsyncpa [#allocation10], 1 }
 0x331   :  { %879 = vsyncpa [#allocation10 + $0x1], 1 }
 0x332   :  { %880 = vsyncpa [#allocation13], 1 }
 0x333   :  { %881 = vsyncpa [#allocation5], 1 }
 0x334   :  { %883 = vsyncpa [#allocation5 + $0x1], 1 }

// kernel: attention2_forward.7
= control target key start
LH: loop header
LB: loop body
LE: loop exit
PB: predicated region body
PF: predicated region fallthrough
CT: control target
= control target key end

     0   :  { %s778_s15 = smov 0   ;;  %s780_s16 = smov 0   ;;  %s899_s0 = inlined_call_operand.vmem [shape: f32[2,16,16], index: 0, kind: input, shape index: {}]   ;;  %s900_s1 = inlined_call_operand.vmem [shape: f32[2,32,256], index: 1, kind: input, shape index: {}]   ;;  %s901_s2 = inlined_call_operand.vmem [shape: f32[16,16], index: 2, kind: input, shape index: {}]   ;;  %s902_s3 = inlined_call_operand.vmem [shape: f32[16,1], index: 3, kind: input, shape index: {}]   ;;  %s903_s4 = inlined_call_operand.vmem [shape: f32[2,16,256], index: 4, kind: output, shape index: {}]  }
   0x1   :  { %s782_s17 = smov 0   ;;  %s784_s18 = smov 0  }
   0x2   :  { %s786_s19 = smov 0   ;;  %s788_s20 = smov 0  }
   0x3   :  { %s790_s21 = smov 0  }
   0x4 LB: > { %s23_s22 = sadd.s32 1, %s742_s19  ;;  %s26_s23 = sadd.s32 1, %s746_s20  ;;  %s750_s21 = sphi %s790_s21, %s14_s21   ;;  %s746_s20 = sphi %s788_s20, %s910_s20   ;;  %s742_s19 = sphi %s786_s19, %s909_s19   ;;  %s738_s18 = sphi %s784_s18, %s908_s18   ;;  %s734_s17 = sphi %s782_s17, %s907_s17   ;;  %s730_s16 = sphi %s780_s16, %s906_s16   ;;  %s726_s15 = sphi %s778_s15, %s905_s15  }
   0x5   : > { %p24_p0 = scmp.ge.s32.totalorder %s23_s22, 2  ;;  %s584_s24 = sadd.s32 4294967295, %s750_s21  }
   0x6   : > { %p68_p1 = scmp.ne.s32.totalorder %s730_s16, %s726_s15  ;;  %p69_p2 = scmp.eq.s32.totalorder %s750_s21, 0 }
   0x7   : > { %s912_s22 = smov (%p24_p0, %s23_s22), 0  ;;  %s914_s23 = smov (!%p24_p0, %s26_s23), %s746_s20 }
   0x8   : > { %p28_p3 = scmp.ge.s32.totalorder %s914_s23, 2  ;;  %p142_p4 = scmp.eq.s32.totalorder %s584_s24, 3 }
   0x9   : > { %s57_s25 = ssub.s32 %s742_s19, %s912_s22  ;;  %p70_p5 = por %p69_p2, %p68_p1 }
   0xa   : > { %s916_s23 = smov (%p28_p3, %s914_s23), 0  ;;  %p826_p6 = por %p142_p4, %p68_p1 }
   0xb   : > { %s56_s27 = ssub.s32 %s746_s20, %s916_s23  ;;  %s61_s29 = sadd.s32 1, %s730_s16 }
   0xc   : > { %s58_s28 = sor.u32 %s57_s25, %s56_s27  ;;  %p587_p8 = scmp.ge.s32.totalorder %s750_s21, 4 }
   0xd   : > { %p59_p7 = scmp.eq.s32.totalorder %s58_s28, 0 }
   0xe   : > { %170 = sbr.rel (%p587_p8) target bundleno = 28 (0x1c), region = 24 }
   0xf   : > { %s834_s30 = scalar_select %p59_p7, %s730_s16, %s61_s29  }
  0x15   : > { %181 = sbr.rel (!%p70_p5) target bundleno = 28 (0x1c), region = 32  ;;  %s183_s5 = sand.u32 (%p70_p5), 1, %s730_s16  }
  0x16   : > { %s589_s6 = sshll.u32 (%p70_p5), %s746_s20, 3  ;;  %s588_s7 = sshll.u32 (%p70_p5), %s183_s5, 4 }
  0x17   : > { %s516_s8 = sadd.s32 (%p70_p5), %s742_s19, %s589_s6  ;;  %s185_s13 = scalar_lea.vmem (%p70_p5), [#allocation2], %s588_s7 }
  0x18   : > { %s590_s9 = sshll.u32 (%p70_p5), %s516_s8, 3 }
  0x19   : > { %s518_s12 = scalar_lea.vmem (%p70_p5), %s900_s1, %s590_s9 }
  0x1a   : > { %v591_v0 = vld [vmem:[%s518_s12 + $0x20] sm:$0xff] (%p70_p5)  ;;  %v592_v1 = vld [vmem:[%s518_s12 + $0x30] sm:$0xff] (%p70_p5) }
  0x1b   : > { %221 = vst [vmem:[%s185_s13] sm:$0xff] (%p70_p5), %v591_v0  ;;  %223 = vst [vmem:[%s185_s13 + $0x8] sm:$0xff] (%p70_p5), %v592_v1 }
  0x1c PF: > { %p593_p9 = scmp.ge.s32.totalorder %s750_s21, 1  ;;  %p228_p10 = scmp.lt.s32.totalorder %s750_s21, 5 }
  0x1e   : > { %p229_p11 = pnand %p593_p9, %p228_p10 }
  0x1f   : > { %s235_s14 = sand.u32 (!%p229_p11), 1, %s726_s15   ;;  %p264_p12 = scmp.lt.s32.totalorder (!%p229_p11), %s738_s18, 1  ;;  %vm273_vm0 = vcmask (!%p229_p11), 130048   ;;  %v355_v7 = vld [vmem:[%s901_s2] sm:$0xff] (!%p229_p11)  ;;  %v752_v9 = vmov (!%p229_p11), 0   ;;  %v358_v10 = vld [vmem:[%s902_s3 + $0x8] sm:$0xff] (!%p229_p11) }
  0x20   : > { %232 = sbr.rel (%p229_p11) target bundleno = 488 (0x1e8), region = 70  ;;  %s847_s24 = sshll.u32 (!%p229_p11), %s235_s14, 4  ;;  %627 = vmatprep.mubr.msk.f32.mxu1 (!%p229_p11), %vm273_vm0, %v355_v7  ;;  %v357_v8 = vld [vmem:[%s902_s3] sm:$0xff] (!%p229_p11)  ;;  %695 = vset.pattern.permute.xlu0 (!%p229_p11), %v752_v9  ;;  %v356_v14 = vld [vmem:[%s901_s2 + $0x8] sm:$0xff] (!%p229_p11) }
  0x21   : > { %s237_s25 = scalar_lea.vmem (!%p229_p11), [#allocation2], %s847_s24  ;;  %361 = vperm.xlu0 (!%p229_p11), %695, %v357_v8   ;;  %s263_s14 = scalar_lea.vmem (!%p229_p11), [#allocation3], %s847_s24 }
  0x22   : > { %v269_v2 = vld [vmem:[%s237_s25] sm:$0xff] (!%p229_p11)  ;;  %v270_v3 = vld [vmem:[%s237_s25 + $0x8] sm:$0xff] (!%p229_p11) }
  0x23   : > { %v630_v4 = vpack.c.bf16 (!%p229_p11), %v270_v3, %v269_v2 }
  0x25   : > { %631 = vmatprep.subr.bf16.mxu0 (!%p229_p11), %v630_v4  ;;  %366 = vperm.xlu0 (!%p229_p11), %695, %v358_v10  }
  0x26   : > { %633 = vmatpush3.bf16.msra.mxu0 (!%p229_p11), %v630_v4 }
  0x27   : > { %s265_s27 = scalar_select %p264_p12, %s738_s18, 1 }
  0x28   : > { %s603_s25 = sshll.u32 (%p826_p6), %s738_s18, 2 }
  0x29   : > { %s607_s28 = sshll.u32 %s265_s27, 4  ;;  %s460_s27 = sadd.s32 (%p826_p6), %s734_s17, %s603_s25 }
  0x2a   : > { %s268_s6 = scalar_lea.vmem %s899_s0, %s607_s28  ;;  %s604_s28 = sshll.u32 (%p826_p6), %s460_s27, 3 }
  0x2b   : > { %v271_v5 = vld [vmem:[%s268_s6] sm:$0xff]  ;;  %v272_v6 = vld [vmem:[%s268_s6 + $0x8] sm:$0xff]  ;;  %s462_s6 = scalar_lea.vmem (%p826_p6), %s903_s4, %s604_s28 }
  0x2c   : > { %620 = vmatprep.mubr.msk.f32.mxu0 %vm273_vm0, %v271_v5 }
  0x2d   : > { %621 = vmatmul.mubr.msk.f32.vlgmr.msra.gmra.mrb[0].mxu0 %vm273_vm0, %v272_v6 }
  0xa0   : > { %v362_v15 = vpop.permute.xlu0 %361 }
  0xa4   : > { %v367_v16 = vpop.permute.xlu0 %366 }
 0x100   : > { %v622_v11 = vpop.f32.mrb[0].mxu0 }
 0x101   : > { %v346_v12 = vpop.f32.mrb[1].mxu0 }
 0x102   : > { %v634_v13 = vpack.c.bf16 %v622_v11, %v346_v12 }
 0x104   : > { %635 = vmatprep.subr.bf16.mxu1 %v634_v13 }
 0x105   : > { %637 = vmatpush3.bf16.msra.mxu1 %v634_v13 }
 0x108   : > { %628 = vmatmul.mubr.msk.f32.vlgmr.msra.gmra.mrb[0].mxu1 %vm273_vm0, %v356_v14 }
 0x1d9   : > { %458 = sbr.rel (!%p826_p6) target bundleno = 488 (0x1e8), region = 78 }
 0x1db   : > { %v629_v17 = vpop.f32.mrb[0].mxu1 }
 0x1dc   : > { %v447_v18 = vadd.f32 %v629_v17, %v367_v16  ;;  %v441_v19 = vpop.f32.mrb[1].mxu1 }
 0x1dd   : > { %v442_v20 = vadd.f32 %v441_v19, %v362_v15 }
 0x1de   : > { %451 = vst [vmem:[%s263_s14 + $0x8] sm:$0xff] %v447_v18 }
 0x1df   : > { %450 = vst [vmem:[%s263_s14] sm:$0xff] %v442_v20 }
 0x1e5   : > { %v494_v22 = vld [vmem:[%s263_s14 + $0x8] sm:$0xff] }
 0x1e6   : > { %v492_v21 = vld [vmem:[%s263_s14] sm:$0xff]  ;;  %495 = vst [vmem:[%s462_s6 + $0x10] sm:$0xff] %v494_v22 }
 0x1e7   : > { %493 = vst [vmem:[%s462_s6] sm:$0xff] %v492_v21 }
 0x1e8 PF: > { %s14_s21 = sadd.s32 1, %s750_s21   ;;  %s905_s15 = smov %s730_s16 }
 0x1e9   : > { %p11_p13 = scmp.ge.s32.totalorder %s14_s21, 6   ;;  %s906_s16 = smov %s834_s30 }
 0x1ea   : > { %s907_s17 = smov %s742_s19  ;;  %s908_s18 = smov %s746_s20 }
 0x1eb   : > { %s909_s19 = smov %s912_s22  ;;  %s910_s20 = smov %s916_s23 }
 0x1ec   :  { %13 = sbr.rel (!%p11_p13) target bundleno = 4 (0x4), region = 150 }

// kernel: attention2_forward.6
= control target key start
LH: loop header
LB: loop body
LE: loop exit
PB: predicated region body
PF: predicated region fallthrough
CT: control target
= control target key end

     0   :  { %s1546_s0 = inlined_call_operand.hbm [shape: f32[2,16,256], index: 0, kind: input, shape index: {}]   ;;  %s1547_s1 = inlined_call_operand.hbm [shape: f32[2,32,256], index: 1, kind: input, shape index: {}]   ;;  %s1548_s2 = inlined_call_operand.hbm [shape: f32[16,1], index: 2, kind: input, shape index: {}]   ;;  %s1549_s3 = inlined_call_operand.hbm [shape: f32[16,16], index: 3, kind: input, shape index: {}]   ;;  %s1550_s4 = inlined_call_operand.hbm [shape: f32[16,16], index: 4, kind: input, shape index: {}]   ;;  %s1551_s5 = inlined_call_operand.vmem [shape: f32[2,16,16], index: 5, kind: output, shape index: {}]  }
   0x1   :  { %1564 = sst [smem:[#allocation20_spill]] %s1546_s0 }
   0x2   :  { %1565 = sst [smem:[#allocation21_spill]] %s1548_s2 }
   0x3   :  { %1566 = sst [smem:[#allocation22_spill]] %s1549_s3 }
   0x4   :  { %1567 = sst [smem:[#allocation23_spill]] %s1550_s4 }
   0x5   :  { %10 = vsyncpa [#allocation6], 0 }
   0x6   :  { %12 = vsyncpa [#allocation6 + $0x1], 0 }
   0x7   :  { %13 = vsyncpa [#allocation8], 0 }
   0x8   :  { %15 = vsyncpa [#allocation8 + $0x1], 0 }
   0x9   :  { %16 = vsyncpa [#allocation11], 0  ;;  %s1209_s18 = smov 0   ;;  %s1211_s19 = smov 0  }
   0xa   :  { %s1213_s20 = smov 0   ;;  %s1215_s21 = smov 0  }
   0xb   :  { %s1217_s22 = smov 0   ;;  %s1219_s23 = smov 0  }
   0xc   :  { %s1221_s24 = smov 0   ;;  %s1223_s25 = smov 0  }
   0xd LB: > { %1568 = sst [smem:[#allocation17_spill]] %s1151_s21  ;;  %s1555_s26 = sadd.s32 4294967295, %s1167_s25   ;;  %s1167_s25 = sphi %s1223_s25, %s22_s25   ;;  %s1163_s24 = sphi %s1221_s24, %s1599_s24   ;;  %s1159_s23 = sphi %s1219_s23, %s1598_s23   ;;  %s1155_s22 = sphi %s1217_s22, %s1597_s22   ;;  %s1151_s21 = sphi %s1215_s21, %s1596_s21   ;;  %s1147_s20 = sphi %s1213_s20, %s1595_s20   ;;  %s1143_s19 = sphi %s1211_s19, %s1594_s19   ;;  %s1139_s18 = sphi %s1209_s18, %s1593_s18  }
   0xe   : > { %p50_p0 = scmp.ne.s32.totalorder %s1147_s20, %s1143_s19  ;;  %p51_p1 = scmp.eq.s32.totalorder %s1167_s25, 0 }
   0xf   : > { %p56_p2 = scmp.ne.s32.totalorder %s1143_s19, %s1139_s18  ;;  %p1255_p3 = scmp.eq.s32.totalorder %s1555_s26, 0 }
  0x10   : > { %p52_p4 = por %p51_p1, %p50_p0  ;;  %p759_p5 = scmp.ge.s32.totalorder %s1167_s25, 1 }
  0x11   : > { %s1569_s28 = scalar_select %p1255_p3, 1, 0 }
  0x12   : > { %p1262_p6 = por %p1255_p3, %p56_p2  ;;  %p184_p7 = scmp.lt.s32.totalorder %s1167_s25, 5 }
  0x13   : > { %s1169_s6 = smov [#allocation9]   ;;  %p851_p10 = scmp.lt.s32.totalorder %s1167_s25, 4 }
  0x14   : > { %s1570_s29 = scalar_select %p1262_p6, 1, 0 }
  0x15   : > { %p1267_p8 = pnand %p759_p5, %p184_p7  ;;  %s196_s7 = sshll.u32 %s1169_s6, 4  ;;  %s1271_s7 = int_to_ptr.vmem [resolvable:$true] %s196_s7 }
  0x16   : > { %p1282_p12 = pnand %p851_p10, %p52_p4  ;;  %s1170_s10 = smov [#allocation10]  }
  0x17   : > { %s1571_s30 = scalar_select %p1267_p8, 1, 0 }
  0x18   : > { %p831_p9 = pneg %p1267_p8  ;;  %s209_s11 = sshll.u32 %s1170_s10, 4  ;;  %s1286_s11 = int_to_ptr.vmem [resolvable:$true] %s209_s11 }
  0x19   : > { %s1573_s9 = scalar_select %p1282_p12, 1, 0 }
  0x1a   : > { %p1278_p11 = pnand %p831_p9, %p1255_p3  ;;  %s1574_s2 = sld [smem:[#allocation21_spill]] }
  0x1c   : > { %p1296_p0 = pneg %p1278_p11 }
  0x20   : > { %s945_s14 = scalar_lea.hbm %s1574_s2, 256 }
  0x21   : > { %p946_p13 = scmp.ne.s32.totalorder %s1574_s2, %s945_s14  ;;  %p952_p4 = scmp.lt.u32.totalorder %s945_s14, %s1574_s2 }
  0x23   : > { %p948_p1 = pnand %p1296_p0, %p946_p13 }
  0x25   : > { %p949_p2 = pneg %p948_p1 }
  0x27   : > { %p954_p5 = pnand %p952_p4, %p949_p2 }
  0x29   : > { %957 = shalt.err (!%p954_p5)
}
  0x2a   : > { %s958_s10 = scalar_lea.vmem %s1271_s7, 256  ;;  %p966_p3 = scmp.lt.s32.totalorder %s1271_s7, %s1271_s7 }
  0x2b   : > { %p959_p7 = scmp.ne.s32.totalorder %s1271_s7, %s958_s10  ;;  %p967_p6 = scmp.lt.s32.totalorder %s958_s10, %s958_s10 }
  0x2d   : > { %p961_p9 = pnand %p959_p7, %p1296_p0  ;;  %p968_p13 = por %p967_p6, %p966_p3 }
  0x2f   : > { %p962_p10 = pneg %p961_p9 }
  0x31   : > { %p969_p1 = pnand %p968_p13, %p962_p10 }
  0x33   : > { %972 = shalt.err (!%p969_p1)
}
  0x34   : > { %s1558_s12 = smov 128   ;;  %s1560_s13 = smov 8  }
  0x35   : > { %834 = dma.hbm_to_vmem [thread:$0]  (!%p1278_p11), %s1574_s2, 256, %s1271_s7, [#allocation8], %s1558_s12, %s1558_s12, %s1560_s13  }
  0x36   : > { %s1576_s3 = sld [smem:[#allocation22_spill]] }
  0x3c   : > { %s973_s6 = scalar_lea.hbm %s1576_s3, 256 }
  0x3d   : > { %p974_p3 = scmp.ne.s32.totalorder %s1576_s3, %s973_s6  ;;  %p980_p4 = scmp.lt.u32.totalorder %s973_s6, %s1576_s3 }
  0x3f   : > { %p976_p6 = pnand %p974_p3, %p1296_p0 }
  0x41   : > { %p977_p2 = pneg %p976_p6 }
  0x43   : > { %p982_p5 = pnand %p980_p4, %p977_p2 }
  0x45   : > { %985 = shalt.err (!%p982_p5)
}
  0x46   : > { %s986_s7 = scalar_lea.vmem %s1286_s11, 256  ;;  %p994_p13 = scmp.lt.s32.totalorder %s1286_s11, %s1286_s11 }
  0x47   : > { %p987_p7 = scmp.ne.s32.totalorder %s1286_s11, %s986_s7  ;;  %p995_p1 = scmp.lt.s32.totalorder %s986_s7, %s986_s7 }
  0x49   : > { %p989_p9 = pnand %p987_p7, %p1296_p0  ;;  %p996_p3 = por %p995_p1, %p994_p13 }
  0x4b   : > { %p990_p10 = pneg %p989_p9 }
  0x4d   : > { %p997_p6 = pnand %p996_p3, %p990_p10 }
  0x4f   : > { %1000 = shalt.err (!%p997_p6)
}
  0x50   : > { %837 = dma.hbm_to_vmem [thread:$0]  (!%p1278_p11), %s1576_s3, 256, %s1286_s11, [#allocation11], %s1558_s12, %s1558_s12, %s1560_s13  }
  0x51   : > { %s1173_s27 = smov [#allocation12]   ;;  %s1577_s4 = sld [smem:[#allocation23_spill]] }
  0x52   : > { %s222_s14 = sshll.u32 %s1173_s27, 4  ;;  %s223_s14 = int_to_ptr.vmem [resolvable:$true] %s222_s14 }
  0x57   : > { %s1001_s18 = scalar_lea.hbm %s1577_s4, 256 }
  0x58   : > { %p1002_p2 = scmp.ne.s32.totalorder %s1577_s4, %s1001_s18  ;;  %p1008_p7 = scmp.lt.u32.totalorder %s1001_s18, %s1577_s4 }
  0x5a   : > { %p1004_p4 = pnand %p1002_p2, %p1296_p0 }
  0x5c   : > { %p1005_p5 = pneg %p1004_p4 }
  0x5e   : > { %p1010_p9 = pnand %p1008_p7, %p1005_p5 }
  0x60   : > { %1013 = shalt.err (!%p1010_p9)
}
  0x61   : > { %s1014_s11 = scalar_lea.vmem %s223_s14, 256  ;;  %p1022_p3 = scmp.lt.s32.totalorder %s223_s14, %s223_s14 }
  0x62   : > { %p1015_p10 = scmp.ne.s32.totalorder %s223_s14, %s1014_s11  ;;  %p1023_p6 = scmp.lt.s32.totalorder %s1014_s11, %s1014_s11 }
  0x64   : > { %p1017_p13 = pnand %p1015_p10, %p1296_p0  ;;  %p1024_p8 = por %p1023_p6, %p1022_p3 }
  0x66   : > { %p1018_p1 = pneg %p1017_p13 }
  0x68   : > { %p1025_p12 = pnand %p1024_p8, %p1018_p1 }
  0x6a   : > { %1028 = shalt.err (!%p1025_p12)
}
  0x6b   : > { %840 = dma.hbm_to_vmem [thread:$0]  (!%p1278_p11), %s1577_s4, 256, %s223_s14, [#allocation11], %s1558_s12, %s1558_s12, %s1560_s13  }
  0x6c   : > { %s31_s17 = sadd.s32 1, %s1159_s23  ;;  %s34_s26 = sadd.s32 1, %s1163_s24 }
  0x6d   : > { %p32_p8 = scmp.ge.s32.totalorder %s31_s17, 2  ;;  %s236_s27 = sand.u32 1, %s1147_s20  }
  0x6e   : > { %s1370_s8 = sshll.u32 %s236_s27, 4  ;;  %s765_s16 = sshll.u32 %s1163_s24, 2 }
  0x6f   : > { %s1601_s17 = smov (%p32_p8, %s31_s17), 0  ;;  %s1603_s26 = smov (!%p32_p8, %s34_s26), %s1163_s24 }
  0x70   : > { %1578 = sst [smem:[#allocation18_spill]] %s1601_s17  ;;  %s39_s15 = ssub.s32 %s1159_s23, %s1601_s17 }
  0x71   : > { %p36_p12 = scmp.ge.s32.totalorder %s1603_s26, 2  ;;  %s245_s18 = sadd.s32 %s1159_s23, %s765_s16 }
  0x72   : > { %s240_s6 = scalar_lea.vmem [#allocation5], %s1370_s8  ;;  %s766_s10 = sshll.u32 %s245_s18, 7 }
  0x73   : > { %s248_s14 = sshll.u32 %s240_s6, 4  ;;  %s1605_s26 = smov (%p36_p12, %s1603_s26), 0  ;;  %s1382_s14 = int_to_ptr.vmem [resolvable:$true] %s248_s14 }
  0x74   : > { %1579 = sst [smem:[#allocation19_spill]] %s1605_s26  ;;  %s38_s7 = ssub.s32 %s1163_s24, %s1605_s26 }
  0x75   : > { %s1580_s0 = sld [smem:[#allocation20_spill]]  ;;  %s1391_s12 = sor.u32 %s39_s15, %s38_s7 }
  0x76   : > { %p41_p11 = scmp.eq.s32.totalorder %s1391_s12, 0  ;;  %s1394_s16 = scalar_lea.sflag [#allocation6], %s236_s27 }
  0x77   : > { %p1581_p2 = scmp.ne.s32.totalorder %s1573_s9, 0 }
  0x79   : > { %p1031_p4 = pneg %p1581_p2 }
  0x7b   : > { %s1389_s21 = scalar_lea.hbm %s1580_s0, %s766_s10  ;;  %s1034_s11 = scalar_lea.hbm %s1580_s0, 1024 }
  0x7c   : > { %s1029_s6 = scalar_lea.hbm %s1389_s21, 256  ;;  %p1035_p9 = scmp.lt.u32.totalorder %s1389_s21, %s1580_s0 }
  0x7d   : > { %p1030_p0 = scmp.ne.s32.totalorder %s1389_s21, %s1029_s6  ;;  %p1036_p10 = scmp.lt.u32.totalorder %s1034_s11, %s1029_s6 }
  0x7e   : > { %p1038_p1 = scmp.lt.u32.totalorder %s1029_s6, %s1389_s21 }
  0x7f   : > { %p1032_p5 = pnand %p1031_p4, %p1030_p0  ;;  %p1037_p13 = por %p1036_p10, %p1035_p9 }
  0x81   : > { %p1033_p7 = pneg %p1032_p5  ;;  %p1039_p3 = por %p1038_p1, %p1037_p13 }
  0x83   : > { %p1040_p6 = pnand %p1039_p3, %p1033_p7 }
  0x85   : > { %1043 = shalt.err (!%p1040_p6)
}
  0x86   : > { %s1044_s27 = scalar_lea.vmem %s1382_s14, 256  ;;  %s1174_s15 = smov [#allocation5]  }
  0x87   : > { %p1045_p8 = scmp.ne.s32.totalorder %s1382_s14, %s1044_s27  ;;  %s1049_s7 = sshll.u32 %s1174_s15, 4  ;;  %s1050_s7 = int_to_ptr.vmem [resolvable:$false] %s1049_s7 }
  0x88   : > { %s1051_s13 = scalar_lea.vmem %s1050_s7, 512  ;;  %p1052_p5 = scmp.lt.s32.totalorder %s1382_s14, %s1050_s7 }
  0x89   : > { %p1047_p12 = pnand %p1045_p8, %p1031_p4  ;;  %p1053_p9 = scmp.lt.s32.totalorder %s1051_s13, %s1044_s27 }
  0x8b   : > { %p1048_p0 = pneg %p1047_p12  ;;  %p1054_p10 = por %p1053_p9, %p1052_p5 }
  0x8d   : > { %p1055_p13 = pnand %p1054_p10, %p1048_p0 }
  0x8f   : > { %1058 = shalt.err (!%p1055_p13)
}
  0x90   : > { %s1175_s6 = smov 256   ;;  %s1582_s18 = smov 8  }
  0x91   : > { %s1583_s10 = smov 128   ;;  %s1584_s11 = sadd.s32 1, %s1147_s20 }
  0x92   : > { %844 = dma.hbm_to_vmem [thread:$0]  (!%p1581_p2), %s1389_s21, 256, %s1382_s14, %s1394_s16, %s1175_s6, %s1583_s10, %s1582_s18  }
  0x93   : > { %s1430_s2 = scalar_select %p41_p11, %s1147_s20, %s1584_s11  }
  0x94   : > { %s262_s27 = scalar_lea.vmem [#allocation7], %s1370_s8  ;;  %s258_s7 = sand.u32 1, %s1167_s25  }
  0x95   : > { %s270_s15 = sshll.u32 %s262_s27, 4  ;;  %s768_s13 = sshll.u32 %s1163_s24, 3  ;;  %s1434_s15 = int_to_ptr.vmem [resolvable:$true] %s270_s15 }
  0x96   : > { %s267_s0 = sadd.s32 %s1159_s23, %s768_s13  ;;  %s1443_s12 = scalar_lea.sflag [#allocation8], %s258_s7 }
  0x97   : > { %s769_s3 = sshll.u32 %s267_s0, 7  ;;  %s1064_s0 = scalar_lea.hbm %s1547_s1, 2048 }
  0x98   : > { %s1441_s17 = scalar_lea.hbm %s1547_s1, %s769_s3 }
  0x99   : > { %s1059_s14 = scalar_lea.hbm %s1441_s17, 256  ;;  %p1065_p3 = scmp.lt.u32.totalorder %s1441_s17, %s1547_s1 }
  0x9a   : > { %p1060_p11 = scmp.ne.s32.totalorder %s1441_s17, %s1059_s14  ;;  %p1066_p6 = scmp.lt.u32.totalorder %s1064_s0, %s1059_s14 }
  0x9b   : > { %p1068_p12 = scmp.lt.u32.totalorder %s1059_s14, %s1441_s17 }
  0x9c   : > { %p1062_p7 = pnand %p1060_p11, %p1031_p4  ;;  %p1067_p8 = por %p1066_p6, %p1065_p3 }
  0x9e   : > { %p1063_p1 = pneg %p1062_p7  ;;  %p1069_p0 = por %p1068_p12, %p1067_p8 }
  0xa0   : > { %p1070_p5 = pnand %p1069_p0, %p1063_p1 }
  0xa2   : > { %1073 = shalt.err (!%p1070_p5)
}
  0xa3   : > { %s1074_s3 = scalar_lea.vmem %s1434_s15, 256  ;;  %s1176_s26 = smov [#allocation7]  }
  0xa4   : > { %p1075_p9 = scmp.ne.s32.totalorder %s1434_s15, %s1074_s3  ;;  %s1079_s11 = sshll.u32 %s1176_s26, 4  ;;  %s1080_s11 = int_to_ptr.vmem [resolvable:$false] %s1079_s11 }
  0xa5   : > { %s1081_s27 = scalar_lea.vmem %s1080_s11, 512  ;;  %p1082_p11 = scmp.lt.s32.totalorder %s1434_s15, %s1080_s11 }
  0xa6   : > { %p1077_p10 = pnand %p1075_p9, %p1031_p4  ;;  %p1083_p7 = scmp.lt.s32.totalorder %s1081_s27, %s1074_s3 }
  0xa8   : > { %p1078_p13 = pneg %p1077_p10  ;;  %p1084_p3 = por %p1083_p7, %p1082_p11 }
  0xaa   : > { %p1085_p6 = pnand %p1084_p3, %p1078_p13 }
  0xac   : > { %1088 = shalt.err (!%p1085_p6)
}
  0xad   : > { %847 = dma.hbm_to_vmem [thread:$0]  (!%p1581_p2), %s1441_s17, 256, %s1434_s15, %s1443_s12, %s1175_s6, %s1583_s10, %s1582_s18  }
  0xae   : > { %p1585_p4 = scmp.ne.s32.totalorder %s1571_s30, 0 }
  0xaf   : > { %s284_s7 = sand.u32 (!%p1585_p4), 1, %s1143_s19   ;;  %p1586_p1 = scmp.ne.s32.totalorder (!%p1585_p4), %s1570_s29, 0 }
  0xb0   : > { %282 = sbr.rel (%p1585_p4) target bundleno = 1050 (0x41a), region = 40  ;;  %s1475_s13 = sshll.u32 (!%p1585_p4), %s284_s7, 4 }
  0xb1   : > { %s285_s14 = scalar_lea.sflag (!%p1585_p4), [#allocation6], %s284_s7  ;;  %s288_s8 = scalar_lea.vmem (!%p1585_p4), [#allocation5], %s1475_s13 }
  0xb7   : > { %1122 = dma.done.wait (%p1586_p1), %s285_s14, 256  }
  0xb8   : > { %1124 = vsyncadd (%p1586_p1), %s285_s14, 4294967040  ;;  %s1587_s9 = sadd.s32 4294967295, %s1167_s25   ;;  %s297_s6 = scalar_lea.vmem [#allocation7], %s1475_s13 }
  0xb9   : > { %s293_s17 = sand.u32 1, %s1587_s9  }
  0xba   : > { %s294_s30 = scalar_lea.sflag [#allocation8], %s293_s17 }
  0xbb   : > { %1126 = dma.done.wait (%p1586_p1), %s294_s30, 256  }
  0xbc   : > { %1128 = vsyncadd (%p1586_p1), %s294_s30, 4294967040  ;;  %p1588_p2 = scmp.ne.s32.totalorder %s1569_s28, 0 }
  0xbe   : > { %1130 = dma.done.wait (%p1588_p2), [#allocation8], 256  }
  0xbf   : > { %1132 = vsyncadd (%p1588_p2), [#allocation8], 4294967040 }
  0xc0   : > { %1134 = dma.done.wait (%p1588_p2), [#allocation11], 512  }
  0xc1   : > { %1136 = vsyncadd (%p1588_p2), [#allocation11], 4294966784  ;;  %p341_p8 = scmp.lt.s32.totalorder %s1155_s22, 1  ;;  %s1589_s12 = sld [smem:[#allocation17_spill]] }
  0xc3   : > { %s1607_s22 = smov (!%p341_p8, %s1155_s22), 1 }
  0xc4   : > { %s784_s18 = sshll.u32 %s1607_s22, 4 }
  0xc5   : > { %s1502_s15 = scalar_lea.vmem %s1551_s5, %s784_s18 }
  0xc7   : > { %p778_p12 = scmp.ne.s32.totalorder %s1589_s12, 0 }
  0xc8   : > { %vm350_vm0 = vcmask (!%p778_p12), 130048   ;;  %vm353_vm1 = vcmask (!%p778_p12), 7168   ;;  %v1177_v0 = vmov (!%p778_p12), 0.0  }
  0xc9   : > { %349 = sbr.rel (%p778_p12) target bundleno = 208 (0xd0), region = 64  ;;  %351 = vst.msk [vmem:[#allocation2] sm:$0xff] (!%p778_p12), %vm350_vm0, %v1177_v0  ;;  %352 = vst.msk [vmem:[#allocation2 + $0x8] sm:$0xff] (!%p778_p12), %vm350_vm0, %v1177_v0 }
  0xca   : > { %354 = vst.msk [vmem:[#allocation3] sm:$0xff] (!%p778_p12), %vm353_vm1, %v1177_v0  ;;  %355 = vst.msk [vmem:[#allocation3 + $0x8] sm:$0xff] (!%p778_p12), %vm353_vm1, %v1177_v0 }
  0xcb   : > { %356 = vst.msk [vmem:[#allocation4] sm:$0xff] (!%p778_p12), %vm353_vm1, %v1177_v0  ;;  %357 = vst.msk [vmem:[#allocation4 + $0x8] sm:$0xff] (!%p778_p12), %vm353_vm1, %v1177_v0 }
  0xd0 PF: > { %v360_v1 = vld [vmem:[%s297_s6] sm:$0xff]  ;;  %v361_v2 = vld [vmem:[%s297_s6 + $0x8] sm:$0xff]  ;;  %vm454_vm2 = vcmask 7168   ;;  %vm441_vm3 = vcmask 130048   ;;  %s1590_s22 = sld [smem:[#allocation17_spill]] }
  0xd1   : > { %v358_v3 = vld [vmem:[%s288_s8] sm:$0xff]  ;;  %v807_v4 = vpack.c.bf16 %v361_v2, %v360_v1  ;;  %v459_v5 = vmul.f32 %v360_v1, %v360_v1  ;;  %v359_v7 = vld [vmem:[%s288_s8 + $0x8] sm:$0xff]  ;;  %v460_v8 = vmul.f32 %v361_v2, %v361_v2 }
  0xd2   : > { %797 = vmatprep.mubr.f32.mxu0 %v358_v3  ;;  %v446_v6 = vmul.f32 %v358_v3, %v358_v3  ;;  %v447_v9 = vmul.f32 %v359_v7, %v359_v7  ;;  %v457_v10 = vld [vmem:[#allocation4] sm:$0xff]  ;;  %v444_v11 = vld [vmem:[#allocation3] sm:$0xff]  ;;  %v458_v16 = vld [vmem:[#allocation4 + $0x8] sm:$0xff] }
  0xd3   : > { %808 = vmatprep.subr.bf16.mxu0 %v807_v4  ;;  %461 = vadd.xlane.f32.xlu1 %v459_v5  ;;  %v445_v17 = vld [vmem:[#allocation3 + $0x8] sm:$0xff]  ;;  %v363_v22 = vld [vmem:[#allocation2 + $0x8] sm:$0xff]  ;;  %v362_v23 = vld [vmem:[#allocation2] sm:$0xff] }
  0xd4   : > { %810 = vmatpush3.bf16.xpose.msra.mxu0 %v807_v4  ;;  %448 = vadd.xlane.f32.xlu0 %v446_v6 }
  0xd6   : > { %p779_p0 = scmp.ne.s32.totalorder %s1590_s22, 1 }
  0xd7   : > { %463 = vadd.xlane.f32.xlu1 %v460_v8  ;;  %v1178_v30 = vmov (!%p779_p0), 0   ;;  %v487_v37 = vld [vmem:[#allocation9] sm:$0xff] (!%p779_p0)  ;;  %v488_v40 = vld [vmem:[#allocation9 + $0x8] sm:$0xff] (!%p779_p0)  ;;  %v518_v58 = vld [vmem:[#allocation10 + $0x8] sm:$0xff] (!%p779_p0) }
  0xd8   : > { %450 = vadd.xlane.f32.xlu0 %v447_v9  ;;  %928 = vset.pattern.permute.xlu1 (!%p779_p0), %v1178_v30  ;;  %v503_v47 = vld [vmem:[#allocation12] sm:$0xff] (!%p779_p0)  ;;  %v504_v48 = vld [vmem:[#allocation12 + $0x8] sm:$0xff] (!%p779_p0)  ;;  %v517_v59 = vld [vmem:[#allocation10] sm:$0xff] (!%p779_p0) }
  0xd9   : > { %927 = vset.pattern.permute.xlu0 (!%p779_p0), %v1178_v30 }
  0xdb   : > { %798 = vmatmul.mubr.f32.vlgmr.msra.gmra.mrb[0].mxu0 %v359_v7 }
 0x160   : > { %v462_v12 = vpop.xlane.xlu1 %461 }
 0x161   : > { %v465_v13 = vadd.f32 %v462_v12, %v457_v10  ;;  %v449_v14 = vpop.xlane.xlu0 %448 }
 0x162   : > { %v452_v15 = vadd.f32 %v449_v14, %v444_v11 }
 0x163   : > { %467 = vst.msk [vmem:[#allocation4] sm:$0xff] %vm454_vm2, %v465_v13 }
 0x164   : > { %455 = vst.msk [vmem:[#allocation3] sm:$0xff] %vm454_vm2, %v452_v15  ;;  %v464_v18 = vpop.xlane.xlu1 %463 }
 0x165   : > { %v466_v19 = vadd.f32 %v464_v18, %v458_v16  ;;  %v451_v20 = vpop.xlane.xlu0 %450 }
 0x166   : > { %v453_v21 = vadd.f32 %v451_v20, %v445_v17 }
 0x167   : > { %468 = vst.msk [vmem:[#allocation4 + $0x8] sm:$0xff] %vm454_vm2, %v466_v19 }
 0x168   : > { %456 = vst.msk [vmem:[#allocation3 + $0x8] sm:$0xff] %vm454_vm2, %v453_v21 }
 0x16a   : > { %v479_v28 = vld [vmem:[#allocation4] sm:$0xff] (!%p779_p0) }
 0x16b   : > { %v473_v29 = vld [vmem:[#allocation3] sm:$0xff] (!%p779_p0)  ;;  %v481_v31 = vmax.f32 (!%p779_p0), %v479_v28, 1e-24 }
 0x16c   : > { %v475_v32 = vmax.f32 (!%p779_p0), %v473_v29, 1e-24 }
 0x16d   : > { %929 = vrsqrt.f32 (!%p779_p0), %v481_v31 }
 0x16e   : > { %v480_v33 = vld [vmem:[#allocation4 + $0x8] sm:$0xff] (!%p779_p0)  ;;  %931 = vrsqrt.f32 (!%p779_p0), %v475_v32 }
 0x16f   : > { %v474_v34 = vld [vmem:[#allocation3 + $0x8] sm:$0xff] (!%p779_p0)  ;;  %v482_v35 = vmax.f32 (!%p779_p0), %v480_v33, 1e-24 }
 0x170   : > { %v476_v36 = vmax.f32 (!%p779_p0), %v474_v34, 1e-24 }
 0x171   : > { %933 = vrsqrt.f32 (!%p779_p0), %v482_v35 }
 0x172   : > { %935 = vrsqrt.f32 (!%p779_p0), %v476_v36 }
 0x177   : > { %v930_v38 = vpop.eup (!%p779_p0), %929 }
 0x178   : > { %v932_v39 = vpop.eup (!%p779_p0), %931  ;;  %507 = vperm.xlu0 (!%p779_p0), %927, %v930_v38  }
 0x179   : > { %v489_v42 = vmul.f32 (!%p779_p0), %v932_v39, %v487_v37 }
 0x17b   : > { %v934_v41 = vpop.eup (!%p779_p0), %933  ;;  %493 = vperm.xlu1 (!%p779_p0), %928, %v489_v42  }
 0x17c   : > { %v936_v43 = vpop.eup (!%p779_p0), %935  ;;  %512 = vperm.xlu0 (!%p779_p0), %927, %v934_v41  }
 0x17d   : > { %v490_v44 = vmul.f32 (!%p779_p0), %v936_v43, %v488_v40 }
 0x17f   : > { %498 = vperm.xlu1 (!%p779_p0), %928, %v490_v44  }
 0x1ac   : > { %472 = sbr.rel (%p779_p0) target bundleno = 1050 (0x41a), region = 68 }
 0x1ae   : > { %v799_v24 = vpop.f32.mrb[0].mxu0 }
 0x1af   : > { %v440_v25 = vadd.f32 %v799_v24, %v363_v22  ;;  %v430_v26 = vpop.f32.mrb[1].mxu0 }
 0x1b0   : > { %v439_v27 = vadd.f32 %v430_v26, %v362_v23 }
 0x1b1   : > { %443 = vst.msk [vmem:[#allocation2 + $0x8] sm:$0xff] %vm441_vm3, %v440_v25 }
 0x1b2   : > { %442 = vst.msk [vmem:[#allocation2] sm:$0xff] %vm441_vm3, %v439_v27 }
 0x1b8   : > { %v486_v55 = vld [vmem:[#allocation2 + $0x8] sm:$0xff] }
 0x1b9   : > { %v485_v46 = vld [vmem:[#allocation2] sm:$0xff] }
 0x1f7   : > { %v508_v45 = vpop.permute.xlu0 %507 }
 0x1f8   : > { %v515_v52 = vmul.f32 %v508_v45, %v503_v47 }
 0x1fa   : > { %v494_v49 = vpop.permute.xlu1 %493 }
 0x1fb   : > { %v513_v50 = vpop.permute.xlu0 %512  ;;  %v501_v51 = vmul.f32 %v494_v49, %v485_v46 }
 0x1fc   : > { %v516_v53 = vmul.f32 %v513_v50, %v504_v48 }
 0x1fd   : > { %804 = vmatprep.mubr.msk.f32.mxu0 %vm441_vm3, %v501_v51 }
 0x1fe   : > { %v811_v54 = vpack.c.bf16 %v516_v53, %v515_v52  ;;  %v499_v56 = vpop.permute.xlu1 %498 }
 0x1ff   : > { %v502_v57 = vmul.f32 %v499_v56, %v486_v55 }
 0x200   : > { %812 = vmatprep.subr.bf16.mxu0 %v811_v54 }
 0x201   : > { %814 = vmatpush3.bf16.msra.mxu0 %v811_v54 }
 0x204   : > { %805 = vmatmul.mubr.msk.f32.vlgmr.msra.gmra.mrb[0].mxu0 %vm441_vm3, %v502_v57 }
 0x2d7   : > { %v806_v60 = vpop.f32.mrb[0].mxu0 }
 0x2d8   : > { %v597_v61 = vadd.f32 %v806_v60, %v518_v58  ;;  %v591_v62 = vpop.f32.mrb[1].mxu0 }
 0x2d9   : > { %v592_v63 = vadd.f32 %v591_v62, %v517_v59 }
 0x2da   : > { %v603_v0 = vsel %vm441_vm3, %v597_v61, -inf }
 0x2db   : > { %604 = vmax.xlane.f32.xlu1 %v603_v0  ;;  %v600_v1 = vsel %vm441_vm3, %v592_v63, -inf }
 0x2dc   : > { %601 = vmax.xlane.f32.xlu0 %v600_v1 }
 0x368   : > { %v605_v2 = vpop.xlane.xlu1 %604 }
 0x369   : > { %v607_v3 = vsub.f32 %v597_v61, %v605_v2  ;;  %v602_v4 = vpop.xlane.xlu0 %601 }
 0x36a   : > { %v606_v5 = vsub.f32 %v592_v63, %v602_v4 }
 0x36b   : > { %v610_v6 = vmul.f32 1.442695, %v607_v3 }
 0x36c   : > { %v608_v7 = vmul.f32 1.442695, %v606_v5 }
 0x36e   : > { %937 = vpow2.f32 %v608_v7 }
 0x36f   : > { %939 = vpow2.f32 %v610_v6 }
 0x378   : > { %v938_v8 = vpop.eup %937 }
 0x379   : > { %v612_v9 = vsel %vm441_vm3, %v938_v8, 0.0  ;;  %v940_v10 = vpop.eup %939 }
 0x37a   : > { %613 = vadd.xlane.f32.xlu0 %v612_v9  ;;  %v615_v11 = vsel %vm441_vm3, %v940_v10, 0.0 }
 0x37e   : > { %616 = vadd.xlane.f32.xlu0 %v615_v11 }
 0x407   : > { %v614_v12 = vpop.xlane.xlu0 %613 }
 0x408   : > { %941 = vrcp.f32 %v614_v12 }
 0x40b   : > { %v617_v13 = vpop.xlane.xlu0 %616 }
 0x40c   : > { %943 = vrcp.f32 %v617_v13 }
 0x412   : > { %v942_v14 = vpop.eup %941 }
 0x413   : > { %v619_v15 = vmul.f32 %v942_v14, %v938_v8 }
 0x415   : > { %622 = vst.msk [vmem:[%s1502_s15] sm:$0xff] %vm441_vm3, %v619_v15 }
 0x416   : > { %v944_v16 = vpop.eup %943 }
 0x417   : > { %v621_v17 = vmul.f32 %v944_v16, %v940_v10 }
 0x419   : > { %623 = vst.msk [vmem:[%s1502_s15 + $0x8] sm:$0xff] %vm441_vm3, %v621_v17 }
 0x41a PF: > { %s22_s25 = sadd.s32 1, %s1167_s25   ;;  %s1591_s28 = sld [smem:[#allocation18_spill]] }
 0x41b   : > { %p19_p5 = scmp.ge.s32.totalorder %s22_s25, 6   ;;  %s1592_s0 = sld [smem:[#allocation19_spill]] }
 0x41c   : > { %s1593_s18 = smov %s1143_s19  ;;  %s1594_s19 = smov %s1147_s20 }
 0x41d   : > { %s1595_s20 = smov %s1430_s2  ;;  %s1596_s21 = smov %s1159_s23 }
 0x41e   : > { %s1597_s22 = smov %s1163_s24  ;;  %21 = sbr.rel (!%p19_p5) target bundleno = 13 (0xd), region = 113 }
 0x420   : > { %s1598_s23 = smov %s1591_s28 }
 0x421   : > { %s1599_s24 = smov %s1592_s0 }
 0x425   :  { %645 = vsyncpa [#allocation6], 1 }
 0x426   :  { %647 = vsyncpa [#allocation6 + $0x1], 1 }
 0x427   :  { %648 = vsyncpa [#allocation8], 1 }
 0x428   :  { %650 = vsyncpa [#allocation8 + $0x1], 1 }
 0x429   :  { %651 = vsyncpa [#allocation11], 1 }

</bundles_post_ra>
